<compile_context>
chip_gen: v5e
topology: v5e:2x2
jax: 0.10.0
libtpu: 0.0.40
codegen_flags: <defaults>
</compile_context>

<pallas_src>
import functools

import jax
import jax.numpy as jnp
from jax.experimental import pallas as pl
from jax.experimental.pallas import tpu as pltpu

EPS = 1e-12                      # module sets layer_norm_eps = norm1d eps = 1e-12
MATMUL_DTYPE = jnp.bfloat16      # MXU operand dtype; accumulation is float32


# ----------------------------------------------------------------------------
# small helpers
# ----------------------------------------------------------------------------
def _layernorm(x, w, b, eps):
    mu = jnp.mean(x, axis=-1, keepdims=True)
    var = jnp.mean((x - mu) ** 2, axis=-1, keepdims=True)
    return (x - mu) * jax.lax.rsqrt(var + eps) * w + b


def _gelu(x):
    # TODO(synk): PyTorch nn.GELU() default is the exact erf form; tanh
    # approximation used here for robust Mosaic lowering.
    c = 0.7978845608028654  # sqrt(2/pi)
    return 0.5 * x * (1.0 + jnp.tanh(c * (x + 0.044715 * x * x * x)))


def _vmem_limit_bytes(frac=0.80, clamp=112 << 20):
    """Size the scoped-VMEM budget against the physical VMEM of this chip."""
    try:
        cap = pltpu.get_tpu_info().vmem_capacity_bytes
    except Exception:
        cap = 64 << 20            # conservative (v7x physical)
    return min(int(cap * frac), clamp)


def _choose_batch_block(B, target=4):
    """Largest divisor of B <= target that still leaves >=2 parallel grid steps
    (keeps both v7x TensorCores busy) -- falls back to 1."""
    best = 1
    for bb in range(1, min(B, target) + 1):
        if B % bb == 0 and (B // bb) >= 2:
            best = bb
    return best


# ----------------------------------------------------------------------------
# Kernel A: patch embedding  (B*N, K) @ (K, D) + bias, tiled over rows
# ----------------------------------------------------------------------------
def _patch_embed_kernel(x_ref, w_ref, b_ref, o_ref):
    x = x_ref[...].astype(MATMUL_DTYPE)
    acc = jnp.dot(x, w_ref[...], preferred_element_type=jnp.float32)
    o_ref[...] = (acc + b_ref[...]).astype(o_ref.dtype)


def patch_embed(x_patches, w, b, *, tm=256):
    M, K = x_patches.shape
    D = w.shape[1]
    tm = min(tm, M)
    grid = (pl.cdiv(M, tm),)
    flops = 2 * M * K * D
    bytes_accessed = (M * K * x_patches.dtype.itemsize
                      + K * D * w.dtype.itemsize
                      + M * D * x_patches.dtype.itemsize)
    return pl.pallas_call(
        _patch_embed_kernel,
        grid=grid,
        out_shape=jax.ShapeDtypeStruct((M, D), x_patches.dtype),
        in_specs=[
            pl.BlockSpec((tm, K), lambda i: (i, 0)),
            pl.BlockSpec((K, D), lambda i: (0, 0)),
            pl.BlockSpec((1, D), lambda i: (0, 0)),
        ],
        out_specs=pl.BlockSpec((tm, D), lambda i: (i, 0)),
        compiler_params=pltpu.CompilerParams(dimension_semantics=("parallel",)),
        cost_estimate=pl.CostEstimate(flops=flops, transcendentals=0,
                                      bytes_accessed=bytes_accessed),
    )(x_patches, w, b)


# ----------------------------------------------------------------------------
# Kernel B: whole transformer encoder stack, grid = (B // Bb, L)
#   - output block (Bb, S, D) stays VMEM-resident across the whole L axis
#   - layer l+1 weights stream in while layer l computes
#   - cls row + positional embedding are written at l == 0 (fused init)
# ----------------------------------------------------------------------------
def _encoder_stack_kernel(nhead, eps, bb,
                          emb_ref, clspos_ref, pos_ref,
                          ln1w_ref, ln1b_ref, wqkv_ref, bqkv_ref,
                          wo_ref, bo_ref, ln2w_ref, ln2b_ref,
                          w1_ref, b1_ref, w2_ref, b2_ref,
                          o_ref):
    l = pl.program_id(1)
    S, D = o_ref.shape[1], o_ref.shape[2]
    hd = D // nhead
    scale = 1.0 / float(hd) ** 0.5

    # Fused sequence build at layer 0: row 0 = cls_token + pos[0],
    # rows 1..N = patch embedding + pos[1:]. The block then stays resident.
    @pl.when(l == 0)
    def _():
        emb = emb_ref[...].astype(jnp.float32) + pos_ref[...].astype(jnp.float32)[None]
        o_ref[:, 1:, :] = emb.astype(o_ref.dtype)
        cls_rows = jnp.broadcast_to(clspos_ref[...].astype(jnp.float32)[None],
                                    (bb, 1, D))
        o_ref[:, 0:1, :] = cls_rows.astype(o_ref.dtype)

    ln1w, ln1b = ln1w_ref[0], ln1b_ref[0]
    ln2w, ln2b = ln2w_ref[0], ln2b_ref[0]

    # Per batch-row attention / FFN; the per-layer weights above are fetched
    # once per grid step and reused for all bb rows (the main DMA amortization).
    # TODO(synk): flattening the bb rows to a (bb*S, D) operand would further
    # fill the MXU M dimension but needs S padded to a sublane multiple; kept
    # per-row matmuls here for lowering robustness.
    for b in range(bb):
        xb = o_ref[b].astype(jnp.float32)                    # (S, D) residual, f32

        # --- self-attention block (norm_first) ---
        h = _layernorm(xb, ln1w, ln1b, eps).astype(MATMUL_DTYPE)
        qkv = (jnp.dot(h, wqkv_ref[0], preferred_element_type=jnp.float32)
               + bqkv_ref[0]).astype(MATMUL_DTYPE)           # single bf16 copy

        heads = []
        for hi in range(nhead):
            lo = hi * hd
            qh = qkv[:, 0 * D + lo:0 * D + lo + hd]          # bf16 head tiles
            kh = qkv[:, 1 * D + lo:1 * D + lo + hd]
            vh = qkv[:, 2 * D + lo:2 * D + lo + hd]
            s = jax.lax.dot_general(
                qh, kh, (((1,), (1,)), ((), ())),
                preferred_element_type=jnp.float32) * scale  # (S, S)
            s = s - jnp.max(s, axis=-1, keepdims=True)
            p = jnp.exp(s)
            p = p / jnp.sum(p, axis=-1, keepdims=True)       # exact softmax denom
            heads.append(jnp.dot(p.astype(MATMUL_DTYPE), vh,
                                 preferred_element_type=jnp.float32))  # (S, hd)

        # Lane-dense (S, D) context -> one full-K out-projection matmul
        # (no masked 64-lane scratch stores).
        ctx = jnp.concatenate(heads, axis=-1).astype(MATMUL_DTYPE)
        attn = jnp.dot(ctx, wo_ref[0],
                       preferred_element_type=jnp.float32) + bo_ref[0]
        xb = xb + attn

        # --- feed-forward block (norm_first) ---
        h2 = _layernorm(xb, ln2w, ln2b, eps).astype(MATMUL_DTYPE)
        f = jnp.dot(h2, w1_ref[0], preferred_element_type=jnp.float32) + b1_ref[0]
        f = _gelu(f).astype(MATMUL_DTYPE)
        f = jnp.dot(f, w2_ref[0], preferred_element_type=jnp.float32) + b2_ref[0]
        o_ref[b] = (xb + f).astype(o_ref.dtype)


def encoder_stack(emb, cls_pos_row, pos_rest, lp, nhead, *, eps=EPS,
                  batch_block=4):
    B, N, D = emb.shape
    S = N + 1
    L = lp["wqkv"].shape[0]
    F = lp["w1"].shape[2]
    bb = _choose_batch_block(B, batch_block)
    nb = B // bb
    kernel = functools.partial(_encoder_stack_kernel, nhead, eps, bb)

    def per_layer(arr):
        nd = arr.ndim
        return pl.BlockSpec((1,) + tuple(arr.shape[1:]),
                            lambda b, l, _nd=nd: (l,) + (0,) * (_nd - 1))

    in_specs = [
        pl.BlockSpec((bb, N, D), lambda b, l: (b, 0, 0)),    # patch embeddings
        pl.BlockSpec((1, D), lambda b, l: (0, 0)),           # cls_token + pos[0]
        pl.BlockSpec((N, D), lambda b, l: (0, 0)),           # pos[1:]
        per_layer(lp["ln1w"]), per_layer(lp["ln1b"]),
        per_layer(lp["wqkv"]), per_layer(lp["bqkv"]),
        per_layer(lp["wo"]), per_layer(lp["bo"]),
        per_layer(lp["ln2w"]), per_layer(lp["ln2b"]),
        per_layer(lp["w1"]), per_layer(lp["b1"]),
        per_layer(lp["w2"]), per_layer(lp["b2"]),
    ]

    flops = 2 * B * L * S * (D * (4 * D + 2 * F) + 2 * S * D)
    trans = B * L * S * (nhead * S + F)
    wbytes_layer = (4 * D * D + 2 * D * F) * 2 + (13 * D + F) * 4
    bytes_accessed = nb * L * wbytes_layer + 3 * B * S * D * 4

    return pl.pallas_call(
        kernel,
        grid=(nb, L),
        out_shape=jax.ShapeDtypeStruct((B, S, D), emb.dtype),
        in_specs=in_specs,
        out_specs=pl.BlockSpec((bb, S, D), lambda b, l: (b, 0, 0)),
        compiler_params=pltpu.CompilerParams(
            dimension_semantics=("parallel", "arbitrary"),
            vmem_limit_bytes=_vmem_limit_bytes()),
        cost_estimate=pl.CostEstimate(flops=flops, transcendentals=trans,
                                      bytes_accessed=bytes_accessed),
    )(emb, cls_pos_row, pos_rest,
      lp["ln1w"], lp["ln1b"], lp["wqkv"], lp["bqkv"], lp["wo"], lp["bo"],
      lp["ln2w"], lp["ln2b"], lp["w1"], lp["b1"], lp["w2"], lp["b2"])


# ----------------------------------------------------------------------------
# Kernel C: final LayerNorm (norm1d) + classification head on cls tokens.
# num_classes is padded to a 128-lane multiple so the store is lane-dense.
# ----------------------------------------------------------------------------
def _head_kernel(eps, x_ref, lnw_ref, lnb_ref, w_ref, b_ref, o_ref):
    h = _layernorm(x_ref[...].astype(jnp.float32), lnw_ref[...], lnb_ref[...], eps)
    o_ref[...] = (
        jnp.dot(h.astype(MATMUL_DTYPE), w_ref[...],
                preferred_element_type=jnp.float32) + b_ref[...]
    ).astype(o_ref.dtype)


def head(x_cls, ln_w, ln_b, fc_w, fc_b, eps=EPS):
    B, D = x_cls.shape
    C = fc_w.shape[1]
    Cp = ((C + 127) // 128) * 128
    if Cp != C:
        fc_w = jnp.pad(fc_w, ((0, 0), (0, Cp - C)))
        fc_b = jnp.pad(fc_b, ((0, 0), (0, Cp - C)))
    out = pl.pallas_call(
        functools.partial(_head_kernel, eps),
        grid=(1,),
        out_shape=jax.ShapeDtypeStruct((B, Cp), x_cls.dtype),
        in_specs=[
            pl.BlockSpec((B, D), lambda i: (0, 0)),
            pl.BlockSpec((1, D), lambda i: (0, 0)),
            pl.BlockSpec((1, D), lambda i: (0, 0)),
            pl.BlockSpec((D, Cp), lambda i: (0, 0)),
            pl.BlockSpec((1, Cp), lambda i: (0, 0)),
        ],
        out_specs=pl.BlockSpec((B, Cp), lambda i: (0, 0)),
    )(x_cls, ln_w, ln_b, fc_w, fc_b)
    return out[:, :C]


# ----------------------------------------------------------------------------
# Glue: patch extraction (== Conv2d kernel=stride=patch, channel_last, to_1d)
# ----------------------------------------------------------------------------
def extract_patches(x, pH, pW):
    B, C, H, W = x.shape
    nH, nW = H // pH, W // pW
    x = x.reshape(B, C, nH, pH, nW, pW)
    x = x.transpose(0, 2, 4, 1, 3, 5)          # (B, nH, nW, C, pH, pW)
    return x.reshape(B, nH * nW, C * pH * pW)  # row-major patch order


def vit_forward(x, params, *, patch_size, nhead, batch_block=4):
    pH, pW = patch_size
    B = x.shape[0]
    patches = extract_patches(x, pH, pW)                 # (B, N, K)
    N, K = patches.shape[1], patches.shape[2]
    D = params["patch_w"].shape[1]

    emb = patch_embed(patches.reshape(B * N, K),
                      params["patch_w"], params["patch_b"]).reshape(B, N, D)

    pos = params["pos_emb"]                              # (N + 1, D)
    cls_pos_row = (params["cls_token"].reshape(1, D) + pos[0:1]).astype(emb.dtype)
    pos_rest = pos[1:].astype(emb.dtype)
    # cls concat + positional add + dropout(p=0) are fused into the encoder's
    # layer-0 init (dropout p=0 is the identity and is skipped).

    x_seq = encoder_stack(emb, cls_pos_row, pos_rest, params["layers"], nhead,
                          batch_block=batch_block)

    # norm1d is per-token, so normalizing only the pooled cls token is exact.
    cls_tok = x_seq[:, 0, :]                             # ViTPool('cls', dim=1)
    return head(cls_tok, params["ln_w"], params["ln_b"],
                params["fc_w"], params["fc_b"])


# ----------------------------------------------------------------------------
# Deterministic synthetic parameter init (shapes follow the PyTorch __init__),
# layer weights stacked along a leading L axis; matmul weights in bf16.
# ----------------------------------------------------------------------------
def init_params(key, in_channels, embed_dim, patch_size, num_patches,
                nhead, d_ff, num_layers, num_classes,
                dtype=jnp.float32, wdtype=MATMUL_DTYPE):
    pH, pW = patch_size
    K = in_channels * pH * pW
    D, F, L = embed_dim, d_ff, num_layers
    keys = jax.random.split(key, 8)

    def normal(k, shape, std=0.02, dt=wdtype):
        return (std * jax.random.normal(k, shape)).astype(dt)

    return {
        # Conv2d(in, D, patch, stride=patch) weight reshaped to (C*pH*pW, D).
        "patch_w": normal(keys[0], (K, D)),
        "patch_b": jnp.zeros((1, D), dtype),
        # positional_embedding / cls_token use .normal_() (std=1) in PyTorch.
        "pos_emb": normal(keys[1], (num_patches + 1, D), std=1.0, dt=dtype),
        "cls_token": normal(keys[2], (1, 1, D), std=1.0, dt=dtype),
        "ln_w": jnp.ones((1, D), dtype),
        "ln_b": jnp.zeros((1, D), dtype),
        "fc_w": normal(keys[3], (D, num_classes)),
        "fc_b": jnp.zeros((1, num_classes), dtype),
        "layers": {
            "ln1w": jnp.ones((L, 1, D), dtype),
            "ln1b": jnp.zeros((L, 1, D), dtype),
            "wqkv": normal(keys[4], (L, D, 3 * D)),
            "bqkv": jnp.zeros((L, 1, 3 * D), dtype),
            "wo":   normal(keys[5], (L, D, D)),
            "bo":   jnp.zeros((L, 1, D), dtype),
            "ln2w": jnp.ones((L, 1, D), dtype),
            "ln2b": jnp.zeros((L, 1, D), dtype),
            "w1":   normal(keys[6], (L, D, F)),
            "b1":   jnp.zeros((L, 1, F), dtype),
            "w2":   normal(keys[7], (L, F, D)),
            "b2":   jnp.zeros((L, 1, D), dtype),
        },
    }


if __name__ == "__main__":
    # Small configuration consistent with the module's forward:
    # batch=4 (exercises the batch-blocked encoder with 2 parallel grid steps),
    # in_channels=4, image 16x16, patch 4 -> 16 patches, embed_dim=32, 4 heads,
    # d_ff=64, 2 encoder layers, 10 classes, pooling='cls'.
    B, C, H, W = 4, 4, 16, 16
    patch = (4, 4)
    embed_dim, nhead, d_ff, num_layers, num_classes = 32, 4, 64, 2, 10
    num_patches = (H // patch[0]) * (W // patch[1])

    root = jax.random.PRNGKey(0)
    k_params, k_input = jax.random.split(root)
    params = init_params(k_params, C, embed_dim, patch, num_patches,
                         nhead, d_ff, num_layers, num_classes)
    x = jax.random.normal(k_input, (B, C, H, W), jnp.float32)

    @jax.jit
    def fwd(x, params):
        return vit_forward(x, params, patch_size=patch, nhead=nhead)

    out = jax.block_until_ready(fwd(x, params))
    assert out.shape == (B, num_classes), out.shape
    assert bool(jnp.all(jnp.isfinite(out)))
    print("KERNEL_OK")
</pallas_src>

<mosaic_0001>
module attributes {stable_mosaic.version = 11 : i64} {
  func.func @_patch_embed_kernel(%arg0: i32, %arg1: memref<64x64xf32, #tpu.memory_space<vmem>>, %arg2: memref<64x32xbf16, #tpu.memory_space<vmem>>, %arg3: memref<1x32xf32, #tpu.memory_space<vmem>>, %arg4: memref<64x32xf32, #tpu.memory_space<vmem>>) attributes {dimension_semantics = [#tpu.dimension_semantics<parallel>], iteration_bounds = array<i64: 1>, scalar_prefetch = 0 : i64, scratch_operands = 0 : i64, tpu.core_type = #tpu.core_type<tc>, window_params = [{transform_indices = @transform_0, window_bounds = array<i64: 64, 64>}, {pipeline_mode = #tpu.pipeline_mode<synchronous>, transform_indices = @transform_1, window_bounds = array<i64: 64, 32>}, {pipeline_mode = #tpu.pipeline_mode<synchronous>, transform_indices = @transform_2, window_bounds = array<i64: 1, 32>}, {transform_indices = @transform_3, window_bounds = array<i64: 64, 32>}]} {
    %c0 = arith.constant 0 : index
    %c0_0 = arith.constant 0 : index
    %0 = vector.load %arg1[%c0, %c0_0] : memref<64x64xf32, #tpu.memory_space<vmem>>, vector<64x64xf32>
    %1 = arith.truncf %0 : vector<64x64xf32> to vector<64x64xbf16>
    %c0_1 = arith.constant 0 : index
    %c0_2 = arith.constant 0 : index
    %2 = vector.load %arg2[%c0_1, %c0_2] : memref<64x32xbf16, #tpu.memory_space<vmem>>, vector<64x32xbf16>
    %cst = arith.constant dense<0.000000e+00> : vector<64x32xf32>
    %3 = tpu.matmul %1, %2, %cst {dimension_numbers = #tpu.dot_dimension_numbers<[1], [0], [0], [1], [0, 0, 1, 1], [], []>} : vector<64x64xbf16>, vector<64x32xbf16>, vector<64x32xf32> -> vector<64x32xf32>
    %c0_3 = arith.constant 0 : index
    %c0_4 = arith.constant 0 : index
    %4 = vector.load %arg3[%c0_3, %c0_4] : memref<1x32xf32, #tpu.memory_space<vmem>>, vector<1x32xf32>
    %5 = vector.broadcast %4 : vector<1x32xf32> to vector<64x32xf32>
    %6 = arith.addf %3, %5 : vector<64x32xf32>
    %c0_5 = arith.constant 0 : index
    %c0_6 = arith.constant 0 : index
    %7 = vector.load %arg4[%c0_5, %c0_6] : memref<64x32xf32, #tpu.memory_space<vmem>>, vector<64x32xf32>
    tpu.vector_store %arg4[%c0_5, %c0_6], %6 {strides = array<i32>} : memref<64x32xf32, #tpu.memory_space<vmem>>, vector<64x32xf32>,
    return
  }
  func.func @transform_0(%arg0: i32) -> (i32, i32) {
    %c0_i32 = arith.constant 0 : i32
    %c0_i32_0 = arith.constant 0 : i32
    return %arg0, %c0_i32 : i32, i32
  }
  func.func @transform_1(%arg0: i32) -> (i32, i32) {
    %c0_i32 = arith.constant 0 : i32
    %c0_i32_0 = arith.constant 0 : i32
    %c0_i32_1 = arith.constant 0 : i32
    return %c0_i32, %c0_i32_0 : i32, i32
  }
  func.func @transform_2(%arg0: i32) -> (i32, i32) {
    %c0_i32 = arith.constant 0 : i32
    %c0_i32_0 = arith.constant 0 : i32
    %c0_i32_1 = arith.constant 0 : i32
    return %c0_i32, %c0_i32_0 : i32, i32
  }
  func.func @transform_3(%arg0: i32) -> (i32, i32) {
    %c0_i32 = arith.constant 0 : i32
    %c0_i32_0 = arith.constant 0 : i32
    return %arg0, %c0_i32 : i32, i32
  }
}

module attributes {stable_mosaic.version = 11 : i64} {
  func.func @_head_kernel(%arg0: i32, %arg1: memref<4x32xf32, #tpu.memory_space<vmem>>, %arg2: memref<1x32xf32, #tpu.memory_space<vmem>>, %arg3: memref<1x32xf32, #tpu.memory_space<vmem>>, %arg4: memref<32x128xbf16, #tpu.memory_space<vmem>>, %arg5: memref<1x128xf32, #tpu.memory_space<vmem>>, %arg6: memref<4x128xf32, #tpu.memory_space<vmem>>) attributes {dimension_semantics = [#tpu.dimension_semantics<arbitrary>], iteration_bounds = array<i64: 1>, scalar_prefetch = 0 : i64, scratch_operands = 0 : i64, tpu.core_type = #tpu.core_type<tc>, window_params = [{pipeline_mode = #tpu.pipeline_mode<synchronous>, transform_indices = @transform_0, window_bounds = array<i64: 4, 32>}, {pipeline_mode = #tpu.pipeline_mode<synchronous>, transform_indices = @transform_1, window_bounds = array<i64: 1, 32>}, {pipeline_mode = #tpu.pipeline_mode<synchronous>, transform_indices = @transform_2, window_bounds = array<i64: 1, 32>}, {pipeline_mode = #tpu.pipeline_mode<synchronous>, transform_indices = @transform_3, window_bounds = array<i64: 32, 128>}, {pipeline_mode = #tpu.pipeline_mode<synchronous>, transform_indices = @transform_4, window_bounds = array<i64: 1, 128>}, {pipeline_mode = #tpu.pipeline_mode<synchronous>, transform_indices = @transform_5, window_bounds = array<i64: 4, 128>}]} {
    %c0 = arith.constant 0 : index
    %c0_0 = arith.constant 0 : index
    %0 = vector.load %arg1[%c0, %c0_0] : memref<4x32xf32, #tpu.memory_space<vmem>>, vector<4x32xf32>
    %c0_1 = arith.constant 0 : index
    %c0_2 = arith.constant 0 : index
    %1 = vector.load %arg2[%c0_1, %c0_2] : memref<1x32xf32, #tpu.memory_space<vmem>>, vector<1x32xf32>
    %c0_3 = arith.constant 0 : index
    %c0_4 = arith.constant 0 : index
    %2 = vector.load %arg3[%c0_3, %c0_4] : memref<1x32xf32, #tpu.memory_space<vmem>>, vector<1x32xf32>
    %cst = arith.constant dense<0.000000e+00> : vector<4xf32>
    %3 = vector.multi_reduction <add>, %0, %cst [1] : vector<4x32xf32> to vector<4xf32>
    %4 = vector.shape_cast %3 : vector<4xf32> to vector<4x1xf32>
    %cst_5 = arith.constant 3.200000e+01 : f32
    %5 = vector.broadcast %cst_5 : f32 to vector<4x1xf32>
    %6 = arith.divf %4, %5 : vector<4x1xf32>
    %7 = vector.broadcast %6 : vector<4x1xf32> to vector<4x32xf32>
    %8 = arith.subf %0, %7 : vector<4x32xf32>
    %9 = arith.mulf %8, %8 : vector<4x32xf32>
    %cst_6 = arith.constant dense<0.000000e+00> : vector<4xf32>
    %10 = vector.multi_reduction <add>, %9, %cst_6 [1] : vector<4x32xf32> to vector<4xf32>
    %11 = vector.shape_cast %10 : vector<4xf32> to vector<4x1xf32>
    %cst_7 = arith.constant 3.200000e+01 : f32
    %12 = vector.broadcast %cst_7 : f32 to vector<4x1xf32>
    %13 = arith.divf %11, %12 : vector<4x1xf32>
    %14 = vector.broadcast %6 : vector<4x1xf32> to vector<4x32xf32>
    %15 = arith.subf %0, %14 : vector<4x32xf32>
    %cst_8 = arith.constant 9.99999996E-13 : f32
    %16 = vector.broadcast %cst_8 : f32 to vector<4x1xf32>
    %17 = arith.addf %13, %16 : vector<4x1xf32>
    %18 = math.rsqrt %17 : vector<4x1xf32>
    %19 = vector.broadcast %18 : vector<4x1xf32> to vector<4x32xf32>
    %20 = arith.mulf %15, %19 : vector<4x32xf32>
    %21 = vector.broadcast %1 : vector<1x32xf32> to vector<4x32xf32>
    %22 = arith.mulf %20, %21 : vector<4x32xf32>
    %23 = vector.broadcast %2 : vector<1x32xf32> to vector<4x32xf32>
    %24 = arith.addf %22, %23 : vector<4x32xf32>
    %25 = arith.truncf %24 : vector<4x32xf32> to vector<4x32xbf16>
    %c0_9 = arith.constant 0 : index
    %c0_10 = arith.constant 0 : index
    %26 = vector.load %arg4[%c0_9, %c0_10] : memref<32x128xbf16, #tpu.memory_space<vmem>>, vector<32x128xbf16>
    %cst_11 = arith.constant dense<0.000000e+00> : vector<4x128xf32>
    %27 = tpu.matmul %25, %26, %cst_11 {dimension_numbers = #tpu.dot_dimension_numbers<[1], [0], [0], [1], [0, 0, 1, 1], [], []>} : vector<4x32xbf16>, vector<32x128xbf16>, vector<4x128xf32> -> vector<4x128xf32>
    %c0_12 = arith.constant 0 : index
    %c0_13 = arith.constant 0 : index
    %28 = vector.load %arg5[%c0_12, %c0_13] : memref<1x128xf32, #tpu.memory_space<vmem>>, vector<1x128xf32>
    %29 = vector.broadcast %28 : vector<1x128xf32> to vector<4x128xf32>
    %30 = arith.addf %27, %29 : vector<4x128xf32>
    %c0_14 = arith.constant 0 : index
    %c0_15 = arith.constant 0 : index
    %31 = vector.load %arg6[%c0_14, %c0_15] : memref<4x128xf32, #tpu.memory_space<vmem>>, vector<4x128xf32>
    tpu.vector_store %arg6[%c0_14, %c0_15], %30 {strides = array<i32>} : memref<4x128xf32, #tpu.memory_space<vmem>>, vector<4x128xf32>,
    return
  }
  func.func @transform_0(%arg0: i32) -> (i32, i32) {
    %c0_i32 = arith.constant 0 : i32
    %c0_i32_0 = arith.constant 0 : i32
    %c0_i32_1 = arith.constant 0 : i32
    return %c0_i32, %c0_i32_0 : i32, i32
  }
  func.func @transform_1(%arg0: i32) -> (i32, i32) {
    %c0_i32 = arith.constant 0 : i32
    %c0_i32_0 = arith.constant 0 : i32
    %c0_i32_1 = arith.constant 0 : i32
    return %c0_i32, %c0_i32_0 : i32, i32
  }
  func.func @transform_2(%arg0: i32) -> (i32, i32) {
    %c0_i32 = arith.constant 0 : i32
    %c0_i32_0 = arith.constant 0 : i32
    %c0_i32_1 = arith.constant 0 : i32
    return %c0_i32, %c0_i32_0 : i32, i32
  }
  func.func @transform_3(%arg0: i32) -> (i32, i32) {
    %c0_i32 = arith.constant 0 : i32
    %c0_i32_0 = arith.constant 0 : i32
    %c0_i32_1 = arith.constant 0 : i32
    return %c0_i32, %c0_i32_0 : i32, i32
  }
  func.func @transform_4(%arg0: i32) -> (i32, i32) {
    %c0_i32 = arith.constant 0 : i32
    %c0_i32_0 = arith.constant 0 : i32
    %c0_i32_1 = arith.constant 0 : i32
    return %c0_i32, %c0_i32_0 : i32, i32
  }
  func.func @transform_5(%arg0: i32) -> (i32, i32) {
    %c0_i32 = arith.constant 0 : i32
    %c0_i32_0 = arith.constant 0 : i32
    %c0_i32_1 = arith.constant 0 : i32
    return %c0_i32, %c0_i32_0 : i32, i32
  }
}

module attributes {stable_mosaic.version = 11 : i64} {
  func.func @_encoder_stack_kernel(%arg0: i32, %arg1: i32, %arg2: memref<2x16x32xf32, #tpu.memory_space<vmem>>, %arg3: memref<1x32xf32, #tpu.memory_space<vmem>>, %arg4: memref<16x32xf32, #tpu.memory_space<vmem>>, %arg5: memref<1x1x32xf32, #tpu.memory_space<vmem>>, %arg6: memref<1x1x32xf32, #tpu.memory_space<vmem>>, %arg7: memref<1x32x96xbf16, #tpu.memory_space<vmem>>, %arg8: memref<1x1x96xf32, #tpu.memory_space<vmem>>, %arg9: memref<1x32x32xbf16, #tpu.memory_space<vmem>>, %arg10: memref<1x1x32xf32, #tpu.memory_space<vmem>>, %arg11: memref<1x1x32xf32, #tpu.memory_space<vmem>>, %arg12: memref<1x1x32xf32, #tpu.memory_space<vmem>>, %arg13: memref<1x32x64xbf16, #tpu.memory_space<vmem>>, %arg14: memref<1x1x64xf32, #tpu.memory_space<vmem>>, %arg15: memref<1x64x32xbf16, #tpu.memory_space<vmem>>, %arg16: memref<1x1x32xf32, #tpu.memory_space<vmem>>, %arg17: memref<2x17x32xf32, #tpu.memory_space<vmem>>) attributes {dimension_semantics = [#tpu.dimension_semantics<parallel>, #tpu.dimension_semantics<arbitrary>], iteration_bounds = array<i64: 2, 2>, scalar_prefetch = 0 : i64, scratch_operands = 0 : i64, tpu.core_type = #tpu.core_type<tc>, window_params = [{transform_indices = @transform_0, window_bounds = array<i64: 2, 16, 32>}, {pipeline_mode = #tpu.pipeline_mode<synchronous>, transform_indices = @transform_1, window_bounds = array<i64: 1, 32>}, {pipeline_mode = #tpu.pipeline_mode<synchronous>, transform_indices = @transform_2, window_bounds = array<i64: 16, 32>}, {transform_indices = @transform_3, window_bounds = array<i64: 1, 1, 32>}, {transform_indices = @transform_4, window_bounds = array<i64: 1, 1, 32>}, {transform_indices = @transform_5, window_bounds = array<i64: 1, 32, 96>}, {transform_indices = @transform_6, window_bounds = array<i64: 1, 1, 96>}, {transform_indices = @transform_7, window_bounds = array<i64: 1, 32, 32>}, {transform_indices = @transform_8, window_bounds = array<i64: 1, 1, 32>}, {transform_indices = @transform_9, window_bounds = array<i64: 1, 1, 32>}, {transform_indices = @transform_10, window_bounds = array<i64: 1, 1, 32>}, {transform_indices = @transform_11, window_bounds = array<i64: 1, 32, 64>}, {transform_indices = @transform_12, window_bounds = array<i64: 1, 1, 64>}, {transform_indices = @transform_13, window_bounds = array<i64: 1, 64, 32>}, {transform_indices = @transform_14, window_bounds = array<i64: 1, 1, 32>}, {transform_indices = @transform_15, window_bounds = array<i64: 2, 17, 32>}]} {
    %c0_i32 = arith.constant 0 : i32
    %0 = arith.cmpi eq, %arg1, %c0_i32 : i32
    %1 = arith.extui %0 : i1 to i32
    %c0_i32_0 = arith.constant 0 : i32
    %2 = arith.cmpi ne, %1, %c0_i32_0 : i32
    scf.if %2 {
      %c0_146 = arith.constant 0 : index
      %c0_147 = arith.constant 0 : index
      %c0_148 = arith.constant 0 : index
      %343 = vector.load %arg2[%c0_146, %c0_147, %c0_148] : memref<2x16x32xf32, #tpu.memory_space<vmem>>, vector<2x16x32xf32>
      %c0_149 = arith.constant 0 : index
      %c0_150 = arith.constant 0 : index
      %344 = vector.load %arg4[%c0_149, %c0_150] : memref<16x32xf32, #tpu.memory_space<vmem>>, vector<16x32xf32>
      %345 = vector.shape_cast %344 : vector<16x32xf32> to vector<1x16x32xf32>
      %346 = vector.broadcast %345 : vector<1x16x32xf32> to vector<2x16x32xf32>
      %347 = arith.addf %343, %346 : vector<2x16x32xf32>
      %c0_151 = arith.constant 0 : index
      %c1_152 = arith.constant 1 : index
      %c0_153 = arith.constant 0 : index
      %348 = vector.load %arg17[%c0_151, %c1_152, %c0_153] : memref<2x17x32xf32, #tpu.memory_space<vmem>>, vector<2x16x32xf32>
      tpu.vector_store %arg17[%c0_151, %c1_152, %c0_153], %347 {strides = array<i32>} : memref<2x17x32xf32, #tpu.memory_space<vmem>>, vector<2x16x32xf32>,
      %c0_154 = arith.constant 0 : index
      %c0_155 = arith.constant 0 : index
      %349 = vector.load %arg3[%c0_154, %c0_155] : memref<1x32xf32, #tpu.memory_space<vmem>>, vector<1x32xf32>
      %350 = vector.shape_cast %349 : vector<1x32xf32> to vector<1x1x32xf32>
      %351 = vector.shape_cast %350 : vector<1x1x32xf32> to vector<1x1x32xf32>
      %352 = vector.broadcast %351 : vector<1x1x32xf32> to vector<2x1x32xf32>
      %c0_156 = arith.constant 0 : index
      %c0_157 = arith.constant 0 : index
      %c0_158 = arith.constant 0 : index
      %353 = vector.load %arg17[%c0_156, %c0_157, %c0_158] : memref<2x17x32xf32, #tpu.memory_space<vmem>>, vector<2x1x32xf32>
      tpu.vector_store %arg17[%c0_156, %c0_157, %c0_158], %352 {strides = array<i32>} : memref<2x17x32xf32, #tpu.memory_space<vmem>>, vector<2x1x32xf32>,
    } else {
    }
    %c0 = arith.constant 0 : index
    %c0_1 = arith.constant 0 : index
    %c0_2 = arith.constant 0 : index
    %3 = vector.load %arg5[%c0, %c0_1, %c0_2] : memref<1x1x32xf32, #tpu.memory_space<vmem>>, vector<1x1x32xf32>
    %4 = vector.shape_cast %3 : vector<1x1x32xf32> to vector<1x32xf32>
    %c0_3 = arith.constant 0 : index
    %c0_4 = arith.constant 0 : index
    %c0_5 = arith.constant 0 : index
    %5 = vector.load %arg6[%c0_3, %c0_4, %c0_5] : memref<1x1x32xf32, #tpu.memory_space<vmem>>, vector<1x1x32xf32>
    %6 = vector.shape_cast %5 : vector<1x1x32xf32> to vector<1x32xf32>
    %c0_6 = arith.constant 0 : index
    %c0_7 = arith.constant 0 : index
    %c0_8 = arith.constant 0 : index
    %7 = vector.load %arg11[%c0_6, %c0_7, %c0_8] : memref<1x1x32xf32, #tpu.memory_space<vmem>>, vector<1x1x32xf32>
    %8 = vector.shape_cast %7 : vector<1x1x32xf32> to vector<1x32xf32>
    %c0_9 = arith.constant 0 : index
    %c0_10 = arith.constant 0 : index
    %c0_11 = arith.constant 0 : index
    %9 = vector.load %arg12[%c0_9, %c0_10, %c0_11] : memref<1x1x32xf32, #tpu.memory_space<vmem>>, vector<1x1x32xf32>
    %10 = vector.shape_cast %9 : vector<1x1x32xf32> to vector<1x32xf32>
    %c0_12 = arith.constant 0 : index
    %c0_13 = arith.constant 0 : index
    %c0_14 = arith.constant 0 : index
    %11 = vector.load %arg17[%c0_12, %c0_13, %c0_14] : memref<2x17x32xf32, #tpu.memory_space<vmem>>, vector<1x17x32xf32>
    %12 = vector.shape_cast %11 : vector<1x17x32xf32> to vector<17x32xf32>
    %cst = arith.constant dense<0.000000e+00> : vector<17xf32>
    %13 = vector.multi_reduction <add>, %12, %cst [1] : vector<17x32xf32> to vector<17xf32>
    %14 = vector.shape_cast %13 : vector<17xf32> to vector<17x1xf32>
    %cst_15 = arith.constant 3.200000e+01 : f32
    %15 = vector.broadcast %cst_15 : f32 to vector<17x1xf32>
    %16 = arith.divf %14, %15 : vector<17x1xf32>
    %17 = vector.broadcast %16 : vector<17x1xf32> to vector<17x32xf32>
    %18 = arith.subf %12, %17 : vector<17x32xf32>
    %19 = arith.mulf %18, %18 : vector<17x32xf32>
    %cst_16 = arith.constant dense<0.000000e+00> : vector<17xf32>
    %20 = vector.multi_reduction <add>, %19, %cst_16 [1] : vector<17x32xf32> to vector<17xf32>
    %21 = vector.shape_cast %20 : vector<17xf32> to vector<17x1xf32>
    %cst_17 = arith.constant 3.200000e+01 : f32
    %22 = vector.broadcast %cst_17 : f32 to vector<17x1xf32>
    %23 = arith.divf %21, %22 : vector<17x1xf32>
    %24 = vector.broadcast %16 : vector<17x1xf32> to vector<17x32xf32>
    %25 = arith.subf %12, %24 : vector<17x32xf32>
    %cst_18 = arith.constant 9.99999996E-13 : f32
    %26 = vector.broadcast %cst_18 : f32 to vector<17x1xf32>
    %27 = arith.addf %23, %26 : vector<17x1xf32>
    %28 = math.rsqrt %27 : vector<17x1xf32>
    %29 = vector.broadcast %28 : vector<17x1xf32> to vector<17x32xf32>
    %30 = arith.mulf %25, %29 : vector<17x32xf32>
    %31 = vector.broadcast %4 : vector<1x32xf32> to vector<17x32xf32>
    %32 = arith.mulf %30, %31 : vector<17x32xf32>
    %33 = vector.broadcast %6 : vector<1x32xf32> to vector<17x32xf32>
    %34 = arith.addf %32, %33 : vector<17x32xf32>
    %35 = arith.truncf %34 : vector<17x32xf32> to vector<17x32xbf16>
    %c0_19 = arith.constant 0 : index
    %c0_20 = arith.constant 0 : index
    %c0_21 = arith.constant 0 : index
    %36 = vector.load %arg7[%c0_19, %c0_20, %c0_21] : memref<1x32x96xbf16, #tpu.memory_space<vmem>>, vector<1x32x96xbf16>
    %37 = vector.shape_cast %36 : vector<1x32x96xbf16> to vector<32x96xbf16>
    %cst_22 = arith.constant dense<0.000000e+00> : vector<17x96xf32>
    %38 = tpu.matmul %35, %37, %cst_22 {dimension_numbers = #tpu.dot_dimension_numbers<[1], [0], [0], [1], [0, 0, 1, 1], [], []>} : vector<17x32xbf16>, vector<32x96xbf16>, vector<17x96xf32> -> vector<17x96xf32>
    %c0_23 = arith.constant 0 : index
    %c0_24 = arith.constant 0 : index
    %c0_25 = arith.constant 0 : index
    %39 = vector.load %arg8[%c0_23, %c0_24, %c0_25] : memref<1x1x96xf32, #tpu.memory_space<vmem>>, vector<1x1x96xf32>
    %40 = vector.shape_cast %39 : vector<1x1x96xf32> to vector<1x96xf32>
    %41 = vector.broadcast %40 : vector<1x96xf32> to vector<17x96xf32>
    %42 = arith.addf %38, %41 : vector<17x96xf32>
    %43 = arith.truncf %42 : vector<17x96xf32> to vector<17x96xbf16>
    %44 = vector.extract_strided_slice %43 {offsets = [0, 0], sizes = [17, 8], strides = [1, 1]} : vector<17x96xbf16> to vector<17x8xbf16>
    %45 = vector.extract_strided_slice %43 {offsets = [0, 32], sizes = [17, 8], strides = [1, 1]} : vector<17x96xbf16> to vector<17x8xbf16>
    %46 = vector.extract_strided_slice %43 {offsets = [0, 64], sizes = [17, 8], strides = [1, 1]} : vector<17x96xbf16> to vector<17x8xbf16>
    %cst_26 = arith.constant dense<0.000000e+00> : vector<17x17xf32>
    %47 = tpu.matmul %44, %45, %cst_26 {dimension_numbers = #tpu.dot_dimension_numbers<[1], [1], [0], [0], [0, 0, 1, 0], [], []>} : vector<17x8xbf16>, vector<17x8xbf16>, vector<17x17xf32> -> vector<17x17xf32>
    %cst_27 = arith.constant 0.353553385 : f32
    %48 = vector.broadcast %cst_27 : f32 to vector<17x17xf32>
    %49 = arith.mulf %47, %48 : vector<17x17xf32>
    %cst_28 = arith.constant dense<0xFF800000> : vector<17xf32>
    %50 = vector.multi_reduction <maximumf>, %49, %cst_28 [1] : vector<17x17xf32> to vector<17xf32>
    %51 = vector.shape_cast %50 : vector<17xf32> to vector<17x1xf32>
    %52 = vector.broadcast %51 : vector<17x1xf32> to vector<17x17xf32>
    %53 = arith.subf %49, %52 : vector<17x17xf32>
    %54 = math.exp %53 : vector<17x17xf32>
    %cst_29 = arith.constant dense<0.000000e+00> : vector<17xf32>
    %55 = vector.multi_reduction <add>, %54, %cst_29 [1] : vector<17x17xf32> to vector<17xf32>
    %56 = vector.shape_cast %55 : vector<17xf32> to vector<17x1xf32>
    %57 = vector.broadcast %56 : vector<17x1xf32> to vector<17x17xf32>
    %58 = arith.divf %54, %57 : vector<17x17xf32>
    %59 = arith.truncf %58 : vector<17x17xf32> to vector<17x17xbf16>
    %cst_30 = arith.constant dense<0.000000e+00> : vector<17x8xf32>
    %60 = tpu.matmul %59, %46, %cst_30 {dimension_numbers = #tpu.dot_dimension_numbers<[1], [0], [0], [1], [0, 0, 1, 1], [], []>} : vector<17x17xbf16>, vector<17x8xbf16>, vector<17x8xf32> -> vector<17x8xf32>
    %61 = vector.extract_strided_slice %43 {offsets = [0, 8], sizes = [17, 8], strides = [1, 1]} : vector<17x96xbf16> to vector<17x8xbf16>
    %62 = vector.extract_strided_slice %43 {offsets = [0, 40], sizes = [17, 8], strides = [1, 1]} : vector<17x96xbf16> to vector<17x8xbf16>
    %63 = vector.extract_strided_slice %43 {offsets = [0, 72], sizes = [17, 8], strides = [1, 1]} : vector<17x96xbf16> to vector<17x8xbf16>
    %cst_31 = arith.constant dense<0.000000e+00> : vector<17x17xf32>
    %64 = tpu.matmul %61, %62, %cst_31 {dimension_numbers = #tpu.dot_dimension_numbers<[1], [1], [0], [0], [0, 0, 1, 0], [], []>} : vector<17x8xbf16>, vector<17x8xbf16>, vector<17x17xf32> -> vector<17x17xf32>
    %cst_32 = arith.constant 0.353553385 : f32
    %65 = vector.broadcast %cst_32 : f32 to vector<17x17xf32>
    %66 = arith.mulf %64, %65 : vector<17x17xf32>
    %cst_33 = arith.constant dense<0xFF800000> : vector<17xf32>
    %67 = vector.multi_reduction <maximumf>, %66, %cst_33 [1] : vector<17x17xf32> to vector<17xf32>
    %68 = vector.shape_cast %67 : vector<17xf32> to vector<17x1xf32>
    %69 = vector.broadcast %68 : vector<17x1xf32> to vector<17x17xf32>
    %70 = arith.subf %66, %69 : vector<17x17xf32>
    %71 = math.exp %70 : vector<17x17xf32>
    %cst_34 = arith.constant dense<0.000000e+00> : vector<17xf32>
    %72 = vector.multi_reduction <add>, %71, %cst_34 [1] : vector<17x17xf32> to vector<17xf32>
    %73 = vector.shape_cast %72 : vector<17xf32> to vector<17x1xf32>
    %74 = vector.broadcast %73 : vector<17x1xf32> to vector<17x17xf32>
    %75 = arith.divf %71, %74 : vector<17x17xf32>
    %76 = arith.truncf %75 : vector<17x17xf32> to vector<17x17xbf16>
    %cst_35 = arith.constant dense<0.000000e+00> : vector<17x8xf32>
    %77 = tpu.matmul %76, %63, %cst_35 {dimension_numbers = #tpu.dot_dimension_numbers<[1], [0], [0], [1], [0, 0, 1, 1], [], []>} : vector<17x17xbf16>, vector<17x8xbf16>, vector<17x8xf32> -> vector<17x8xf32>
    %78 = vector.extract_strided_slice %43 {offsets = [0, 16], sizes = [17, 8], strides = [1, 1]} : vector<17x96xbf16> to vector<17x8xbf16>
    %79 = vector.extract_strided_slice %43 {offsets = [0, 48], sizes = [17, 8], strides = [1, 1]} : vector<17x96xbf16> to vector<17x8xbf16>
    %80 = vector.extract_strided_slice %43 {offsets = [0, 80], sizes = [17, 8], strides = [1, 1]} : vector<17x96xbf16> to vector<17x8xbf16>
    %cst_36 = arith.constant dense<0.000000e+00> : vector<17x17xf32>
    %81 = tpu.matmul %78, %79, %cst_36 {dimension_numbers = #tpu.dot_dimension_numbers<[1], [1], [0], [0], [0, 0, 1, 0], [], []>} : vector<17x8xbf16>, vector<17x8xbf16>, vector<17x17xf32> -> vector<17x17xf32>
    %cst_37 = arith.constant 0.353553385 : f32
    %82 = vector.broadcast %cst_37 : f32 to vector<17x17xf32>
    %83 = arith.mulf %81, %82 : vector<17x17xf32>
    %cst_38 = arith.constant dense<0xFF800000> : vector<17xf32>
    %84 = vector.multi_reduction <maximumf>, %83, %cst_38 [1] : vector<17x17xf32> to vector<17xf32>
    %85 = vector.shape_cast %84 : vector<17xf32> to vector<17x1xf32>
    %86 = vector.broadcast %85 : vector<17x1xf32> to vector<17x17xf32>
    %87 = arith.subf %83, %86 : vector<17x17xf32>
    %88 = math.exp %87 : vector<17x17xf32>
    %cst_39 = arith.constant dense<0.000000e+00> : vector<17xf32>
    %89 = vector.multi_reduction <add>, %88, %cst_39 [1] : vector<17x17xf32> to vector<17xf32>
    %90 = vector.shape_cast %89 : vector<17xf32> to vector<17x1xf32>
    %91 = vector.broadcast %90 : vector<17x1xf32> to vector<17x17xf32>
    %92 = arith.divf %88, %91 : vector<17x17xf32>
    %93 = arith.truncf %92 : vector<17x17xf32> to vector<17x17xbf16>
    %cst_40 = arith.constant dense<0.000000e+00> : vector<17x8xf32>
    %94 = tpu.matmul %93, %80, %cst_40 {dimension_numbers = #tpu.dot_dimension_numbers<[1], [0], [0], [1], [0, 0, 1, 1], [], []>} : vector<17x17xbf16>, vector<17x8xbf16>, vector<17x8xf32> -> vector<17x8xf32>
    %95 = vector.extract_strided_slice %43 {offsets = [0, 24], sizes = [17, 8], strides = [1, 1]} : vector<17x96xbf16> to vector<17x8xbf16>
    %96 = vector.extract_strided_slice %43 {offsets = [0, 56], sizes = [17, 8], strides = [1, 1]} : vector<17x96xbf16> to vector<17x8xbf16>
    %97 = vector.extract_strided_slice %43 {offsets = [0, 88], sizes = [17, 8], strides = [1, 1]} : vector<17x96xbf16> to vector<17x8xbf16>
    %cst_41 = arith.constant dense<0.000000e+00> : vector<17x17xf32>
    %98 = tpu.matmul %95, %96, %cst_41 {dimension_numbers = #tpu.dot_dimension_numbers<[1], [1], [0], [0], [0, 0, 1, 0], [], []>} : vector<17x8xbf16>, vector<17x8xbf16>, vector<17x17xf32> -> vector<17x17xf32>
    %cst_42 = arith.constant 0.353553385 : f32
    %99 = vector.broadcast %cst_42 : f32 to vector<17x17xf32>
    %100 = arith.mulf %98, %99 : vector<17x17xf32>
    %cst_43 = arith.constant dense<0xFF800000> : vector<17xf32>
    %101 = vector.multi_reduction <maximumf>, %100, %cst_43 [1] : vector<17x17xf32> to vector<17xf32>
    %102 = vector.shape_cast %101 : vector<17xf32> to vector<17x1xf32>
    %103 = vector.broadcast %102 : vector<17x1xf32> to vector<17x17xf32>
    %104 = arith.subf %100, %103 : vector<17x17xf32>
    %105 = math.exp %104 : vector<17x17xf32>
    %cst_44 = arith.constant dense<0.000000e+00> : vector<17xf32>
    %106 = vector.multi_reduction <add>, %105, %cst_44 [1] : vector<17x17xf32> to vector<17xf32>
    %107 = vector.shape_cast %106 : vector<17xf32> to vector<17x1xf32>
    %108 = vector.broadcast %107 : vector<17x1xf32> to vector<17x17xf32>
    %109 = arith.divf %105, %108 : vector<17x17xf32>
    %110 = arith.truncf %109 : vector<17x17xf32> to vector<17x17xbf16>
    %cst_45 = arith.constant dense<0.000000e+00> : vector<17x8xf32>
    %111 = tpu.matmul %110, %97, %cst_45 {dimension_numbers = #tpu.dot_dimension_numbers<[1], [0], [0], [1], [0, 0, 1, 1], [], []>} : vector<17x17xbf16>, vector<17x8xbf16>, vector<17x8xf32> -> vector<17x8xf32>
    %112 = tpu.concatenate %60, %77, %94, %111 in 1 : vector<17x8xf32>, vector<17x8xf32>, vector<17x8xf32>, vector<17x8xf32> -> vector<17x32xf32>
    %113 = arith.truncf %112 : vector<17x32xf32> to vector<17x32xbf16>
    %c0_46 = arith.constant 0 : index
    %c0_47 = arith.constant 0 : index
    %c0_48 = arith.constant 0 : index
    %114 = vector.load %arg9[%c0_46, %c0_47, %c0_48] : memref<1x32x32xbf16, #tpu.memory_space<vmem>>, vector<1x32x32xbf16>
    %115 = vector.shape_cast %114 : vector<1x32x32xbf16> to vector<32x32xbf16>
    %cst_49 = arith.constant dense<0.000000e+00> : vector<17x32xf32>
    %116 = tpu.matmul %113, %115, %cst_49 {dimension_numbers = #tpu.dot_dimension_numbers<[1], [0], [0], [1], [0, 0, 1, 1], [], []>} : vector<17x32xbf16>, vector<32x32xbf16>, vector<17x32xf32> -> vector<17x32xf32>
    %c0_50 = arith.constant 0 : index
    %c0_51 = arith.constant 0 : index
    %c0_52 = arith.constant 0 : index
    %117 = vector.load %arg10[%c0_50, %c0_51, %c0_52] : memref<1x1x32xf32, #tpu.memory_space<vmem>>, vector<1x1x32xf32>
    %118 = vector.shape_cast %117 : vector<1x1x32xf32> to vector<1x32xf32>
    %119 = vector.broadcast %118 : vector<1x32xf32> to vector<17x32xf32>
    %120 = arith.addf %116, %119 : vector<17x32xf32>
    %121 = arith.addf %12, %120 : vector<17x32xf32>
    %cst_53 = arith.constant dense<0.000000e+00> : vector<17xf32>
    %122 = vector.multi_reduction <add>, %121, %cst_53 [1] : vector<17x32xf32> to vector<17xf32>
    %123 = vector.shape_cast %122 : vector<17xf32> to vector<17x1xf32>
    %cst_54 = arith.constant 3.200000e+01 : f32
    %124 = vector.broadcast %cst_54 : f32 to vector<17x1xf32>
    %125 = arith.divf %123, %124 : vector<17x1xf32>
    %126 = vector.broadcast %125 : vector<17x1xf32> to vector<17x32xf32>
    %127 = arith.subf %121, %126 : vector<17x32xf32>
    %128 = arith.mulf %127, %127 : vector<17x32xf32>
    %cst_55 = arith.constant dense<0.000000e+00> : vector<17xf32>
    %129 = vector.multi_reduction <add>, %128, %cst_55 [1] : vector<17x32xf32> to vector<17xf32>
    %130 = vector.shape_cast %129 : vector<17xf32> to vector<17x1xf32>
    %cst_56 = arith.constant 3.200000e+01 : f32
    %131 = vector.broadcast %cst_56 : f32 to vector<17x1xf32>
    %132 = arith.divf %130, %131 : vector<17x1xf32>
    %133 = vector.broadcast %125 : vector<17x1xf32> to vector<17x32xf32>
    %134 = arith.subf %121, %133 : vector<17x32xf32>
    %cst_57 = arith.constant 9.99999996E-13 : f32
    %135 = vector.broadcast %cst_57 : f32 to vector<17x1xf32>
    %136 = arith.addf %132, %135 : vector<17x1xf32>
    %137 = math.rsqrt %136 : vector<17x1xf32>
    %138 = vector.broadcast %137 : vector<17x1xf32> to vector<17x32xf32>
    %139 = arith.mulf %134, %138 : vector<17x32xf32>
    %140 = vector.broadcast %8 : vector<1x32xf32> to vector<17x32xf32>
    %141 = arith.mulf %139, %140 : vector<17x32xf32>
    %142 = vector.broadcast %10 : vector<1x32xf32> to vector<17x32xf32>
    %143 = arith.addf %141, %142 : vector<17x32xf32>
    %144 = arith.truncf %143 : vector<17x32xf32> to vector<17x32xbf16>
    %c0_58 = arith.constant 0 : index
    %c0_59 = arith.constant 0 : index
    %c0_60 = arith.constant 0 : index
    %145 = vector.load %arg13[%c0_58, %c0_59, %c0_60] : memref<1x32x64xbf16, #tpu.memory_space<vmem>>, vector<1x32x64xbf16>
    %146 = vector.shape_cast %145 : vector<1x32x64xbf16> to vector<32x64xbf16>
    %cst_61 = arith.constant dense<0.000000e+00> : vector<17x64xf32>
    %147 = tpu.matmul %144, %146, %cst_61 {dimension_numbers = #tpu.dot_dimension_numbers<[1], [0], [0], [1], [0, 0, 1, 1], [], []>} : vector<17x32xbf16>, vector<32x64xbf16>, vector<17x64xf32> -> vector<17x64xf32>
    %c0_62 = arith.constant 0 : index
    %c0_63 = arith.constant 0 : index
    %c0_64 = arith.constant 0 : index
    %148 = vector.load %arg14[%c0_62, %c0_63, %c0_64] : memref<1x1x64xf32, #tpu.memory_space<vmem>>, vector<1x1x64xf32>
    %149 = vector.shape_cast %148 : vector<1x1x64xf32> to vector<1x64xf32>
    %150 = vector.broadcast %149 : vector<1x64xf32> to vector<17x64xf32>
    %151 = arith.addf %147, %150 : vector<17x64xf32>
    %cst_65 = arith.constant 5.000000e-01 : f32
    %152 = vector.broadcast %cst_65 : f32 to vector<17x64xf32>
    %153 = arith.mulf %152, %151 : vector<17x64xf32>
    %cst_66 = arith.constant 4.471500e-02 : f32
    %154 = vector.broadcast %cst_66 : f32 to vector<17x64xf32>
    %155 = arith.mulf %154, %151 : vector<17x64xf32>
    %156 = arith.mulf %155, %151 : vector<17x64xf32>
    %157 = arith.mulf %156, %151 : vector<17x64xf32>
    %158 = arith.addf %151, %157 : vector<17x64xf32>
    %cst_67 = arith.constant 0.797884583 : f32
    %159 = vector.broadcast %cst_67 : f32 to vector<17x64xf32>
    %160 = arith.mulf %159, %158 : vector<17x64xf32>
    %161 = math.tanh %160 : vector<17x64xf32>
    %cst_68 = arith.constant 1.000000e+00 : f32
    %162 = vector.broadcast %cst_68 : f32 to vector<17x64xf32>
    %163 = arith.addf %162, %161 : vector<17x64xf32>
    %164 = arith.mulf %153, %163 : vector<17x64xf32>
    %165 = arith.truncf %164 : vector<17x64xf32> to vector<17x64xbf16>
    %c0_69 = arith.constant 0 : index
    %c0_70 = arith.constant 0 : index
    %c0_71 = arith.constant 0 : index
    %166 = vector.load %arg15[%c0_69, %c0_70, %c0_71] : memref<1x64x32xbf16, #tpu.memory_space<vmem>>, vector<1x64x32xbf16>
    %167 = vector.shape_cast %166 : vector<1x64x32xbf16> to vector<64x32xbf16>
    %cst_72 = arith.constant dense<0.000000e+00> : vector<17x32xf32>
    %168 = tpu.matmul %165, %167, %cst_72 {dimension_numbers = #tpu.dot_dimension_numbers<[1], [0], [0], [1], [0, 0, 1, 1], [], []>} : vector<17x64xbf16>, vector<64x32xbf16>, vector<17x32xf32> -> vector<17x32xf32>
    %c0_73 = arith.constant 0 : index
    %c0_74 = arith.constant 0 : index
    %c0_75 = arith.constant 0 : index
    %169 = vector.load %arg16[%c0_73, %c0_74, %c0_75] : memref<1x1x32xf32, #tpu.memory_space<vmem>>, vector<1x1x32xf32>
    %170 = vector.shape_cast %169 : vector<1x1x32xf32> to vector<1x32xf32>
    %171 = vector.broadcast %170 : vector<1x32xf32> to vector<17x32xf32>
    %172 = arith.addf %168, %171 : vector<17x32xf32>
    %173 = arith.addf %121, %172 : vector<17x32xf32>
    %c0_76 = arith.constant 0 : index
    %c0_77 = arith.constant 0 : index
    %c0_78 = arith.constant 0 : index
    %174 = vector.load %arg17[%c0_76, %c0_77, %c0_78] : memref<2x17x32xf32, #tpu.memory_space<vmem>>, vector<1x17x32xf32>
    %175 = vector.shape_cast %174 : vector<1x17x32xf32> to vector<17x32xf32>
    %176 = vector.shape_cast %173 : vector<17x32xf32> to vector<1x17x32xf32>
    tpu.vector_store %arg17[%c0_76, %c0_77, %c0_78], %176 {strides = array<i32>} : memref<2x17x32xf32, #tpu.memory_space<vmem>>, vector<1x17x32xf32>,
    %c1 = arith.constant 1 : index
    %c0_79 = arith.constant 0 : index
    %c0_80 = arith.constant 0 : index
    %177 = vector.load %arg17[%c1, %c0_79, %c0_80] : memref<2x17x32xf32, #tpu.memory_space<vmem>>, vector<1x17x32xf32>
    %178 = vector.shape_cast %177 : vector<1x17x32xf32> to vector<17x32xf32>
    %cst_81 = arith.constant dense<0.000000e+00> : vector<17xf32>
    %179 = vector.multi_reduction <add>, %178, %cst_81 [1] : vector<17x32xf32> to vector<17xf32>
    %180 = vector.shape_cast %179 : vector<17xf32> to vector<17x1xf32>
    %cst_82 = arith.constant 3.200000e+01 : f32
    %181 = vector.broadcast %cst_82 : f32 to vector<17x1xf32>
    %182 = arith.divf %180, %181 : vector<17x1xf32>
    %183 = vector.broadcast %182 : vector<17x1xf32> to vector<17x32xf32>
    %184 = arith.subf %178, %183 : vector<17x32xf32>
    %185 = arith.mulf %184, %184 : vector<17x32xf32>
    %cst_83 = arith.constant dense<0.000000e+00> : vector<17xf32>
    %186 = vector.multi_reduction <add>, %185, %cst_83 [1] : vector<17x32xf32> to vector<17xf32>
    %187 = vector.shape_cast %186 : vector<17xf32> to vector<17x1xf32>
    %cst_84 = arith.constant 3.200000e+01 : f32
    %188 = vector.broadcast %cst_84 : f32 to vector<17x1xf32>
    %189 = arith.divf %187, %188 : vector<17x1xf32>
    %190 = vector.broadcast %182 : vector<17x1xf32> to vector<17x32xf32>
    %191 = arith.subf %178, %190 : vector<17x32xf32>
    %cst_85 = arith.constant 9.99999996E-13 : f32
    %192 = vector.broadcast %cst_85 : f32 to vector<17x1xf32>
    %193 = arith.addf %189, %192 : vector<17x1xf32>
    %194 = math.rsqrt %193 : vector<17x1xf32>
    %195 = vector.broadcast %194 : vector<17x1xf32> to vector<17x32xf32>
    %196 = arith.mulf %191, %195 : vector<17x32xf32>
    %197 = vector.broadcast %4 : vector<1x32xf32> to vector<17x32xf32>
    %198 = arith.mulf %196, %197 : vector<17x32xf32>
    %199 = vector.broadcast %6 : vector<1x32xf32> to vector<17x32xf32>
    %200 = arith.addf %198, %199 : vector<17x32xf32>
    %201 = arith.truncf %200 : vector<17x32xf32> to vector<17x32xbf16>
    %c0_86 = arith.constant 0 : index
    %c0_87 = arith.constant 0 : index
    %c0_88 = arith.constant 0 : index
    %202 = vector.load %arg7[%c0_86, %c0_87, %c0_88] : memref<1x32x96xbf16, #tpu.memory_space<vmem>>, vector<1x32x96xbf16>
    %203 = vector.shape_cast %202 : vector<1x32x96xbf16> to vector<32x96xbf16>
    %cst_89 = arith.constant dense<0.000000e+00> : vector<17x96xf32>
    %204 = tpu.matmul %201, %203, %cst_89 {dimension_numbers = #tpu.dot_dimension_numbers<[1], [0], [0], [1], [0, 0, 1, 1], [], []>} : vector<17x32xbf16>, vector<32x96xbf16>, vector<17x96xf32> -> vector<17x96xf32>
    %c0_90 = arith.constant 0 : index
    %c0_91 = arith.constant 0 : index
    %c0_92 = arith.constant 0 : index
    %205 = vector.load %arg8[%c0_90, %c0_91, %c0_92] : memref<1x1x96xf32, #tpu.memory_space<vmem>>, vector<1x1x96xf32>
    %206 = vector.shape_cast %205 : vector<1x1x96xf32> to vector<1x96xf32>
    %207 = vector.broadcast %206 : vector<1x96xf32> to vector<17x96xf32>
    %208 = arith.addf %204, %207 : vector<17x96xf32>
    %209 = arith.truncf %208 : vector<17x96xf32> to vector<17x96xbf16>
    %210 = vector.extract_strided_slice %209 {offsets = [0, 0], sizes = [17, 8], strides = [1, 1]} : vector<17x96xbf16> to vector<17x8xbf16>
    %211 = vector.extract_strided_slice %209 {offsets = [0, 32], sizes = [17, 8], strides = [1, 1]} : vector<17x96xbf16> to vector<17x8xbf16>
    %212 = vector.extract_strided_slice %209 {offsets = [0, 64], sizes = [17, 8], strides = [1, 1]} : vector<17x96xbf16> to vector<17x8xbf16>
    %cst_93 = arith.constant dense<0.000000e+00> : vector<17x17xf32>
    %213 = tpu.matmul %210, %211, %cst_93 {dimension_numbers = #tpu.dot_dimension_numbers<[1], [1], [0], [0], [0, 0, 1, 0], [], []>} : vector<17x8xbf16>, vector<17x8xbf16>, vector<17x17xf32> -> vector<17x17xf32>
    %cst_94 = arith.constant 0.353553385 : f32
    %214 = vector.broadcast %cst_94 : f32 to vector<17x17xf32>
    %215 = arith.mulf %213, %214 : vector<17x17xf32>
    %cst_95 = arith.constant dense<0xFF800000> : vector<17xf32>
    %216 = vector.multi_reduction <maximumf>, %215, %cst_95 [1] : vector<17x17xf32> to vector<17xf32>
    %217 = vector.shape_cast %216 : vector<17xf32> to vector<17x1xf32>
    %218 = vector.broadcast %217 : vector<17x1xf32> to vector<17x17xf32>
    %219 = arith.subf %215, %218 : vector<17x17xf32>
    %220 = math.exp %219 : vector<17x17xf32>
    %cst_96 = arith.constant dense<0.000000e+00> : vector<17xf32>
    %221 = vector.multi_reduction <add>, %220, %cst_96 [1] : vector<17x17xf32> to vector<17xf32>
    %222 = vector.shape_cast %221 : vector<17xf32> to vector<17x1xf32>
    %223 = vector.broadcast %222 : vector<17x1xf32> to vector<17x17xf32>
    %224 = arith.divf %220, %223 : vector<17x17xf32>
    %225 = arith.truncf %224 : vector<17x17xf32> to vector<17x17xbf16>
    %cst_97 = arith.constant dense<0.000000e+00> : vector<17x8xf32>
    %226 = tpu.matmul %225, %212, %cst_97 {dimension_numbers = #tpu.dot_dimension_numbers<[1], [0], [0], [1], [0, 0, 1, 1], [], []>} : vector<17x17xbf16>, vector<17x8xbf16>, vector<17x8xf32> -> vector<17x8xf32>
    %227 = vector.extract_strided_slice %209 {offsets = [0, 8], sizes = [17, 8], strides = [1, 1]} : vector<17x96xbf16> to vector<17x8xbf16>
    %228 = vector.extract_strided_slice %209 {offsets = [0, 40], sizes = [17, 8], strides = [1, 1]} : vector<17x96xbf16> to vector<17x8xbf16>
    %229 = vector.extract_strided_slice %209 {offsets = [0, 72], sizes = [17, 8], strides = [1, 1]} : vector<17x96xbf16> to vector<17x8xbf16>
    %cst_98 = arith.constant dense<0.000000e+00> : vector<17x17xf32>
    %230 = tpu.matmul %227, %228, %cst_98 {dimension_numbers = #tpu.dot_dimension_numbers<[1], [1], [0], [0], [0, 0, 1, 0], [], []>} : vector<17x8xbf16>, vector<17x8xbf16>, vector<17x17xf32> -> vector<17x17xf32>
    %cst_99 = arith.constant 0.353553385 : f32
    %231 = vector.broadcast %cst_99 : f32 to vector<17x17xf32>
    %232 = arith.mulf %230, %231 : vector<17x17xf32>
    %cst_100 = arith.constant dense<0xFF800000> : vector<17xf32>
    %233 = vector.multi_reduction <maximumf>, %232, %cst_100 [1] : vector<17x17xf32> to vector<17xf32>
    %234 = vector.shape_cast %233 : vector<17xf32> to vector<17x1xf32>
    %235 = vector.broadcast %234 : vector<17x1xf32> to vector<17x17xf32>
    %236 = arith.subf %232, %235 : vector<17x17xf32>
    %237 = math.exp %236 : vector<17x17xf32>
    %cst_101 = arith.constant dense<0.000000e+00> : vector<17xf32>
    %238 = vector.multi_reduction <add>, %237, %cst_101 [1] : vector<17x17xf32> to vector<17xf32>
    %239 = vector.shape_cast %238 : vector<17xf32> to vector<17x1xf32>
    %240 = vector.broadcast %239 : vector<17x1xf32> to vector<17x17xf32>
    %241 = arith.divf %237, %240 : vector<17x17xf32>
    %242 = arith.truncf %241 : vector<17x17xf32> to vector<17x17xbf16>
    %cst_102 = arith.constant dense<0.000000e+00> : vector<17x8xf32>
    %243 = tpu.matmul %242, %229, %cst_102 {dimension_numbers = #tpu.dot_dimension_numbers<[1], [0], [0], [1], [0, 0, 1, 1], [], []>} : vector<17x17xbf16>, vector<17x8xbf16>, vector<17x8xf32> -> vector<17x8xf32>
    %244 = vector.extract_strided_slice %209 {offsets = [0, 16], sizes = [17, 8], strides = [1, 1]} : vector<17x96xbf16> to vector<17x8xbf16>
    %245 = vector.extract_strided_slice %209 {offsets = [0, 48], sizes = [17, 8], strides = [1, 1]} : vector<17x96xbf16> to vector<17x8xbf16>
    %246 = vector.extract_strided_slice %209 {offsets = [0, 80], sizes = [17, 8], strides = [1, 1]} : vector<17x96xbf16> to vector<17x8xbf16>
    %cst_103 = arith.constant dense<0.000000e+00> : vector<17x17xf32>
    %247 = tpu.matmul %244, %245, %cst_103 {dimension_numbers = #tpu.dot_dimension_numbers<[1], [1], [0], [0], [0, 0, 1, 0], [], []>} : vector<17x8xbf16>, vector<17x8xbf16>, vector<17x17xf32> -> vector<17x17xf32>
    %cst_104 = arith.constant 0.353553385 : f32
    %248 = vector.broadcast %cst_104 : f32 to vector<17x17xf32>
    %249 = arith.mulf %247, %248 : vector<17x17xf32>
    %cst_105 = arith.constant dense<0xFF800000> : vector<17xf32>
    %250 = vector.multi_reduction <maximumf>, %249, %cst_105 [1] : vector<17x17xf32> to vector<17xf32>
    %251 = vector.shape_cast %250 : vector<17xf32> to vector<17x1xf32>
    %252 = vector.broadcast %251 : vector<17x1xf32> to vector<17x17xf32>
    %253 = arith.subf %249, %252 : vector<17x17xf32>
    %254 = math.exp %253 : vector<17x17xf32>
    %cst_106 = arith.constant dense<0.000000e+00> : vector<17xf32>
    %255 = vector.multi_reduction <add>, %254, %cst_106 [1] : vector<17x17xf32> to vector<17xf32>
    %256 = vector.shape_cast %255 : vector<17xf32> to vector<17x1xf32>
    %257 = vector.broadcast %256 : vector<17x1xf32> to vector<17x17xf32>
    %258 = arith.divf %254, %257 : vector<17x17xf32>
    %259 = arith.truncf %258 : vector<17x17xf32> to vector<17x17xbf16>
    %cst_107 = arith.constant dense<0.000000e+00> : vector<17x8xf32>
    %260 = tpu.matmul %259, %246, %cst_107 {dimension_numbers = #tpu.dot_dimension_numbers<[1], [0], [0], [1], [0, 0, 1, 1], [], []>} : vector<17x17xbf16>, vector<17x8xbf16>, vector<17x8xf32> -> vector<17x8xf32>
    %261 = vector.extract_strided_slice %209 {offsets = [0, 24], sizes = [17, 8], strides = [1, 1]} : vector<17x96xbf16> to vector<17x8xbf16>
    %262 = vector.extract_strided_slice %209 {offsets = [0, 56], sizes = [17, 8], strides = [1, 1]} : vector<17x96xbf16> to vector<17x8xbf16>
    %263 = vector.extract_strided_slice %209 {offsets = [0, 88], sizes = [17, 8], strides = [1, 1]} : vector<17x96xbf16> to vector<17x8xbf16>
    %cst_108 = arith.constant dense<0.000000e+00> : vector<17x17xf32>
    %264 = tpu.matmul %261, %262, %cst_108 {dimension_numbers = #tpu.dot_dimension_numbers<[1], [1], [0], [0], [0, 0, 1, 0], [], []>} : vector<17x8xbf16>, vector<17x8xbf16>, vector<17x17xf32> -> vector<17x17xf32>
    %cst_109 = arith.constant 0.353553385 : f32
    %265 = vector.broadcast %cst_109 : f32 to vector<17x17xf32>
    %266 = arith.mulf %264, %265 : vector<17x17xf32>
    %cst_110 = arith.constant dense<0xFF800000> : vector<17xf32>
    %267 = vector.multi_reduction <maximumf>, %266, %cst_110 [1] : vector<17x17xf32> to vector<17xf32>
    %268 = vector.shape_cast %267 : vector<17xf32> to vector<17x1xf32>
    %269 = vector.broadcast %268 : vector<17x1xf32> to vector<17x17xf32>
    %270 = arith.subf %266, %269 : vector<17x17xf32>
    %271 = math.exp %270 : vector<17x17xf32>
    %cst_111 = arith.constant dense<0.000000e+00> : vector<17xf32>
    %272 = vector.multi_reduction <add>, %271, %cst_111 [1] : vector<17x17xf32> to vector<17xf32>
    %273 = vector.shape_cast %272 : vector<17xf32> to vector<17x1xf32>
    %274 = vector.broadcast %273 : vector<17x1xf32> to vector<17x17xf32>
    %275 = arith.divf %271, %274 : vector<17x17xf32>
    %276 = arith.truncf %275 : vector<17x17xf32> to vector<17x17xbf16>
    %cst_112 = arith.constant dense<0.000000e+00> : vector<17x8xf32>
    %277 = tpu.matmul %276, %263, %cst_112 {dimension_numbers = #tpu.dot_dimension_numbers<[1], [0], [0], [1], [0, 0, 1, 1], [], []>} : vector<17x17xbf16>, vector<17x8xbf16>, vector<17x8xf32> -> vector<17x8xf32>
    %278 = tpu.concatenate %226, %243, %260, %277 in 1 : vector<17x8xf32>, vector<17x8xf32>, vector<17x8xf32>, vector<17x8xf32> -> vector<17x32xf32>
    %279 = arith.truncf %278 : vector<17x32xf32> to vector<17x32xbf16>
    %c0_113 = arith.constant 0 : index
    %c0_114 = arith.constant 0 : index
    %c0_115 = arith.constant 0 : index
    %280 = vector.load %arg9[%c0_113, %c0_114, %c0_115] : memref<1x32x32xbf16, #tpu.memory_space<vmem>>, vector<1x32x32xbf16>
    %281 = vector.shape_cast %280 : vector<1x32x32xbf16> to vector<32x32xbf16>
    %cst_116 = arith.constant dense<0.000000e+00> : vector<17x32xf32>
    %282 = tpu.matmul %279, %281, %cst_116 {dimension_numbers = #tpu.dot_dimension_numbers<[1], [0], [0], [1], [0, 0, 1, 1], [], []>} : vector<17x32xbf16>, vector<32x32xbf16>, vector<17x32xf32> -> vector<17x32xf32>
    %c0_117 = arith.constant 0 : index
    %c0_118 = arith.constant 0 : index
    %c0_119 = arith.constant 0 : index
    %283 = vector.load %arg10[%c0_117, %c0_118, %c0_119] : memref<1x1x32xf32, #tpu.memory_space<vmem>>, vector<1x1x32xf32>
    %284 = vector.shape_cast %283 : vector<1x1x32xf32> to vector<1x32xf32>
    %285 = vector.broadcast %284 : vector<1x32xf32> to vector<17x32xf32>
    %286 = arith.addf %282, %285 : vector<17x32xf32>
    %287 = arith.addf %178, %286 : vector<17x32xf32>
    %cst_120 = arith.constant dense<0.000000e+00> : vector<17xf32>
    %288 = vector.multi_reduction <add>, %287, %cst_120 [1] : vector<17x32xf32> to vector<17xf32>
    %289 = vector.shape_cast %288 : vector<17xf32> to vector<17x1xf32>
    %cst_121 = arith.constant 3.200000e+01 : f32
    %290 = vector.broadcast %cst_121 : f32 to vector<17x1xf32>
    %291 = arith.divf %289, %290 : vector<17x1xf32>
    %292 = vector.broadcast %291 : vector<17x1xf32> to vector<17x32xf32>
    %293 = arith.subf %287, %292 : vector<17x32xf32>
    %294 = arith.mulf %293, %293 : vector<17x32xf32>
    %cst_122 = arith.constant dense<0.000000e+00> : vector<17xf32>
    %295 = vector.multi_reduction <add>, %294, %cst_122 [1] : vector<17x32xf32> to vector<17xf32>
    %296 = vector.shape_cast %295 : vector<17xf32> to vector<17x1xf32>
    %cst_123 = arith.constant 3.200000e+01 : f32
    %297 = vector.broadcast %cst_123 : f32 to vector<17x1xf32>
    %298 = arith.divf %296, %297 : vector<17x1xf32>
    %299 = vector.broadcast %291 : vector<17x1xf32> to vector<17x32xf32>
    %300 = arith.subf %287, %299 : vector<17x32xf32>
    %cst_124 = arith.constant 9.99999996E-13 : f32
    %301 = vector.broadcast %cst_124 : f32 to vector<17x1xf32>
    %302 = arith.addf %298, %301 : vector<17x1xf32>
    %303 = math.rsqrt %302 : vector<17x1xf32>
    %304 = vector.broadcast %303 : vector<17x1xf32> to vector<17x32xf32>
    %305 = arith.mulf %300, %304 : vector<17x32xf32>
    %306 = vector.broadcast %8 : vector<1x32xf32> to vector<17x32xf32>
    %307 = arith.mulf %305, %306 : vector<17x32xf32>
    %308 = vector.broadcast %10 : vector<1x32xf32> to vector<17x32xf32>
    %309 = arith.addf %307, %308 : vector<17x32xf32>
    %310 = arith.truncf %309 : vector<17x32xf32> to vector<17x32xbf16>
    %c0_125 = arith.constant 0 : index
    %c0_126 = arith.constant 0 : index
    %c0_127 = arith.constant 0 : index
    %311 = vector.load %arg13[%c0_125, %c0_126, %c0_127] : memref<1x32x64xbf16, #tpu.memory_space<vmem>>, vector<1x32x64xbf16>
    %312 = vector.shape_cast %311 : vector<1x32x64xbf16> to vector<32x64xbf16>
    %cst_128 = arith.constant dense<0.000000e+00> : vector<17x64xf32>
    %313 = tpu.matmul %310, %312, %cst_128 {dimension_numbers = #tpu.dot_dimension_numbers<[1], [0], [0], [1], [0, 0, 1, 1], [], []>} : vector<17x32xbf16>, vector<32x64xbf16>, vector<17x64xf32> -> vector<17x64xf32>
    %c0_129 = arith.constant 0 : index
    %c0_130 = arith.constant 0 : index
    %c0_131 = arith.constant 0 : index
    %314 = vector.load %arg14[%c0_129, %c0_130, %c0_131] : memref<1x1x64xf32, #tpu.memory_space<vmem>>, vector<1x1x64xf32>
    %315 = vector.shape_cast %314 : vector<1x1x64xf32> to vector<1x64xf32>
    %316 = vector.broadcast %315 : vector<1x64xf32> to vector<17x64xf32>
    %317 = arith.addf %313, %316 : vector<17x64xf32>
    %cst_132 = arith.constant 5.000000e-01 : f32
    %318 = vector.broadcast %cst_132 : f32 to vector<17x64xf32>
    %319 = arith.mulf %318, %317 : vector<17x64xf32>
    %cst_133 = arith.constant 4.471500e-02 : f32
    %320 = vector.broadcast %cst_133 : f32 to vector<17x64xf32>
    %321 = arith.mulf %320, %317 : vector<17x64xf32>
    %322 = arith.mulf %321, %317 : vector<17x64xf32>
    %323 = arith.mulf %322, %317 : vector<17x64xf32>
    %324 = arith.addf %317, %323 : vector<17x64xf32>
    %cst_134 = arith.constant 0.797884583 : f32
    %325 = vector.broadcast %cst_134 : f32 to vector<17x64xf32>
    %326 = arith.mulf %325, %324 : vector<17x64xf32>
    %327 = math.tanh %326 : vector<17x64xf32>
    %cst_135 = arith.constant 1.000000e+00 : f32
    %328 = vector.broadcast %cst_135 : f32 to vector<17x64xf32>
    %329 = arith.addf %328, %327 : vector<17x64xf32>
    %330 = arith.mulf %319, %329 : vector<17x64xf32>
    %331 = arith.truncf %330 : vector<17x64xf32> to vector<17x64xbf16>
    %c0_136 = arith.constant 0 : index
    %c0_137 = arith.constant 0 : index
    %c0_138 = arith.constant 0 : index
    %332 = vector.load %arg15[%c0_136, %c0_137, %c0_138] : memref<1x64x32xbf16, #tpu.memory_space<vmem>>, vector<1x64x32xbf16>
    %333 = vector.shape_cast %332 : vector<1x64x32xbf16> to vector<64x32xbf16>
    %cst_139 = arith.constant dense<0.000000e+00> : vector<17x32xf32>
    %334 = tpu.matmul %331, %333, %cst_139 {dimension_numbers = #tpu.dot_dimension_numbers<[1], [0], [0], [1], [0, 0, 1, 1], [], []>} : vector<17x64xbf16>, vector<64x32xbf16>, vector<17x32xf32> -> vector<17x32xf32>
    %c0_140 = arith.constant 0 : index
    %c0_141 = arith.constant 0 : index
    %c0_142 = arith.constant 0 : index
    %335 = vector.load %arg16[%c0_140, %c0_141, %c0_142] : memref<1x1x32xf32, #tpu.memory_space<vmem>>, vector<1x1x32xf32>
    %336 = vector.shape_cast %335 : vector<1x1x32xf32> to vector<1x32xf32>
    %337 = vector.broadcast %336 : vector<1x32xf32> to vector<17x32xf32>
    %338 = arith.addf %334, %337 : vector<17x32xf32>
    %339 = arith.addf %287, %338 : vector<17x32xf32>
    %c1_143 = arith.constant 1 : index
    %c0_144 = arith.constant 0 : index
    %c0_145 = arith.constant 0 : index
    %340 = vector.load %arg17[%c1_143, %c0_144, %c0_145] : memref<2x17x32xf32, #tpu.memory_space<vmem>>, vector<1x17x32xf32>
    %341 = vector.shape_cast %340 : vector<1x17x32xf32> to vector<17x32xf32>
    %342 = vector.shape_cast %339 : vector<17x32xf32> to vector<1x17x32xf32>
    tpu.vector_store %arg17[%c1_143, %c0_144, %c0_145], %342 {strides = array<i32>} : memref<2x17x32xf32, #tpu.memory_space<vmem>>, vector<1x17x32xf32>,
    return
  }
  func.func @transform_0(%arg0: i32, %arg1: i32) -> (i32, i32, i32) {
    %c0_i32 = arith.constant 0 : i32
    %c0_i32_0 = arith.constant 0 : i32
    %c0_i32_1 = arith.constant 0 : i32
    return %arg0, %c0_i32, %c0_i32_0 : i32, i32, i32
  }
  func.func @transform_1(%arg0: i32, %arg1: i32) -> (i32, i32) {
    %c0_i32 = arith.constant 0 : i32
    %c0_i32_0 = arith.constant 0 : i32
    %c0_i32_1 = arith.constant 0 : i32
    return %c0_i32, %c0_i32_0 : i32, i32
  }
  func.func @transform_2(%arg0: i32, %arg1: i32) -> (i32, i32) {
    %c0_i32 = arith.constant 0 : i32
    %c0_i32_0 = arith.constant 0 : i32
    %c0_i32_1 = arith.constant 0 : i32
    return %c0_i32, %c0_i32_0 : i32, i32
  }
  func.func @transform_3(%arg0: i32, %arg1: i32) -> (i32, i32, i32) {
    %c0_i32 = arith.constant 0 : i32
    %c0_i32_0 = arith.constant 0 : i32
    %c0_i32_1 = arith.constant 0 : i32
    return %arg1, %c0_i32, %c0_i32_0 : i32, i32, i32
  }
  func.func @transform_4(%arg0: i32, %arg1: i32) -> (i32, i32, i32) {
    %c0_i32 = arith.constant 0 : i32
    %c0_i32_0 = arith.constant 0 : i32
    %c0_i32_1 = arith.constant 0 : i32
    return %arg1, %c0_i32, %c0_i32_0 : i32, i32, i32
  }
  func.func @transform_5(%arg0: i32, %arg1: i32) -> (i32, i32, i32) {
    %c0_i32 = arith.constant 0 : i32
    %c0_i32_0 = arith.constant 0 : i32
    %c0_i32_1 = arith.constant 0 : i32
    return %arg1, %c0_i32, %c0_i32_0 : i32, i32, i32
  }
  func.func @transform_6(%arg0: i32, %arg1: i32) -> (i32, i32, i32) {
    %c0_i32 = arith.constant 0 : i32
    %c0_i32_0 = arith.constant 0 : i32
    %c0_i32_1 = arith.constant 0 : i32
    return %arg1, %c0_i32, %c0_i32_0 : i32, i32, i32
  }
  func.func @transform_7(%arg0: i32, %arg1: i32) -> (i32, i32, i32) {
    %c0_i32 = arith.constant 0 : i32
    %c0_i32_0 = arith.constant 0 : i32
    %c0_i32_1 = arith.constant 0 : i32
    return %arg1, %c0_i32, %c0_i32_0 : i32, i32, i32
  }
  func.func @transform_8(%arg0: i32, %arg1: i32) -> (i32, i32, i32) {
    %c0_i32 = arith.constant 0 : i32
    %c0_i32_0 = arith.constant 0 : i32
    %c0_i32_1 = arith.constant 0 : i32
    return %arg1, %c0_i32, %c0_i32_0 : i32, i32, i32
  }
  func.func @transform_9(%arg0: i32, %arg1: i32) -> (i32, i32, i32) {
    %c0_i32 = arith.constant 0 : i32
    %c0_i32_0 = arith.constant 0 : i32
    %c0_i32_1 = arith.constant 0 : i32
    return %arg1, %c0_i32, %c0_i32_0 : i32, i32, i32
  }
  func.func @transform_10(%arg0: i32, %arg1: i32) -> (i32, i32, i32) {
    %c0_i32 = arith.constant 0 : i32
    %c0_i32_0 = arith.constant 0 : i32
    %c0_i32_1 = arith.constant 0 : i32
    return %arg1, %c0_i32, %c0_i32_0 : i32, i32, i32
  }
  func.func @transform_11(%arg0: i32, %arg1: i32) -> (i32, i32, i32) {
    %c0_i32 = arith.constant 0 : i32
    %c0_i32_0 = arith.constant 0 : i32
    %c0_i32_1 = arith.constant 0 : i32
    return %arg1, %c0_i32, %c0_i32_0 : i32, i32, i32
  }
  func.func @transform_12(%arg0: i32, %arg1: i32) -> (i32, i32, i32) {
    %c0_i32 = arith.constant 0 : i32
    %c0_i32_0 = arith.constant 0 : i32
    %c0_i32_1 = arith.constant 0 : i32
    return %arg1, %c0_i32, %c0_i32_0 : i32, i32, i32
  }
  func.func @transform_13(%arg0: i32, %arg1: i32) -> (i32, i32, i32) {
    %c0_i32 = arith.constant 0 : i32
    %c0_i32_0 = arith.constant 0 : i32
    %c0_i32_1 = arith.constant 0 : i32
    return %arg1, %c0_i32, %c0_i32_0 : i32, i32, i32
  }
  func.func @transform_14(%arg0: i32, %arg1: i32) -> (i32, i32, i32) {
    %c0_i32 = arith.constant 0 : i32
    %c0_i32_0 = arith.constant 0 : i32
    %c0_i32_1 = arith.constant 0 : i32
    return %arg1, %c0_i32, %c0_i32_0 : i32, i32, i32
  }
  func.func @transform_15(%arg0: i32, %arg1: i32) -> (i32, i32, i32) {
    %c0_i32 = arith.constant 0 : i32
    %c0_i32_0 = arith.constant 0 : i32
    %c0_i32_1 = arith.constant 0 : i32
    return %arg0, %c0_i32, %c0_i32_0 : i32, i32, i32
  }
}

</mosaic_0001>

<bundles_post_ra>
// kernel: fwd.5
= control target key start
LH: loop header
LB: loop body
LE: loop exit
PB: predicated region body
PF: predicated region fallthrough
CT: control target
= control target key end

     0   :  { %vm25_vm0 = vcmask 257024   ;;  %s219_s0 = inlined_call_operand.vmem [shape: f32[4,32], index: 0, kind: input, shape index: {}]   ;;  %s220_s1 = inlined_call_operand.vmem [shape: f32[1,32], index: 1, kind: input, shape index: {}]   ;;  %s221_s2 = inlined_call_operand.vmem [shape: f32[1,32], index: 2, kind: input, shape index: {}]   ;;  %s222_s3 = inlined_call_operand.vmem [shape: bf16[32,128], index: 3, kind: input, shape index: {}]   ;;  %s223_s4 = inlined_call_operand.vmem [shape: f32[1,128], index: 4, kind: input, shape index: {}]   ;;  %s224_s5 = inlined_call_operand.hbm [shape: f32[4,128], index: 5, kind: output, shape index: {}]  }
   0x1   :  { %v22_v0 = vld [vmem:[%s219_s0] sm:$0xf] }
   0x2   :  { %v26_v1 = vsel %vm25_vm0, %v22_v0, 0.0 }
   0x3   :  { %27 = vadd.xlane.f32.xlu0 %v26_v1 }
   0x4   :  { %10 = vsyncpa [#allocation3], 0  ;;  %v164_v2 = vmov 32.0   ;;  %v128_v14 = vld [vmem:[%s222_s3 + $0x8] sm:$0xff]  ;;  %v127_v15 = vld [vmem:[%s222_s3] sm:$0xff]  ;;  %vm84_vm5 = vcmask 261120  }
   0x5   :  { %134 = vrcp.f32 %v164_v2  ;;  %94 = vmatpush.bf16.msra.mxu0 %v128_v14  ;;  %v131_v25 = vld [vmem:[%s220_s1] ss:$0 sm:$0xff]  ;;  %s165_s28 = smov [#allocation2]   ;;  %s109_s1 = sshll.u32 %s224_s5, 4  ;;  %s110_s1 = int_to_ptr.hbm [resolvable:$true] %s109_s1 }
   0x6   :  { %v132_v28 = vld [vmem:[%s221_s2] ss:$0 sm:$0xff]  ;;  %s107_s29 = sshll.u32 %s165_s28, 4  ;;  %s108_s29 = int_to_ptr.vmem [resolvable:$true] %s107_s29 }
   0x7   :  { %v133_v32 = vld [vmem:[%s223_s4] ss:$0 sm:$0xff] }
   0x9   :  { %95 = vmatpush.bf16.msra.mxu0 %v127_v15 }
   0xb   :  { %v135_v3 = vpop.eup %134 }
   0xc   :  { %v30_v4 = vmul.f32 32.0, %v135_v3  ;;  %vm34_vm1 = vweird.f32 %v135_v3 }
   0xe   :  { %v31_v5 = vsub.f32 1.0, %v30_v4 }
  0x10   :  { %v32_v6 = vmul.f32 %v135_v3, %v31_v5 }
  0x12   :  { %v33_v7 = vadd.f32 %v135_v3, %v32_v6 }
  0x14   :  { %v35_v8 = vsel %vm34_vm1, %v135_v3, %v33_v7 }
  0x76   :  { %v28_v9 = vpop.xlane.xlu0 %27 }
  0x77   :  { %v36_v10 = vmul.f32 %v35_v8, %v28_v9 }
  0x79   :  { %v37_v11 = vsub.f32 %v22_v0, %v36_v10 }
  0x7b   :  { %v38_v12 = vmul.f32 %v37_v11, %v37_v11 }
  0x7d   :  { %v39_v13 = vsel %vm25_vm0, %v38_v12, 0.0 }
  0x7e   :  { %40 = vadd.xlane.f32.xlu0 %v39_v13 }
  0xf1   :  { %v41_v16 = vpop.xlane.xlu0 %40 }
  0xf2   :  { %v42_v17 = vmul.f32 %v41_v16, %v35_v8 }
  0xf4   :  { %v43_v18 = vadd.f32 1e-12, %v42_v17 }
  0xf6   :  { %136 = vrsqrt.f32 %v43_v18  ;;  %vm50_vm3 = vweird.f32 %v43_v18 }
  0xfc   :  { %v137_v19 = vpop.eup %136 }
  0xfd   :  { %v45_v20 = vmul.f32 %v137_v19, %v43_v18  ;;  %vm51_vm2 = vweird.f32 %v137_v19 }
  0xfe   :  { %vm52_vm4 = vmor %vm50_vm3, %vm51_vm2 }
  0xff   :  { %v46_v21 = vmul.f32 %v137_v19, %v45_v20 }
 0x101   :  { %v47_v22 = vmul.f32 0.5, %v46_v21 }
 0x103   :  { %v48_v23 = vsub.f32 1.5, %v47_v22 }
 0x105   :  { %v49_v24 = vmul.f32 %v137_v19, %v48_v23 }
 0x107   :  { %v53_v26 = vsel %vm52_vm4, %v137_v19, %v49_v24 }
 0x108   :  { %v54_v27 = vmul.f32 %v53_v26, %v37_v11 }
 0x10a   :  { %v58_v29 = vmul.f32 %v131_v25, %v54_v27 }
 0x10c   :  { %v62_v30 = vadd.f32 %v132_v28, %v58_v29 }
 0x10e   :  { %v63_v31 = vpack.c.bf16 %v62_v30, %v62_v30 }
 0x110   :  { %126 = vmatmul.msk.bf16.vlgmr.msra.gmra.mxu0 %vm84_vm5, %v63_v31 }
 0x18d   :  { %v97_v33 = vpop.f32.mrf.mxu0 }
 0x18e   :  { %v98_v34 = vadd.f32 %v133_v32, %v97_v33 }
 0x190   :  { %101 = vst [vmem:[#allocation2] sm:$0xf] %v98_v34 }
 0x191   :  { %112 = dma.vmem_to_hbm [thread:$0]  %s108_s29, 64, %s110_s1, [#allocation3]  }
 0x195   :  { %v99_v35 = vpop.f32.mrf.mxu0 }
 0x196   :  { %162 = dma.done.wait [#allocation3], 64  }
 0x197   :  { %163 = vsyncadd [#allocation3], 4294967232 }
 0x198   :  { %117 = vsyncpa [#allocation3], 1 }

// kernel: fwd.3
= control target key start
LH: loop header
LB: loop body
LE: loop exit
PB: predicated region body
PF: predicated region fallthrough
CT: control target
= control target key end

     0   :  { %vm63_vm0 = vcmask 523264   ;;  %vm105_vm1 = vcmask 261120   ;;  %s246_s1 = inlined_call_operand.vmem [shape: bf16[64,32], index: 1, kind: input, shape index: {}]   ;;  %s247_s2 = inlined_call_operand.vmem [shape: f32[1,32], index: 2, kind: input, shape index: {}]   ;;  %s248_s0 = inlined_call_operand.vmem [shape: f32[64,64], index: 0, kind: input, shape index: {}]   ;;  %s249_s3 = inlined_call_operand.vmem [shape: f32[64,32], index: 3, kind: output, shape index: {}]  }
   0x1   :  { %v141_v0 = vld [vmem:[%s246_s1 + $0x18] sm:$0xff]  ;;  %v140_v1 = vld [vmem:[%s246_s1 + $0x10] sm:$0xff]  ;;  %v139_v2 = vld [vmem:[%s246_s1 + $0x8] sm:$0xff] }
   0x2   :  { %80 = vmatpush.bf16.msra.mxu0 %v141_v0  ;;  %142 = vmatpush.bf16.msra.mxu1 %v141_v0  ;;  %v138_v3 = vld [vmem:[%s246_s1] sm:$0xff]  ;;  %v16_v5 = vld [vmem:[%s248_s0 + $0x8] sm:$0xff]  ;;  %v17_v6 = vld [vmem:[%s248_s0 + $0x10] sm:$0xff] }
   0x3   :  { %143 = vmatpush.bf16.msra.mxu2 %v141_v0  ;;  %144 = vmatpush.bf16.msra.mxu3 %v141_v0  ;;  %v15_v4 = vld [vmem:[%s248_s0] sm:$0xff]  ;;  %v18_v7 = vld [vmem:[%s248_s0 + $0x18] sm:$0xff]  ;;  %v20_v9 = vld [vmem:[%s248_s0 + $0x28] sm:$0xff] }
   0x4   :  { %v19_v8 = vld [vmem:[%s248_s0 + $0x20] sm:$0xff]  ;;  %v21_v10 = vld [vmem:[%s248_s0 + $0x30] sm:$0xff]  ;;  %v22_v11 = vld [vmem:[%s248_s0 + $0x38] sm:$0xff]  ;;  %v23_v12 = vpack.c.bf16 %v16_v5, %v15_v4  ;;  %v24_v13 = vpack.c.bf16 %v18_v7, %v17_v6 }
   0x5   :  { %v25_v14 = vpack.c.bf16 %v20_v9, %v19_v8  ;;  %v26_v15 = vpack.c.bf16 %v22_v11, %v21_v10  ;;  %v154_v16 = vld [vmem:[%s247_s2] ss:$0 sm:$0xff] }
   0x6   :  { %81 = vmatpush.bf16.msra.mxu0 %v140_v1  ;;  %145 = vmatpush.bf16.msra.mxu1 %v140_v1 }
   0x7   :  { %146 = vmatpush.bf16.msra.mxu2 %v140_v1  ;;  %147 = vmatpush.bf16.msra.mxu3 %v140_v1 }
   0xa   :  { %82 = vmatpush.bf16.msra.mxu0 %v139_v2  ;;  %148 = vmatpush.bf16.msra.mxu1 %v139_v2 }
   0xb   :  { %149 = vmatpush.bf16.msra.mxu2 %v139_v2  ;;  %150 = vmatpush.bf16.msra.mxu3 %v139_v2 }
   0xe   :  { %83 = vmatpush.bf16.msra.mxu0 %v138_v3  ;;  %151 = vmatpush.bf16.msra.mxu1 %v138_v3 }
   0xf   :  { %152 = vmatpush.bf16.msra.mxu2 %v138_v3  ;;  %153 = vmatpush.bf16.msra.mxu3 %v138_v3 }
  0x11   :  { %134 = vmatmul.msk.bf16.vlgmr.msra.gmra.mxu0 %vm63_vm0, %v23_v12  ;;  %135 = vmatmul.msk.bf16.vlgmr.msra.gmra.mxu1 %vm63_vm0, %v24_v13 }
  0x12   :  { %136 = vmatmul.msk.bf16.vlgmr.msra.gmra.mxu2 %vm63_vm0, %v25_v14  ;;  %137 = vmatmul.msk.bf16.vlgmr.msra.gmra.mxu3 %vm63_vm0, %v26_v15 }
  0x8e   :  { %v85_v17 = vpop.f32.mrf.mxu0  ;;  %v90_v18 = vpop.f32.mrf.mxu1 }
  0x8f   :  { %v86_v19 = vadd.f32 %v154_v16, %v85_v17  ;;  %v91_v20 = vadd.f32 %v154_v16, %v90_v18 }
  0x91   :  { %106 = vst.msk [vmem:[%s249_s3] sm:$0xff] %vm105_vm1, %v86_v19 }
  0x92   :  { %108 = vst.msk [vmem:[%s249_s3 + $0x10] sm:$0xff] %vm105_vm1, %v91_v20 }
  0x95   :  { %v95_v21 = vpop.f32.mrf.mxu2  ;;  %v100_v22 = vpop.f32.mrf.mxu3 }
  0x96   :  { %v96_v23 = vadd.f32 %v154_v16, %v95_v21  ;;  %v101_v24 = vadd.f32 %v154_v16, %v100_v22  ;;  %v87_v25 = vpop.f32.mrf.mxu0  ;;  %v92_v26 = vpop.f32.mrf.mxu1 }
  0x97   :  { %v88_v27 = vadd.f32 %v154_v16, %v87_v25  ;;  %v93_v28 = vadd.f32 %v154_v16, %v92_v26 }
  0x98   :  { %110 = vst.msk [vmem:[%s249_s3 + $0x20] sm:$0xff] %vm105_vm1, %v96_v23 }
  0x99   :  { %112 = vst.msk [vmem:[%s249_s3 + $0x30] sm:$0xff] %vm105_vm1, %v101_v24 }
  0x9a   :  { %107 = vst.msk [vmem:[%s249_s3 + $0x8] sm:$0xff] %vm105_vm1, %v88_v27 }
  0x9b   :  { %109 = vst.msk [vmem:[%s249_s3 + $0x18] sm:$0xff] %vm105_vm1, %v93_v28 }
  0x9d   :  { %v97_v29 = vpop.f32.mrf.mxu2  ;;  %v102_v30 = vpop.f32.mrf.mxu3 }
  0x9e   :  { %v98_v31 = vadd.f32 %v154_v16, %v97_v29  ;;  %v103_v32 = vadd.f32 %v154_v16, %v102_v30 }
  0xa0   :  { %111 = vst.msk [vmem:[%s249_s3 + $0x28] sm:$0xff] %vm105_vm1, %v98_v31 }
  0xa1   :  { %113 = vst.msk [vmem:[%s249_s3 + $0x38] sm:$0xff] %vm105_vm1, %v103_v32 }

// kernel: fwd.4
= control target key start
LH: loop header
LB: loop body
LE: loop exit
PB: predicated region body
PF: predicated region fallthrough
CT: control target
= control target key end

     0   :  { %s3561_s18 = smov 0   ;;  %s3563_s19 = smov 0   ;;  %s4343_s0 = inlined_call_operand.vmem [shape: f32[4,16,32], index: 0, kind: input, shape index: {}]   ;;  %s4344_s1 = inlined_call_operand.vmem [shape: f32[1,32], index: 1, kind: input, shape index: {}]   ;;  %s4345_s2 = inlined_call_operand.vmem [shape: f32[16,32], index: 2, kind: input, shape index: {}]   ;;  %s4346_s3 = inlined_call_operand.vmem [shape: f32[2,1,32], index: 3, kind: input, shape index: {}]   ;;  %s4347_s4 = inlined_call_operand.vmem [shape: f32[2,1,32], index: 4, kind: input, shape index: {}]   ;;  %s4348_s5 = inlined_call_operand.vmem [shape: bf16[2,32,96], index: 5, kind: input, shape index: {}]   ;;  %s4349_s6 = inlined_call_operand.vmem [shape: f32[2,1,96], index: 6, kind: input, shape index: {}]   ;;  %s4350_s7 = inlined_call_operand.vmem [shape: bf16[2,32,32], index: 7, kind: input, shape index: {}]   ;;  %s4351_s8 = inlined_call_operand.vmem [shape: f32[2,1,32], index: 8, kind: input, shape index: {}]   ;;  %s4352_s9 = inlined_call_operand.vmem [shape: f32[2,1,32], index: 9, kind: input, shape index: {}]   ;;  %s4353_s10 = inlined_call_operand.vmem [shape: f32[2,1,32], index: 10, kind: input, shape index: {}]   ;;  %s4354_s11 = inlined_call_operand.vmem [shape: bf16[2,32,64], index: 11, kind: input, shape index: {}]   ;;  %s4355_s12 = inlined_call_operand.vmem [shape: f32[2,1,64], index: 12, kind: input, shape index: {}]   ;;  %s4356_s13 = inlined_call_operand.vmem [shape: bf16[2,64,32], index: 13, kind: input, shape index: {}]   ;;  %s4357_s14 = inlined_call_operand.vmem [shape: f32[2,1,32], index: 14, kind: input, shape index: {}]   ;;  %s4358_s15 = inlined_call_operand.vmem [shape: f32[4,17,32], index: 15, kind: output, shape index: {}]  }
   0x1   :  { %4371 = sst [smem:[#allocation9_spill]] %s4343_s0  ;;  %s3565_s20 = smov 0  }
   0x2   :  { %4372 = sst [smem:[#allocation10_spill]] %s4344_s1  ;;  %s3567_s21 = smov 0  }
   0x3   :  { %4373 = sst [smem:[#allocation11_spill]] %s4345_s2  ;;  %s3569_s22 = smov 0  }
   0x4   :  { %4374 = sst [smem:[#allocation12_spill]] %s4346_s3 }
   0x5   :  { %4375 = sst [smem:[#allocation13_spill]] %s4347_s4 }
   0x6   :  { %4376 = sst [smem:[#allocation14_spill]] %s4348_s5 }
   0x7   :  { %4377 = sst [smem:[#allocation15_spill]] %s4349_s6 }
   0x8   :  { %4378 = sst [smem:[#allocation16_spill]] %s4350_s7 }
   0x9   :  { %4379 = sst [smem:[#allocation17_spill]] %s4351_s8 }
   0xa   :  { %4380 = sst [smem:[#allocation18_spill]] %s4352_s9 }
   0xb LB: > { %4381 = sst [smem:[#allocation2_spill]] %s3447_s18  ;;  %s34_s23 = sadd.s32 1, %s3455_s20  ;;  %s3463_s22 = sphi %s3569_s22, %s25_s22   ;;  %s3459_s21 = sphi %s3567_s21, %s4417_s21   ;;  %s3455_s20 = sphi %s3565_s20, %s4416_s20   ;;  %s3451_s19 = sphi %s3563_s19, %s4415_s19   ;;  %s3447_s18 = sphi %s3561_s18, %s4414_s18  }
   0xc   : > { %4382 = sst [smem:[#allocation3_spill]] %s3455_s20  ;;  %s37_s24 = sadd.s32 1, %s3459_s21 }
   0xd   : > { %4383 = sst [smem:[#allocation4_spill]] %s3459_s21  ;;  %p35_p0 = scmp.ge.s32.totalorder %s34_s23, 2 }
   0xe   : > { %4384 = sst [smem:[#allocation5_spill]] %s3463_s22  ;;  %p3006_p1 = scmp.ge.s32.totalorder %s3463_s22, 1 }
   0xf   : > { %p555_p2 = scmp.lt.s32.totalorder %s3463_s22, 5  ;;  %s4419_s23 = smov (%p35_p0, %s34_s23), 0 }
  0x10   : > { %4385 = sst [smem:[#allocation6_spill]] %s4419_s23  ;;  %s4421_s24 = smov (!%p35_p0, %s37_s24), %s3459_s21 }
  0x11   : > { %p556_p3 = pnand %p3006_p1, %p555_p2  ;;  %p39_p4 = scmp.ge.s32.totalorder %s4421_s24, 2 }
  0x13   : > { %s4423_s24 = smov (%p39_p4, %s4421_s24), 0  ;;  %559 = sbr.rel (%p556_p3) target bundleno = 4608 (0x1200), region = 80 }
  0x14   : > { %4386 = sst [smem:[#allocation7_spill]] %s4423_s24 }
  0x18   : > { %s3007_s25 = sshll.u32 %s3451_s19, 1  ;;  %p656_p5 = scmp.lt.s32.totalorder %s3447_s18, 1 }
  0x19   : > { %p650_p6 = scmp.lt.s32.totalorder %s3007_s25, 3  ;;  %s4387_s3 = sld [smem:[#allocation12_spill]] }
  0x1a   : > { %s657_s26 = scalar_select %p656_p5, %s3447_s18, 1 }
  0x1b   : > { %s4425_s25 = smov (!%p650_p6, %s3007_s25), 3  ;;  %s4388_s4 = sld [smem:[#allocation13_spill]] }
  0x1c   : > { %s3157_s23 = sshll.u32 %s4425_s25, 4  ;;  %s3158_s24 = sshll.u32 %s657_s26, 4 }
  0x1d   : > { %s4390_s0 = sld [smem:[#allocation9_spill]]  ;;  %s3636_s18 = scalar_lea.vmem %s4353_s10, %s657_s26 }
  0x1e   : > { %s4391_s5 = sld [smem:[#allocation14_spill]]  ;;  %s3656_s22 = scalar_lea.vmem %s4357_s14, %s657_s26 }
  0x1f   : > { %s3598_s29 = scalar_lea.vmem %s4387_s3, %s657_s26  ;;  %s4392_s6 = sld [smem:[#allocation15_spill]] }
  0x20   : > { %s4393_s7 = sld [smem:[#allocation16_spill]]  ;;  %s3641_s3 = scalar_lea.vmem %s4354_s11, %s3158_s24 }
  0x21   : > { %s3603_s17 = scalar_lea.vmem %s4388_s4, %s657_s26  ;;  %s4394_s8 = sld [smem:[#allocation17_spill]] }
  0x22   : > { %4389 = sst [smem:[#allocation8_spill]] %s3603_s17  ;;  %s3646_s4 = scalar_lea.vmem %s4355_s12, %s657_s26 }
  0x23   : > { %s654_s20 = scalar_lea.vmem %s4390_s0, %s3157_s23  ;;  %s4395_s9 = sld [smem:[#allocation18_spill]] }
  0x24   : > { %s3611_s2 = scalar_lea.vmem %s4391_s5, %s3158_s24  ;;  %s3161_s17 = sshll.u32 %s657_s26, 5 }
  0x25   : > { %s3616_s28 = scalar_lea.vmem %s4392_s6, %s657_s26  ;;  %s3651_s19 = scalar_lea.vmem %s4356_s13, %s3161_s17 }
  0x26   : > { %s3621_s16 = scalar_lea.vmem %s4393_s7, %s3158_s24  ;;  %s4396_s6 = sld [smem:[#allocation2_spill]] }
  0x27   : > { %s3626_s21 = scalar_lea.vmem %s4394_s8, %s657_s26 }
  0x29   : > { %s3631_s1 = scalar_lea.vmem %s4395_s9, %s657_s26  ;;  %s3182_s9 = smul.u32 24, %s4425_s25 }
  0x2b   : > { %s3661_s27 = scalar_lea.vmem %s4358_s15, %s3182_s9 }
  0x2c   : > { %p3020_p7 = scmp.ne.s32.totalorder %s4396_s6, 0 }
  0x2d   : > { %s4397_s8 = sld [smem:[#allocation11_spill]] (!%p3020_p7) }
  0x2e   : > { %711 = sbr.rel (%p3020_p7) target bundleno = 60 (0x3c), region = 84  ;;  %s4398_s23 = sld [smem:[#allocation10_spill]] (!%p3020_p7) }
  0x33   : > { %v712_v0 = vld [vmem:[%s654_s20] sm:$0xff]  ;;  %v714_v1 = vld [vmem:[%s654_s20 + $0x10] sm:$0xff]  ;;  %vm722_vm0 = vcmask 261120   ;;  %v713_v5 = vld [vmem:[%s654_s20 + $0x8] sm:$0xff]  ;;  %vm728_vm1 = vcmask 253952  }
  0x34   : > { %v716_v2 = vld [vmem:[%s4397_s8] sm:$0xff]  ;;  %v715_v6 = vld [vmem:[%s654_s20 + $0x18] sm:$0xff]  ;;  %v717_v7 = vld [vmem:[%s4397_s8 + $0x8] sm:$0xff] }
  0x35   : > { %v718_v3 = vadd.f32 %v716_v2, %v712_v0  ;;  %v720_v4 = vadd.f32 %v716_v2, %v714_v1  ;;  %v719_v8 = vadd.f32 %v717_v7, %v713_v5  ;;  %v721_v9 = vadd.f32 %v717_v7, %v715_v6  ;;  %v727_v10 = vld [vmem:[%s4398_s23] sm:$0x1] }
  0x36   : > { %729 = vst.msk [vmem:[%s3661_s27] sm:$0x1] %vm728_vm1, %v727_v10 }
  0x37   : > { %723 = vst.msk [vmem:[%s3661_s27 + $0x1] sm:$0xff] %vm722_vm0, %v718_v3 }
  0x38   : > { %725 = vst.msk [vmem:[%s3661_s27 + $0x19] sm:$0xff] %vm722_vm0, %v720_v4 }
  0x39   : > { %724 = vst.msk [vmem:[%s3661_s27 + $0x9] sm:$0xff] %vm722_vm0, %v719_v8 }
  0x3a   : > { %726 = vst.msk [vmem:[%s3661_s27 + $0x21] sm:$0xff] %vm722_vm0, %v721_v9 }
  0x3b   : > { %730 = vst.msk [vmem:[%s3661_s27 + $0x18] sm:$0x1] %vm728_vm1, %v727_v10 }
  0x3c PF: > { %vm738_vm2 = vcmask 261120   ;;  %vm745_vm3 = vcmask 253952   ;;  %v3465_v17 = vmov 32.0   ;;  %v3163_v39 = vld [vmem:[%s3611_s2 + $0x8] sm:$0xff]  ;;  %v3162_v42 = vld [vmem:[%s3611_s2] sm:$0xff]  ;;  %s4399_s20 = sld [smem:[#allocation8_spill]] }
  0x3d   : > { %3281 = vrcp.f32 %v3465_v17  ;;  %859 = vmatpush.bf16.msra.mxu0 %v3163_v39  ;;  %v3269_v0 = vld [vmem:[%s3598_s29] ss:$0 sm:$0xff]  ;;  %s3466_s0 = smov 64   ;;  %s3467_s5 = smov 96   ;;  %vm1007_vm14 = vcmask 1040384   ;;  %vm886_vm15 = vcmask 64512  }
  0x3e   : > { %v735_v11 = vld [vmem:[%s3661_s27] sm:$0xff]  ;;  %s3468_s24 = smov 88   ;;  %vm920_vm0 = vcmask 138240   ;;  %vm927_vm1 = vcmask 131072   ;;  %s3470_s6 = smov 80  }
  0x3f   : > { %v739_v13 = vsel %vm738_vm2, %v735_v11, 0.0  ;;  %s3471_s7 = smov 120   ;;  %s3472_s30 = smov 72  }
  0x40   : > { %v737_v12 = vld [vmem:[%s3661_s27 + $0x10] sm:$0x1]  ;;  %740 = vadd.xlane.f32.xlu0 %v739_v13  ;;  %v736_v15 = vld [vmem:[%s3661_s27 + $0x8] sm:$0xff]  ;;  %s3473_s9 = smov 104   ;;  %s3474_s25 = smov 112  }
  0x41   : > { %v746_v14 = vsel %vm745_vm3, %v737_v12, 0.0  ;;  %v742_v16 = vsel %vm738_vm2, %v736_v15, 0.0  ;;  %860 = vmatpush.bf16.msra.mxu0 %v3162_v42  ;;  %s3475_s26 = smov 56   ;;  %s4369_s17 = smov 48  }
  0x42   : > { %747 = vadd.xlane.f32.xlu1 %v746_v14  ;;  %v3270_v7 = vld [vmem:[%s4399_s20] ss:$0 sm:$0xff]  ;;  %s4365_s23 = smov 40  }
  0x43   : > { %v3282_v18 = vpop.eup %3281 }
  0x44   : > { %v750_v19 = vmul.f32 32.0, %v3282_v18  ;;  %vm754_vm4 = vweird.f32 %v3282_v18 }
  0x46   : > { %v751_v20 = vsub.f32 1.0, %v750_v19 }
  0x48   : > { %743 = vadd.xlane.f32.xlu0 %v742_v16  ;;  %v752_v21 = vmul.f32 %v3282_v18, %v751_v20 }
  0x4a   : > { %v753_v22 = vadd.f32 %v3282_v18, %v752_v21  ;;  %v3271_v21 = vld [vmem:[%s3616_s28] ss:$0 sm:$0xff] }
  0x4c   : > { %v3685_v23 = vsel %vm754_vm4, %v3282_v18, %v753_v22 }
  0xb3   : > { %v741_v24 = vpop.xlane.xlu0 %740 }
  0xb4   : > { %v756_v25 = vmul.f32 %v3685_v23, %v741_v24 }
  0xb5   : > { %v748_v28 = vpop.xlane.xlu1 %747 }
  0xb6   : > { %v759_v26 = vsub.f32 %v735_v11, %v756_v25  ;;  %v758_v32 = vmul.f32 %v3685_v23, %v748_v28 }
  0xb8   : > { %v762_v27 = vmul.f32 %v759_v26, %v759_v26  ;;  %v3691_v34 = vsub.f32 %v737_v12, %v758_v32 }
  0xba   : > { %v765_v29 = vsel %vm738_vm2, %v762_v27, 0.0  ;;  %v764_v37 = vmul.f32 %v3691_v34, %v3691_v34 }
  0xbb   : > { %766 = vadd.xlane.f32.xlu1 %v765_v29  ;;  %v744_v30 = vpop.xlane.xlu0 %743 }
  0xbc   : > { %v757_v31 = vmul.f32 %v3685_v23, %v744_v30  ;;  %v771_v38 = vsel %vm745_vm3, %v764_v37, 0.0 }
  0xbe   : > { %v760_v33 = vsub.f32 %v736_v15, %v757_v31 }
  0xc0   : > { %v763_v35 = vmul.f32 %v760_v33, %v760_v33 }
  0xc2   : > { %v768_v36 = vsel %vm738_vm2, %v763_v35, 0.0 }
  0xc3   : > { %769 = vadd.xlane.f32.xlu2 %v768_v36 }
  0xcb   : > { %772 = vadd.xlane.f32.xlu2 %v771_v38  ;;  %v3469_v38 = vmov 0  }
  0xcc   : > { %v3724_v39 = vsel %vm1007_vm14, 65535, %v3469_v38 }
 0x12e   : > { %v767_v40 = vpop.xlane.xlu1 %766 }
 0x12f   : > { %v774_v41 = vmul.f32 %v767_v40, %v3685_v23 }
 0x131   : > { %v777_v43 = vadd.f32 1e-12, %v774_v41 }
 0x133   : > { %3283 = vrsqrt.f32 %v777_v43  ;;  %vm786_vm6 = vweird.f32 %v777_v43 }
 0x136   : > { %v770_v44 = vpop.xlane.xlu2 %769 }
 0x137   : > { %v775_v45 = vmul.f32 %v770_v44, %v3685_v23 }
 0x139   : > { %v3284_v46 = vpop.eup %3283  ;;  %v778_v47 = vadd.f32 1e-12, %v775_v45 }
 0x13a   : > { %v781_v48 = vmul.f32 %v3284_v46, %v777_v43  ;;  %vm787_vm5 = vweird.f32 %v3284_v46 }
 0x13b   : > { %3285 = vrsqrt.f32 %v778_v47  ;;  %vm788_vm7 = vmor %vm786_vm6, %vm787_vm5  ;;  %vm796_vm9 = vweird.f32 %v778_v47 }
 0x13c   : > { %v782_v49 = vmul.f32 %v3284_v46, %v781_v48 }
 0x13e   : > { %v783_v50 = vmul.f32 0.5, %v782_v49  ;;  %v773_v51 = vpop.xlane.xlu2 %772 }
 0x13f   : > { %v776_v52 = vmul.f32 %v773_v51, %v3685_v23 }
 0x140   : > { %v784_v53 = vsub.f32 1.5, %v783_v50 }
 0x141   : > { %v3286_v54 = vpop.eup %3285  ;;  %v779_v55 = vadd.f32 1e-12, %v776_v52 }
 0x142   : > { %v785_v56 = vmul.f32 %v3284_v46, %v784_v53  ;;  %v791_v57 = vmul.f32 %v3286_v54, %v778_v47  ;;  %vm797_vm8 = vweird.f32 %v3286_v54 }
 0x143   : > { %3287 = vrsqrt.f32 %v779_v55  ;;  %vm798_vm10 = vmor %vm796_vm9, %vm797_vm8  ;;  %vm806_vm11 = vweird.f32 %v779_v55 }
 0x144   : > { %v792_v58 = vmul.f32 %v3286_v54, %v791_v57  ;;  %v789_v59 = vsel %vm788_vm7, %v3284_v46, %v785_v56 }
 0x145   : > { %v810_v63 = vmul.f32 %v789_v59, %v759_v26 }
 0x146   : > { %v793_v60 = vmul.f32 0.5, %v792_v58 }
 0x147   : > { %v816_v6 = vmul.f32 %v3269_v0, %v810_v63 }
 0x148   : > { %v794_v61 = vsub.f32 1.5, %v793_v60 }
 0x149   : > { %v3288_v62 = vpop.eup %3287  ;;  %v822_v11 = vadd.f32 %v3270_v7, %v816_v6 }
 0x14a   : > { %v795_v1 = vmul.f32 %v3286_v54, %v794_v61  ;;  %v801_v2 = vmul.f32 %v3288_v62, %v779_v55  ;;  %vm807_vm12 = vweird.f32 %v3288_v62 }
 0x14b   : > { %vm808_vm13 = vmor %vm806_vm11, %vm807_vm12 }
 0x14c   : > { %v799_v3 = vsel %vm798_vm10, %v3286_v54, %v795_v1  ;;  %v802_v4 = vmul.f32 %v3288_v62, %v801_v2 }
 0x14d   : > { %v811_v5 = vmul.f32 %v799_v3, %v760_v33 }
 0x14e   : > { %v803_v8 = vmul.f32 0.5, %v802_v4 }
 0x14f   : > { %v817_v9 = vmul.f32 %v3269_v0, %v811_v5 }
 0x150   : > { %v804_v10 = vsub.f32 1.5, %v803_v8 }
 0x151   : > { %v823_v12 = vadd.f32 %v3270_v7, %v817_v9 }
 0x152   : > { %v805_v13 = vmul.f32 %v3288_v62, %v804_v10 }
 0x153   : > { %v825_v14 = vpack.c.bf16 %v823_v12, %v822_v11 }
 0x154   : > { %v809_v15 = vsel %vm808_vm13, %v3288_v62, %v805_v13 }
 0x155   : > { %3029 = vmatmul.msk.bf16.vlgmr.msra.gmra.mxu0 %vm738_vm2, %v825_v14  ;;  %v812_v16 = vmul.f32 %v809_v15, %v3691_v34 }
 0x157   : > { %v818_v17 = vmul.f32 %v3269_v0, %v812_v16 }
 0x159   : > { %v824_v18 = vadd.f32 %v3270_v7, %v818_v17 }
 0x15b   : > { %v826_v19 = vpack.c.bf16 %v824_v18, %v824_v18 }
 0x165   : > { %3030 = vmatmul.msk.bf16.gmra.mxu0 %vm738_vm2, %v826_v19 }
 0x1d2   : > { %v862_v20 = vpop.f32.mrf.mxu0 }
 0x1d3   : > { %v863_v22 = vadd.f32 %v3271_v21, %v862_v20 }
 0x1d5   : > { %v871_v25 = vpack.c.bf16 %v863_v22, %v863_v22 }
 0x1d7   : > { %v877_v28 = vunpack.c.l.b16 %v871_v25 }
 0x1da   : > { %v864_v24 = vpop.f32.mrf.mxu0 }
 0x1db   : > { %v865_v26 = vadd.f32 %v3271_v21, %v864_v24 }
 0x1dd   : > { %v872_v27 = vpack.c.bf16 %v865_v26, %v865_v26 }
 0x1df   : > { %v878_v29 = vunpack.c.l.b16 %v872_v27 }
 0x1e1   : > { %v3708_v30 = vpack.c.b16 %v878_v29, %v877_v28 }
 0x1e2   : > { %v867_v31 = vpop.f32.mrf.mxu0 }
 0x1e3   : > { %v868_v32 = vadd.f32 %v3271_v21, %v867_v31  ;;  %996 = vrot.lane.b32.xlu2 %v3708_v30, %s3466_s0  ;;  %882 = vrot.lane.b32.xlu1 %v3708_v30, %s3467_s5 }
 0x1e5   : > { %v873_v33 = vpack.c.bf16 %v868_v32, %v868_v32 }
 0x1e7   : > { %v879_v34 = vunpack.c.l.b16 %v873_v33 }
 0x1e9   : > { %v3714_v35 = vpack.c.b16 %v879_v34, %v879_v34 }
 0x1ea   : > { %v869_v36 = vpop.f32.mrf.mxu0 }
 0x1eb   : > { %884 = vrot.lane.b32.xlu0 %v3714_v35, %s3467_s5  ;;  %998 = vrot.lane.b32.xlu2 %v3714_v35, %s3466_s0 }
 0x1ec   : > { %1035 = vrot.lane.b32.xlu1 %v3708_v30, %s3468_s24 }
 0x1f4   : > { %1037 = vrot.lane.b32.xlu1 %v3714_v35, %s3468_s24 }
 0x23d   : > { %v997_v37 = vpop.permute.xlu2 %996 }
 0x245   : > { %v999_v40 = vpop.permute.xlu2 %998 }
 0x246   : > { %v1011_v41 = vand.u32 %v3724_v39, %v999_v40 }
 0x248   : > { %1019 = vmatpush.bf16.msra.mxu2 %v1011_v41 }
 0x24c   : > { %1020 = vmatpush.bf16.msra.mxu2 %v997_v37 }
 0x255   : > { %v883_v42 = vpop.permute.xlu1 %882 }
 0x256   : > { %v894_v47 = vsel %vm886_vm15, %v883_v42, 0 }
 0x25d   : > { %v885_v43 = vpop.permute.xlu0 %884 }
 0x25e   : > { %v1036_v44 = vpop.permute.xlu1 %1035  ;;  %v897_v45 = vsel %vm886_vm15, %v885_v43, 0 }
 0x25f   : > { %905 = vmatpush.bf16.xpose.msra.mxu1 %v897_v45  ;;  %v1046_v49 = vsel %vm886_vm15, %v1036_v44, 0 }
 0x266   : > { %v1038_v46 = vpop.permute.xlu1 %1037 }
 0x267   : > { %906 = vmatpush.bf16.xpose.msra.mxu1 %v894_v47  ;;  %v1049_v48 = vsel %vm886_vm15, %v1038_v46, 0 }
 0x268   : > { %1057 = vmatpush.bf16.xpose.msra.mxu3 %v1049_v48 }
 0x26e   : > { %3031 = vmatmul.msk.bf16.vlgmr.msra.gmra.mxu1 %vm886_vm15, %v3708_v30 }
 0x270   : > { %1058 = vmatpush.bf16.xpose.msra.mxu3 %v1046_v49 }
 0x27e   : > { %3032 = vmatmul.msk.bf16.gmra.mxu1 %vm886_vm15, %v3714_v35 }
 0x2eb   : > { %v908_v50 = vpop.f32.mrf.mxu1 }
 0x2ec   : > { %v917_v51 = vmul.f32 0.35355338, %v908_v50 }
 0x2ee   : > { %v921_v52 = vsel %vm920_vm0, %v917_v51, -inf }
 0x2ef   : > { %922 = vmax.xlane.f32.xlu2 %v921_v52 }
 0x2f3   : > { %v910_v53 = vpop.f32.mrf.mxu1 }
 0x2f4   : > { %v918_v54 = vmul.f32 0.35355338, %v910_v53 }
 0x2f6   : > { %v924_v55 = vsel %vm920_vm0, %v918_v54, -inf }
 0x2f7   : > { %925 = vmax.xlane.f32.xlu2 %v924_v55 }
 0x2fb   : > { %v913_v56 = vpop.f32.mrf.mxu1 }
 0x2fc   : > { %v919_v57 = vmul.f32 0.35355338, %v913_v56 }
 0x2fe   : > { %v928_v58 = vsel %vm927_vm1, %v919_v57, -inf }
 0x2ff   : > { %929 = vmax.xlane.f32.xlu2 %v928_v58 }
 0x303   : > { %v915_v59 = vpop.f32.mrf.mxu1 }
 0x317   : > { %1184 = vrot.lane.b32.xlu2 %v3714_v35, %s3470_s6 }
 0x31f   : > { %1033 = vrot.lane.b32.xlu2 %v3714_v35, %s3471_s7 }
 0x362   : > { %v923_v60 = vpop.xlane.xlu2 %922 }
 0x363   : > { %v931_v61 = vsub.f32 %v917_v51, %v923_v60 }
 0x365   : > { %v934_v62 = vmul.f32 1.442695, %v931_v61 }
 0x367   : > { %3289 = vpow2.f32 %v934_v62 }
 0x36a   : > { %v926_v63 = vpop.xlane.xlu2 %925 }
 0x36b   : > { %v932_v0 = vsub.f32 %v918_v54, %v926_v63 }
 0x36d   : > { %v3742_v1 = vpop.eup %3289  ;;  %v936_v2 = vmul.f32 1.442695, %v932_v0 }
 0x36e   : > { %v940_v3 = vsel %vm920_vm0, %v3742_v1, 0.0 }
 0x36f   : > { %3291 = vpow2.f32 %v936_v2  ;;  %941 = vadd.xlane.f32.xlu0 %v940_v3 }
 0x372   : > { %v930_v4 = vpop.xlane.xlu2 %929 }
 0x373   : > { %v933_v5 = vsub.f32 %v919_v57, %v930_v4 }
 0x375   : > { %v3746_v6 = vpop.eup %3291  ;;  %v938_v7 = vmul.f32 1.442695, %v933_v5 }
 0x376   : > { %v943_v8 = vsel %vm920_vm0, %v3746_v6, 0.0 }
 0x377   : > { %3293 = vpow2.f32 %v938_v7  ;;  %944 = vadd.xlane.f32.xlu2 %v943_v8 }
 0x37a   : > { %v1185_v9 = vpop.permute.xlu2 %1184 }
 0x37b   : > { %v1196_v10 = vsel %vm886_vm15, %v1185_v9, 0 }
 0x37c   : > { %1204 = vmatpush.bf16.xpose.msrb.mxu2 %v1196_v10 }
 0x37d   : > { %v3751_v11 = vpop.eup %3293 }
 0x37e   : > { %v946_v12 = vsel %vm927_vm1, %v3751_v11, 0.0 }
 0x37f   : > { %947 = vadd.xlane.f32.xlu1 %v946_v12 }
 0x382   : > { %v1034_v13 = vpop.permute.xlu2 %1033 }
 0x383   : > { %1031 = vrot.lane.b32.xlu0 %v3708_v30, %s3471_s7 }
 0x38b   : > { %1182 = vrot.lane.b32.xlu0 %v3708_v30, %s3470_s6 }
 0x38f   : > { %1331 = vrot.lane.b32.xlu2 %v3714_v35, %s3472_s30 }
 0x393   : > { %1325 = vrot.lane.b32.xlu0 %v3708_v30, %s3473_s9 }
 0x397   : > { %1178 = vrot.lane.b32.xlu2 %v3708_v30, %s3474_s25 }
 0x398   : > { %1329 = vrot.lane.b32.xlu1 %v3708_v30, %s3472_s30 }
 0x39b   : > { %1327 = vrot.lane.b32.xlu0 %v3714_v35, %s3473_s9 }
 0x39f   : > { %1180 = vrot.lane.b32.xlu2 %v3714_v35, %s3474_s25 }
 0x3e2   : > { %v942_v14 = vpop.xlane.xlu0 %941 }
 0x3e3   : > { %3295 = vrcp.f32 %v942_v14  ;;  %v960_v26 = vand.u32 2147483648, %v942_v14  ;;  %vm954_vm5 = vweird.f32 %v942_v14  ;;  %v958_v28 = vand.u32 2147483647, %v942_v14 }
 0x3e5   : > { %v961_v38 = vor.u32 1.1754944e-38, %v960_v26  ;;  %vm959_vm8 = vcmp.eq.f32.partialorder %v958_v28, 8.507059e+37 }
 0x3e9   : > { %v3296_v15 = vpop.eup %3295 }
 0x3ea   : > { %v950_v16 = vmul.f32 %v3296_v15, %v942_v14  ;;  %v945_v17 = vpop.xlane.xlu2 %944  ;;  %vm955_vm4 = vweird.f32 %v3296_v15 }
 0x3eb   : > { %3297 = vrcp.f32 %v945_v17  ;;  %vm3772_vm6 = vmor %vm954_vm5, %vm955_vm4  ;;  %v975_v32 = vand.u32 2147483648, %v945_v17  ;;  %v973_v36 = vand.u32 2147483647, %v945_v17  ;;  %vm969_vm9 = vweird.f32 %v945_v17 }
 0x3ec   : > { %v951_v18 = vsub.f32 1.0, %v950_v16 }
 0x3ed   : > { %v976_v42 = vor.u32 1.1754944e-38, %v975_v32  ;;  %vm974_vm11 = vcmp.eq.f32.partialorder %v973_v36, 8.507059e+37 }
 0x3ee   : > { %v952_v19 = vmul.f32 %v3296_v15, %v951_v18 }
 0x3f0   : > { %v953_v21 = vadd.f32 %v3296_v15, %v952_v19 }
 0x3f1   : > { %v3298_v20 = vpop.eup %3297 }
 0x3f2   : > { %v965_v22 = vmul.f32 %v3298_v20, %v945_v17  ;;  %v1332_v24 = vpop.permute.xlu2 %1331  ;;  %v948_v25 = vpop.xlane.xlu1 %947  ;;  %vm970_vm7 = vweird.f32 %v3298_v20  ;;  %v957_v37 = vsel %vm3772_vm6, %v3296_v15, %v953_v21 }
 0x3f3   : > { %3299 = vrcp.f32 %v948_v25  ;;  %v1343_v27 = vsel %vm886_vm15, %v1332_v24, 0  ;;  %vm971_vm10 = vmor %vm969_vm9, %vm970_vm7  ;;  %v962_v43 = vsel %vm959_vm8, %v961_v38, %v957_v37  ;;  %v990_v55 = vand.u32 2147483648, %v948_v25 }
 0x3f4   : > { %v966_v29 = vsub.f32 1.0, %v965_v22  ;;  %1351 = vmatpush.bf16.xpose.msrb.mxu3 %v1343_v27  ;;  %v963_v48 = vmul.f32 %v3742_v1, %v962_v43  ;;  %vm984_vm13 = vweird.f32 %v948_v25  ;;  %v988_v56 = vand.u32 2147483647, %v948_v25 }
 0x3f5   : > { %v1032_v33 = vpop.permute.xlu0 %1031  ;;  %v991_v58 = vor.u32 1.1754944e-38, %v990_v55 }
 0x3f6   : > { %v967_v34 = vmul.f32 %v3298_v20, %v966_v29  ;;  %3035 = vmatmul.msk.bf16.vlgmr.msra.gmra.mxu3 %vm886_vm15, %v1032_v33  ;;  %vm989_vm4 = vcmp.eq.f32.partialorder %v988_v56, 8.507059e+37 }
 0x3f8   : > { %v968_v40 = vadd.f32 %v3298_v20, %v967_v34 }
 0x3f9   : > { %v3300_v41 = vpop.eup %3299 }
 0x3fa   : > { %v980_v44 = vmul.f32 %v3300_v41, %v948_v25  ;;  %v972_v45 = vsel %vm971_vm10, %v3298_v20, %v968_v40  ;;  %vm985_vm12 = vweird.f32 %v3300_v41  ;;  %v1179_v1 = vpop.permute.xlu2 %1178 }
 0x3fb   : > { %v977_v46 = vsel %vm974_vm11, %v976_v42, %v972_v45  ;;  %vm986_vm14 = vmor %vm984_vm13, %vm985_vm12 }
 0x3fc   : > { %v981_v47 = vsub.f32 1.0, %v980_v44  ;;  %v978_v49 = vmul.f32 %v3746_v6, %v977_v46 }
 0x3fd   : > { %v1183_v50 = vpop.permute.xlu0 %1182 }
 0x3fe   : > { %v982_v51 = vmul.f32 %v3300_v41, %v981_v47  ;;  %v1193_v52 = vsel %vm886_vm15, %v1183_v50, 0  ;;  %v994_v53 = vpack.c.bf16 %v978_v49, %v963_v48 }
 0x3ff   : > { %1205 = vmatpush.bf16.xpose.msrb.mxu2 %v1193_v52 }
 0x400   : > { %3033 = vmatmul.msk.bf16.vlgmr.msra.gmra.mxu2 %vm920_vm0, %v994_v53  ;;  %v983_v54 = vadd.f32 %v3300_v41, %v982_v51 }
 0x402   : > { %v987_v57 = vsel %vm986_vm14, %v3300_v41, %v983_v54  ;;  %v1181_v3 = vpop.permute.xlu2 %1180 }
 0x403   : > { %v992_v59 = vsel %vm989_vm4, %v991_v58, %v987_v57 }
 0x404   : > { %v993_v61 = vmul.f32 %v3751_v11, %v992_v59 }
 0x405   : > { %v1326_v0 = vpop.permute.xlu0 %1325 }
 0x406   : > { %3036 = vmatmul.msk.bf16.gmra.mxu3 %vm886_vm15, %v1034_v13  ;;  %v995_v63 = vpack.c.bf16 %v993_v61, %v993_v61 }
 0x40a   : > { %v1330_v60 = vpop.permute.xlu1 %1329 }
 0x40b   : > { %v1340_v62 = vsel %vm886_vm15, %v1330_v60, 0 }
 0x40c   : > { %1352 = vmatpush.bf16.xpose.msrb.mxu3 %v1340_v62 }
 0x40d   : > { %v1328_v2 = vpop.permute.xlu0 %1327 }
 0x410   : > { %3034 = vmatmul.msk.bf16.gmra.mxu2 %vm920_vm0, %v995_v63 }
 0x416   : > { %3043 = vmatmul.msk.bf16.vlgmr.msrb.gmra.mxu3 %vm886_vm15, %v1326_v0 }
 0x420   : > { %3039 = vmatmul.msk.bf16.vlgmr.msrb.gmra.mxu2 %vm886_vm15, %v1179_v1 }
 0x426   : > { %3044 = vmatmul.msk.bf16.gmra.mxu3 %vm886_vm15, %v1328_v2 }
 0x430   : > { %3040 = vmatmul.msk.bf16.gmra.mxu2 %vm886_vm15, %v1181_v3 }
 0x479   : > { %v1060_v4 = vpop.f32.mrf.mxu3 }
 0x47a   : > { %v1069_v5 = vmul.f32 0.35355338, %v1060_v4 }
 0x47c   : > { %v1072_v6 = vsel %vm920_vm0, %v1069_v5, -inf }
 0x47d   : > { %1073 = vmax.xlane.f32.xlu2 %v1072_v6 }
 0x481   : > { %v1062_v7 = vpop.f32.mrf.mxu3 }
 0x482   : > { %v1070_v8 = vmul.f32 0.35355338, %v1062_v7 }
 0x483   : > { %v3792_v9 = vpop.f32.mrf.mxu2 }
 0x484   : > { %v1075_v10 = vsel %vm920_vm0, %v1070_v8, -inf }
 0x485   : > { %1076 = vmax.xlane.f32.xlu0 %v1075_v10 }
 0x489   : > { %v1065_v11 = vpop.f32.mrf.mxu3 }
 0x48a   : > { %v1071_v12 = vmul.f32 0.35355338, %v1065_v11 }
 0x48b   : > { %v3795_v13 = vpop.f32.mrf.mxu2 }
 0x48c   : > { %v1078_v14 = vsel %vm927_vm1, %v1071_v12, -inf }
 0x48d   : > { %1079 = vmax.xlane.f32.xlu1 %v1078_v14 }
 0x491   : > { %v1067_v15 = vpop.f32.mrf.mxu3 }
 0x493   : > { %v3798_v16 = vpop.f32.mrf.mxu2 }
 0x499   : > { %v1354_v17 = vpop.f32.mrf.mxu3 }
 0x49a   : > { %v3800_v18 = vmul.f32 0.35355338, %v1354_v17 }
 0x49b   : > { %v1029_v19 = vpop.f32.mrf.mxu2 }
 0x49c   : > { %v1366_v20 = vsel %vm920_vm0, %v3800_v18, -inf }
 0x49d   : > { %1367 = vmax.xlane.f32.xlu1 %v1366_v20 }
 0x4a1   : > { %v1356_v21 = vpop.f32.mrf.mxu3 }
 0x4a2   : > { %v1364_v22 = vmul.f32 0.35355338, %v1356_v21 }
 0x4a3   : > { %v1207_v24 = vpop.f32.mrf.mxu2 }
 0x4a4   : > { %v1369_v25 = vsel %vm920_vm0, %v1364_v22, -inf  ;;  %v1216_v26 = vmul.f32 0.35355338, %v1207_v24 }
 0x4a5   : > { %1370 = vmax.xlane.f32.xlu2 %v1369_v25 }
 0x4a6   : > { %v1219_v29 = vsel %vm920_vm0, %v1216_v26, -inf }
 0x4a9   : > { %v1359_v27 = vpop.f32.mrf.mxu3 }
 0x4aa   : > { %v3822_v51 = vmul.f32 0.35355338, %v1359_v27 }
 0x4ab   : > { %v1209_v28 = vpop.f32.mrf.mxu2 }
 0x4ac   : > { %v1372_v52 = vsel %vm927_vm1, %v3822_v51, -inf  ;;  %v3846_v6 = vmul.f32 0.35355338, %v1209_v28 }
 0x4ad   : > { %1220 = vmax.xlane.f32.xlu2 %v1219_v29 }
 0x4ae   : > { %v1222_v7 = vsel %vm920_vm0, %v3846_v6, -inf }
 0x4b1   : > { %v1361_v31 = vpop.f32.mrf.mxu3 }
 0x4b3   : > { %v3806_v32 = vpop.f32.mrf.mxu2 }
 0x4bb   : > { %v1214_v33 = vpop.f32.mrf.mxu2 }
 0x4c5   : > { %1148 = vrot.lane.b32.xlu2 %v3714_v35, %s3475_s26 }
 0x4f0   : > { %v1074_v34 = vpop.xlane.xlu2 %1073 }
 0x4f1   : > { %v1081_v36 = vsub.f32 %v1069_v5, %v1074_v34 }
 0x4f3   : > { %v1084_v37 = vmul.f32 1.442695, %v1081_v36 }
 0x4f5   : > { %3301 = vpow2.f32 %v1084_v37 }
 0x4f8   : > { %v1077_v38 = vpop.xlane.xlu0 %1076 }
 0x4f9   : > { %v1082_v40 = vsub.f32 %v1070_v8, %v1077_v38 }
 0x4fb   : > { %v3810_v41 = vpop.eup %3301  ;;  %v1086_v42 = vmul.f32 1.442695, %v1082_v40 }
 0x4fc   : > { %v1090_v43 = vsel %vm920_vm0, %v3810_v41, 0.0 }
 0x4fd   : > { %3303 = vpow2.f32 %v1086_v42  ;;  %1091 = vadd.xlane.f32.xlu0 %v1090_v43 }
 0x500   : > { %v1080_v44 = vpop.xlane.xlu1 %1079 }
 0x501   : > { %v1083_v45 = vsub.f32 %v1071_v12, %v1080_v44 }
 0x503   : > { %v3814_v46 = vpop.eup %3303  ;;  %v1088_v47 = vmul.f32 1.442695, %v1083_v45 }
 0x504   : > { %v1093_v48 = vsel %vm920_vm0, %v3814_v46, 0.0 }
 0x505   : > { %3305 = vpow2.f32 %v1088_v47  ;;  %1094 = vadd.xlane.f32.xlu1 %v1093_v48 }
 0x50b   : > { %v3818_v49 = vpop.eup %3305 }
 0x50c   : > { %v1096_v50 = vsel %vm927_vm1, %v3818_v49, 0.0 }
 0x50d   : > { %1097 = vadd.xlane.f32.xlu0 %v1096_v50 }
 0x510   : > { %v1368_v1 = vpop.xlane.xlu1 %1367 }
 0x511   : > { %v1375_v2 = vsub.f32 %v3800_v18, %v1368_v1 }
 0x513   : > { %v1378_v3 = vmul.f32 1.442695, %v1375_v2 }
 0x515   : > { %1373 = vmax.xlane.f32.xlu0 %v1372_v52 }
 0x518   : > { %v1371_v53 = vpop.xlane.xlu2 %1370 }
 0x519   : > { %v1376_v54 = vsub.f32 %v1364_v22, %v1371_v53 }
 0x51b   : > { %v1380_v55 = vmul.f32 1.442695, %v1376_v54 }
 0x51d   : > { %3307 = vpow2.f32 %v1380_v55 }
 0x51e   : > { %1146 = vrot.lane.b32.xlu1 %v3708_v30, %s3475_s26 }
 0x520   : > { %v1221_v56 = vpop.xlane.xlu2 %1220 }
 0x521   : > { %v1228_v57 = vsub.f32 %v1216_v26, %v1221_v56 }
 0x523   : > { %v3828_v58 = vpop.eup %3307  ;;  %v1231_v59 = vmul.f32 1.442695, %v1228_v57 }
 0x524   : > { %v1387_v60 = vsel %vm920_vm0, %v3828_v58, 0.0 }
 0x525   : > { %3309 = vpow2.f32 %v1231_v59  ;;  %1388 = vadd.xlane.f32.xlu0 %v1387_v60 }
 0x526   : > { %3311 = vpow2.f32 %v1378_v3 }
 0x528   : > { %v1149_v61 = vpop.permute.xlu2 %1148 }
 0x529   : > { %v1158_v62 = vand.u32 %v1149_v61, %v3724_v39 }
 0x52b   : > { %v3833_v63 = vpop.eup %3309  ;;  %1166 = vmatpush.bf16.msrb.mxu0 %v1158_v62 }
 0x52c   : > { %v1237_v0 = vsel %vm920_vm0, %v3833_v63, 0.0  ;;  %v3840_v4 = vpop.eup %3311 }
 0x52d   : > { %1238 = vadd.xlane.f32.xlu2 %v1237_v0  ;;  %v1384_v5 = vsel %vm920_vm0, %v3840_v4, 0.0 }
 0x539   : > { %1295 = vrot.lane.b32.xlu0 %v3714_v35, %s4369_s17 }
 0x545   : > { %1293 = vrot.lane.b32.xlu2 %v3708_v30, %s4369_s17  ;;  %s3480_s17 = smov 24  }
 0x548   : > { %1385 = vadd.xlane.f32.xlu1 %v1384_v5 }
 0x563   : > { %1223 = vmax.xlane.f32.xlu0 %v1222_v7 }
 0x570   : > { %v1092_v8 = vpop.xlane.xlu0 %1091 }
 0x571   : > { %3313 = vrcp.f32 %v1092_v8  ;;  %vm1104_vm9 = vweird.f32 %v1092_v8  ;;  %v1108_v28 = vand.u32 2147483647, %v1092_v8 }
 0x573   : > { %vm1109_vm12 = vcmp.eq.f32.partialorder %v1108_v28, 8.507059e+37 }
 0x577   : > { %v3314_v10 = vpop.eup %3313  ;;  %1442 = vrot.lane.b32.xlu0 %v3714_v35, %s4365_s23  ;;  %v1110_v35 = vand.u32 2147483648, %v1092_v8 }
 0x578   : > { %v1095_v11 = vpop.xlane.xlu1 %1094  ;;  %v1100_v12 = vmul.f32 %v3314_v10, %v1092_v8  ;;  %vm1105_vm6 = vweird.f32 %v3314_v10 }
 0x579   : > { %3315 = vrcp.f32 %v1095_v11  ;;  %v1125_v22 = vand.u32 2147483648, %v1095_v11  ;;  %vm1119_vm7 = vweird.f32 %v1095_v11  ;;  %v1123_v26 = vand.u32 2147483647, %v1095_v11  ;;  %vm1106_vm10 = vmor %vm1104_vm9, %vm1105_vm6 }
 0x57a   : > { %v1101_v14 = vsub.f32 1.0, %v1100_v12  ;;  %v1111_v36 = vor.u32 1.1754944e-38, %v1110_v35 }
 0x57b   : > { %v1126_v33 = vor.u32 1.1754944e-38, %v1125_v22  ;;  %vm1124_vm11 = vcmp.eq.f32.partialorder %v1123_v26, 8.507059e+37 }
 0x57c   : > { %v1102_v19 = vmul.f32 %v3314_v10, %v1101_v14 }
 0x57e   : > { %v1103_v24 = vadd.f32 %v3314_v10, %v1102_v19 }
 0x57f   : > { %v3316_v15 = vpop.eup %3315 }
 0x580   : > { %v1115_v17 = vmul.f32 %v3316_v15, %v1095_v11  ;;  %v1098_v18 = vpop.xlane.xlu0 %1097  ;;  %vm1120_vm5 = vweird.f32 %v3316_v15  ;;  %v1107_v34 = vsel %vm1106_vm10, %v3314_v10, %v1103_v24 }
 0x581   : > { %3317 = vrcp.f32 %v1098_v18  ;;  %vm1121_vm8 = vmor %vm1119_vm7, %vm1120_vm5  ;;  %v1112_v40 = vsel %vm1109_vm12, %v1111_v36, %v1107_v34  ;;  %v1140_v50 = vand.u32 2147483648, %v1098_v18  ;;  %vm1134_vm14 = vweird.f32 %v1098_v18 }
 0x582   : > { %v1116_v20 = vsub.f32 1.0, %v1115_v17  ;;  %v1113_v45 = vmul.f32 %v3810_v41, %v1112_v40  ;;  %v1138_v52 = vand.u32 2147483647, %v1098_v18 }
 0x583   : > { %v1141_v54 = vor.u32 1.1754944e-38, %v1140_v50 }
 0x584   : > { %v1117_v21 = vmul.f32 %v3316_v15, %v1116_v20  ;;  %vm1139_vm5 = vcmp.eq.f32.partialorder %v1138_v52, 8.507059e+37 }
 0x586   : > { %v1118_v25 = vadd.f32 %v3316_v15, %v1117_v21 }
 0x587   : > { %v3318_v27 = vpop.eup %3317 }
 0x588   : > { %v1122_v29 = vsel %vm1121_vm8, %v3316_v15, %v1118_v25  ;;  %v1130_v31 = vmul.f32 %v3318_v27, %v1098_v18  ;;  %vm1135_vm13 = vweird.f32 %v3318_v27  ;;  %v1374_v55 = vpop.xlane.xlu0 %1373 }
 0x589   : > { %v1127_v37 = vsel %vm1124_vm11, %v1126_v33, %v1122_v29  ;;  %vm1136_vm4 = vmor %vm1134_vm14, %vm1135_vm13  ;;  %v1377_v10 = vsub.f32 %v3822_v51, %v1374_v55 }
 0x58a   : > { %v1131_v38 = vsub.f32 1.0, %v1130_v31  ;;  %v1128_v42 = vmul.f32 %v3814_v46, %v1127_v37  ;;  %v1218_v46 = vmul.f32 0.35355338, %v3806_v32 }
 0x58b   : > { %v1382_v12 = vmul.f32 1.442695, %v1377_v10 }
 0x58c   : > { %v1132_v43 = vmul.f32 %v3318_v27, %v1131_v38  ;;  %v1144_v47 = vpack.c.bf16 %v1128_v42, %v1113_v45  ;;  %v1225_v41 = vsel %vm927_vm1, %v1218_v46, -inf }
 0x58e   : > { %v1133_v48 = vadd.f32 %v3318_v27, %v1132_v43 }
 0x590   : > { %v1147_v44 = vpop.permute.xlu1 %1146  ;;  %v1137_v53 = vsel %vm1136_vm4, %v3318_v27, %v1133_v48 }
 0x591   : > { %1167 = vmatpush.bf16.msrb.mxu0 %v1147_v44  ;;  %v1142_v56 = vsel %vm1139_vm5, %v1141_v54, %v1137_v53 }
 0x592   : > { %v1143_v57 = vmul.f32 %v3818_v49, %v1142_v56 }
 0x594   : > { %3037 = vmatmul.msk.bf16.vlgmr.msrb.gmra.mxu0 %vm920_vm0, %v1144_v47  ;;  %v1145_v59 = vpack.c.bf16 %v1143_v57, %v1143_v57 }
 0x598   : > { %v3858_v60 = vpop.xlane.xlu0 %1388 }
 0x599   : > { %v1419_v43 = vand.u32 2147483648, %v3858_v60  ;;  %vm1413_vm12 = vweird.f32 %v3858_v60  ;;  %v1417_v57 = vand.u32 2147483647, %v3858_v60 }
 0x5a0   : > { %v3861_v61 = vpop.xlane.xlu2 %1238 }
 0x5a1   : > { %1226 = vmax.xlane.f32.xlu0 %v1225_v41  ;;  %vm1251_vm9 = vweird.f32 %v3861_v61  ;;  %v1257_v53 = vand.u32 2147483648, %v3861_v61  ;;  %v1255_v55 = vand.u32 2147483647, %v3861_v61 }
 0x5a4   : > { %3038 = vmatmul.msk.bf16.gmra.mxu0 %vm920_vm0, %v1145_v59 }
 0x5a8   : > { %v1294_v1 = vpop.permute.xlu2 %1293 }
 0x5ab   : > { %v1296_v62 = vpop.permute.xlu0 %1295 }
 0x5ac   : > { %v1305_v0 = vand.u32 %v1296_v62, %v3724_v39 }
 0x5ae   : > { %1313 = vmatpush.bf16.msrb.mxu1 %v1305_v0 }
 0x5b2   : > { %1314 = vmatpush.bf16.msrb.mxu1 %v1294_v1 }
 0x5bb   : > { %v1386_v24 = vpop.xlane.xlu1 %1385 }
 0x5bc   : > { %v1404_v47 = vand.u32 2147483648, %v1386_v24  ;;  %vm1398_vm11 = vweird.f32 %v1386_v24  ;;  %v1402_v54 = vand.u32 2147483647, %v1386_v24 }
 0x5be   : > { %vm1403_vm5 = vcmp.eq.f32.partialorder %v1402_v54, 8.507059e+37 }
 0x5d6   : > { %v1224_v2 = vpop.xlane.xlu0 %1223 }
 0x5d7   : > { %v1229_v32 = vsub.f32 %v3846_v6, %v1224_v2 }
 0x5d9   : > { %v1233_v49 = vmul.f32 1.442695, %v1229_v32 }
 0x5db   : > { %3319 = vpow2.f32 %v1233_v49  ;;  %v1258_v49 = vor.u32 1.1754944e-38, %v1257_v53 }
 0x5dc   : > { %3321 = vpow2.f32 %v1382_v12 }
 0x5e1   : > { %v3865_v3 = vpop.eup %3319 }
 0x5e2   : > { %v1240_v5 = vsel %vm920_vm0, %v3865_v3, 0.0  ;;  %v3873_v18 = vpop.eup %3321 }
 0x5e3   : > { %1241 = vadd.xlane.f32.xlu0 %v1240_v5  ;;  %v1390_v20 = vsel %vm927_vm1, %v3873_v18, 0.0 }
 0x5e9   : > { %v1443_v7 = vpop.permute.xlu0 %1442 }
 0x5ea   : > { %v1452_v8 = vand.u32 %v1443_v7, %v3724_v39 }
 0x5ec   : > { %1460 = vmatpush.bf16.msra.mxu0 %v1452_v8 }
 0x5f7   : > { %1440 = vrot.lane.b32.xlu0 %v3708_v30, %s4365_s23  ;;  %s4367_s23 = smov 8  }
 0x611   : > { %v1169_v11 = vpop.f32.mrf.mxu0 }
 0x614   : > { %v1227_v6 = vpop.xlane.xlu0 %1226 }
 0x615   : > { %v1230_v14 = vsub.f32 %v1218_v46, %v1227_v6 }
 0x617   : > { %v1235_v15 = vmul.f32 1.442695, %v1230_v14 }
 0x619   : > { %3323 = vpow2.f32 %v1235_v15  ;;  %v1171_v17 = vpop.f32.mrf.mxu0 }
 0x61a   : > { %v3239_v22 = vpack.i.bf16 %v1171_v17, %v1169_v11  ;;  %3325 = vrcp.f32 %v3861_v61 }
 0x61b   : > { %3327 = vrcp.f32 %v1386_v24 }
 0x61c   : > { %3329 = vrcp.f32 %v3858_v60 }
 0x61f   : > { %v3875_v19 = vpop.eup %3323 }
 0x620   : > { %v1243_v30 = vsel %vm927_vm1, %v3875_v19, 0.0  ;;  %v3326_v25 = vpop.eup %3325 }
 0x621   : > { %1391 = vadd.xlane.f32.xlu0 %v1390_v20  ;;  %1244 = vadd.xlane.f32.xlu1 %v1243_v30  ;;  %v1174_v51 = vpop.f32.mrf.mxu0  ;;  %v3328_v26 = vpop.eup %3327  ;;  %v1247_v35 = vmul.f32 %v3326_v25, %v3861_v61  ;;  %vm1252_vm6 = vweird.f32 %v3326_v25  ;;  %v1405_v61 = vor.u32 1.1754944e-38, %v1404_v47 }
 0x622   : > { %v3330_v27 = vpop.eup %3329  ;;  %v1394_v28 = vmul.f32 %v3328_v26, %v1386_v24  ;;  %vm1399_vm7 = vweird.f32 %v3328_v26  ;;  %vm3889_vm10 = vmor %vm1251_vm9, %vm1252_vm6  ;;  %vm1256_vm6 = vcmp.eq.f32.partialorder %v1255_v55, 8.507059e+37  ;;  %vm1418_vm9 = vcmp.eq.f32.partialorder %v1417_v57, 8.507059e+37 }
 0x623   : > { %v1409_v29 = vmul.f32 %v3330_v27, %v3858_v60  ;;  %v1248_v31 = vsub.f32 1.0, %v1247_v35  ;;  %vm1414_vm8 = vweird.f32 %v3330_v27  ;;  %vm3896_vm13 = vmor %vm1398_vm11, %vm1399_vm7  ;;  %v1420_v60 = vor.u32 1.1754944e-38, %v1419_v43 }
 0x624   : > { %v1395_v33 = vsub.f32 1.0, %v1394_v28  ;;  %vm3906_vm14 = vmor %vm1413_vm12, %vm1414_vm8 }
 0x625   : > { %v1410_v36 = vsub.f32 1.0, %v1409_v29  ;;  %v1249_v37 = vmul.f32 %v3326_v25, %v1248_v31 }
 0x626   : > { %v1396_v38 = vmul.f32 %v3328_v26, %v1395_v33 }
 0x627   : > { %v1411_v40 = vmul.f32 %v3330_v27, %v1410_v36  ;;  %v1250_v44 = vadd.f32 %v3326_v25, %v1249_v37 }
 0x628   : > { %v1397_v45 = vadd.f32 %v3328_v26, %v1396_v38 }
 0x629   : > { %v1176_v21 = vpop.f32.mrf.mxu0  ;;  %v1412_v50 = vadd.f32 %v3330_v27, %v1411_v40  ;;  %v1254_v41 = vsel %vm3889_vm10, %v3326_v25, %v1250_v44 }
 0x62a   : > { %v1401_v59 = vsel %vm3896_vm13, %v3328_v26, %v1397_v45  ;;  %v1259_v10 = vsel %vm1256_vm6, %v1258_v49, %v1254_v41 }
 0x62b   : > { %v1416_v32 = vsel %vm3906_vm14, %v3330_v27, %v1412_v50  ;;  %v1406_v5 = vsel %vm1403_vm5, %v1405_v61, %v1401_v59  ;;  %v1260_v15 = vmul.f32 %v3833_v63, %v1259_v10  ;;  %v3165_v59 = vld [vmem:[%s3621_s16 + $0x8] sm:$0xff] }
 0x62c   : > { %v1421_v11 = vsel %vm1418_vm9, %v1420_v60, %v1416_v32  ;;  %v1407_v6 = vmul.f32 %v3840_v4, %v1406_v5  ;;  %1553 = vmatpush.bf16.msra.mxu2 %v3165_v59  ;;  %vm1511_vm9 = vcmask 130048  }
 0x62d   : > { %v1422_v20 = vmul.f32 %v3828_v58, %v1421_v11 }
 0x62f   : > { %v1438_v21 = vpack.c.bf16 %v1422_v20, %v1407_v6 }
 0x63a   : > { %3240 = vrot.lane.b32.xlu1 %v3239_v22, %s4367_s23 }
 0x642   : > { %1479 = vrot.lane.b32.xlu1 %v1174_v51, %s4367_s23  ;;  %s3479_s23 = smov 16  }
 0x656   : > { %v1242_v34 = vpop.xlane.xlu0 %1241 }
 0x657   : > { %3331 = vrcp.f32 %v1242_v34  ;;  %v1272_v62 = vand.u32 2147483648, %v1242_v34  ;;  %v1270_v2 = vand.u32 2147483647, %v1242_v34  ;;  %vm1266_vm7 = vweird.f32 %v1242_v34 }
 0x659   : > { %v1273_v8 = vor.u32 1.1754944e-38, %v1272_v62  ;;  %vm1271_vm8 = vcmp.eq.f32.partialorder %v1270_v2, 8.507059e+37  ;;  %v3164_v62 = vld [vmem:[%s3621_s16] sm:$0xff] }
 0x65a   : > { %1554 = vmatpush.bf16.msra.mxu2 %v3164_v62 }
 0x65d   : > { %v3332_v42 = vpop.eup %3331 }
 0x65e   : > { %v1262_v48 = vmul.f32 %v3332_v42, %v1242_v34  ;;  %vm1267_vm4 = vweird.f32 %v3332_v42 }
 0x65f   : > { %vm1268_vm10 = vmor %vm1266_vm7, %vm1267_vm4 }
 0x660   : > { %v1263_v46 = vsub.f32 1.0, %v1262_v48 }
 0x662   : > { %v1264_v1 = vmul.f32 %v3332_v42, %v1263_v46 }
 0x664   : > { %v1265_v7 = vadd.f32 %v3332_v42, %v1264_v1 }
 0x666   : > { %v1269_v12 = vsel %vm1268_vm10, %v3332_v42, %v1265_v7  ;;  %vm1515_vm10 = vcmask 195584  }
 0x667   : > { %v1274_v14 = vsel %vm1271_vm8, %v1273_v8, %v1269_v12 }
 0x668   : > { %v1275_v17 = vmul.f32 %v3865_v3, %v1274_v14 }
 0x669   : > { %v1441_v30 = vpop.permute.xlu0 %1440 }
 0x66a   : > { %1461 = vmatpush.bf16.msra.mxu0 %v1441_v30  ;;  %v1291_v51 = vpack.c.bf16 %v1275_v17, %v1260_v15 }
 0x66c   : > { %3041 = vmatmul.msk.bf16.vlgmr.msrb.gmra.mxu1 %vm920_vm0, %v1291_v51 }
 0x66d   : > { %3045 = vmatmul.msk.bf16.vlgmr.msra.gmra.mxu0 %vm920_vm0, %v1438_v21 }
 0x694   : > { %v1392_v22 = vpop.xlane.xlu0 %1391  ;;  %v1245_v24 = vpop.xlane.xlu1 %1244 }
 0x695   : > { %3333 = vrcp.f32 %v1392_v22  ;;  %v1434_v3 = vand.u32 2147483648, %v1392_v22  ;;  %v1287_v28 = vand.u32 2147483648, %v1245_v24  ;;  %v1432_v29 = vand.u32 2147483647, %v1392_v22 }
 0x696   : > { %3335 = vrcp.f32 %v1245_v24  ;;  %v1285_v33 = vand.u32 2147483647, %v1245_v24  ;;  %vm1428_vm13 = vweird.f32 %v1392_v22  ;;  %vm1281_vm4 = vweird.f32 %v1245_v24 }
 0x697   : > { %v1435_v36 = vor.u32 1.1754944e-38, %v1434_v3  ;;  %v1288_v38 = vor.u32 1.1754944e-38, %v1287_v28  ;;  %vm1433_vm6 = vcmp.eq.f32.partialorder %v1432_v29, 8.507059e+37  ;;  %v3416_v3 = vld [vmem:[%s3661_s27 + $0x8] sm:$0xff] }
 0x698   : > { %vm1286_vm7 = vcmp.eq.f32.partialorder %v1285_v33, 8.507059e+37 }
 0x69b   : > { %v3334_v4 = vpop.eup %3333 }
 0x69c   : > { %v3336_v25 = vpop.eup %3335  ;;  %v1424_v26 = vmul.f32 %v3334_v4, %v1392_v22  ;;  %vm1429_vm11 = vweird.f32 %v3334_v4  ;;  %v3272_v22 = vld [vmem:[%s3626_s21] ss:$0 sm:$0xff] }
 0x69d   : > { %v1277_v63 = vmul.f32 %v3336_v25, %v1245_v24  ;;  %vm1282_vm12 = vweird.f32 %v3336_v25  ;;  %vm1430_vm14 = vmor %vm1428_vm13, %vm1429_vm11 }
 0x69e   : > { %v1425_v27 = vsub.f32 1.0, %v1424_v26  ;;  %vm1283_vm5 = vmor %vm1281_vm4, %vm1282_vm12 }
 0x69f   : > { %v1278_v35 = vsub.f32 1.0, %v1277_v63 }
 0x6a0   : > { %v1426_v58 = vmul.f32 %v3334_v4, %v1425_v27 }
 0x6a1   : > { %v1279_v31 = vmul.f32 %v3336_v25, %v1278_v35 }
 0x6a2   : > { %v1427_v34 = vadd.f32 %v3334_v4, %v1426_v58 }
 0x6a3   : > { %v1280_v37 = vadd.f32 %v3336_v25, %v1279_v31  ;;  %v3417_v31 = vld [vmem:[%s3661_s27 + $0x10] sm:$0x1] }
 0x6a4   : > { %v1431_v40 = vsel %vm1430_vm14, %v3334_v4, %v1427_v34 }
 0x6a5   : > { %v1284_v42 = vsel %vm1283_vm5, %v3336_v25, %v1280_v37  ;;  %v1436_v43 = vsel %vm1433_vm6, %v1435_v36, %v1431_v40  ;;  %v3415_v25 = vld [vmem:[%s3661_s27] sm:$0xff] }
 0x6a6   : > { %v1289_v44 = vsel %vm1286_vm7, %v1288_v38, %v1284_v42  ;;  %v1437_v45 = vmul.f32 %v3873_v18, %v1436_v43 }
 0x6a7   : > { %v1290_v47 = vmul.f32 %v3875_v19, %v1289_v44 }
 0x6a8   : > { %v1439_v48 = vpack.c.bf16 %v1437_v45, %v1437_v45 }
 0x6a9   : > { %v1292_v50 = vpack.c.bf16 %v1290_v47, %v1290_v47 }
 0x6aa   : > { %3046 = vmatmul.msk.bf16.gmra.mxu0 %vm920_vm0, %v1439_v48 }
 0x6ab   : > { %3042 = vmatmul.msk.bf16.gmra.mxu1 %vm920_vm0, %v1292_v50 }
 0x6ac   : > { %v3241_v61 = vpop.permute.xlu1 %3240 }
 0x6ad   : > { %v3243_v1 = vunpack.i.h.bf16 %v3241_v61  ;;  %v3242_v2 = vunpack.i.l.bf16 %v3241_v61 }
 0x6af   : > { %v1509_v5 = vsel %vm886_vm15, %v3795_v13, %v3243_v1  ;;  %v1508_v7 = vsel %vm886_vm15, %v3792_v9, %v3242_v2 }
 0x6b4   : > { %v1480_v17 = vpop.permute.xlu1 %1479 }
 0x6b5   : > { %v1510_v9 = vsel %vm886_vm15, %v3798_v16, %v1480_v17 }
 0x6e9   : > { %v1316_v52 = vpop.f32.mrf.mxu1 }
 0x6ea   : > { %v1463_v53 = vpop.f32.mrf.mxu0 }
 0x6f1   : > { %v1318_v54 = vpop.f32.mrf.mxu1 }
 0x6f2   : > { %v3244_v55 = vpack.i.bf16 %v1318_v54, %v1316_v52  ;;  %v1465_v56 = vpop.f32.mrf.mxu0 }
 0x6f3   : > { %v3249_v46 = vpack.i.bf16 %v1465_v56, %v1463_v53 }
 0x6f4   : > { %3245 = vrot.lane.b32.xlu2 %v3244_v55, %s3479_s23 }
 0x6fc   : > { %3250 = vrot.lane.b32.xlu2 %v3249_v46, %s3480_s17  ;;  %v3167_v46 = vld [vmem:[%s3641_s3 + $0x8] sm:$0xff] }
 0x6fd   : > { %1680 = vmatpush.bf16.msra.mxu1 %v3167_v46 }
 0x727   : > { %v1468_v18 = vpop.f32.mrf.mxu0 }
 0x728   : > { %v1321_v19 = vpop.f32.mrf.mxu1  ;;  %1503 = vrot.lane.b32.xlu1 %v1468_v18, %s3480_s17 }
 0x729   : > { %1491 = vrot.lane.b32.xlu2 %v1321_v19, %s3479_s23 }
 0x72f   : > { %v1470_v57 = vpop.f32.mrf.mxu0 }
 0x730   : > { %v1323_v41 = vpop.f32.mrf.mxu1 }
 0x731   : > { %v3166_v41 = vld [vmem:[%s3641_s3] sm:$0xff] }
 0x732   : > { %1681 = vmatpush.bf16.msra.mxu1 %v3166_v41 }
 0x74e   : > { %v3246_v0 = vpop.permute.xlu2 %3245 }
 0x74f   : > { %v3248_v32 = vunpack.i.h.bf16 %v3246_v0  ;;  %v3247_v60 = vunpack.i.l.bf16 %v3246_v0 }
 0x751   : > { %v1512_v11 = vsel %vm1511_vm9, %v1508_v7, %v3247_v60  ;;  %v1513_v12 = vsel %vm1511_vm9, %v1509_v5, %v3248_v32 }
 0x756   : > { %v3251_v49 = vpop.permute.xlu2 %3250 }
 0x757   : > { %v3253_v8 = vunpack.i.h.bf16 %v3251_v49  ;;  %v3252_v10 = vunpack.i.l.bf16 %v3251_v49 }
 0x759   : > { %v1516_v6 = vsel %vm1515_vm10, %v1512_v11, %v3252_v10  ;;  %v1517_v14 = vsel %vm1515_vm10, %v1513_v12, %v3253_v8 }
 0x75a   : > { %v1519_v15 = vpack.c.bf16 %v1517_v14, %v1516_v6  ;;  %v3273_v6 = vld [vmem:[%s3631_s1] ss:$0 sm:$0xff] }
 0x75c   : > { %3055 = vmatmul.msk.bf16.vlgmr.msra.gmra.mxu2 %vm738_vm2, %v1519_v15 }
 0x783   : > { %v1492_v13 = vpop.permute.xlu2 %1491 }
 0x784   : > { %v1514_v20 = vsel %vm1511_vm9, %v1510_v9, %v1492_v13  ;;  %v3274_v13 = vld [vmem:[%s3636_s18] ss:$0 sm:$0xff] }
 0x79a   : > { %v1504_v30 = vpop.permute.xlu1 %1503 }
 0x79b   : > { %v1518_v51 = vsel %vm1515_vm10, %v1514_v20, %v1504_v30 }
 0x79c   : > { %v1520_v21 = vpack.c.bf16 %v1518_v51, %v1518_v51 }
 0x79e   : > { %3056 = vmatmul.msk.bf16.gmra.mxu2 %vm738_vm2, %v1520_v21 }
 0x7df   : > { %v1556_v24 = vpop.f32.mrf.mxu2 }
 0x7e0   : > { %v1557_v4 = vadd.f32 %v3272_v22, %v1556_v24 }
 0x7e2   : > { %v3944_v26 = vadd.f32 %v3415_v25, %v1557_v4 }
 0x7e4   : > { %v1568_v63 = vsel %vm738_vm2, %v3944_v26, 0.0 }
 0x7e5   : > { %1569 = vadd.xlane.f32.xlu2 %v1568_v63 }
 0x7e7   : > { %v1558_v16 = vpop.f32.mrf.mxu2 }
 0x7e8   : > { %v1559_v27 = vadd.f32 %v3272_v22, %v1558_v16 }
 0x7ea   : > { %v3949_v35 = vadd.f32 %v3416_v3, %v1559_v27 }
 0x7ec   : > { %v1571_v58 = vsel %vm738_vm2, %v3949_v35, 0.0 }
 0x7ed   : > { %1572 = vadd.xlane.f32.xlu0 %v1571_v58 }
 0x821   : > { %v1561_v28 = vpop.f32.mrf.mxu2 }
 0x822   : > { %v1562_v29 = vadd.f32 %v3272_v22, %v1561_v28 }
 0x824   : > { %v3954_v33 = vadd.f32 %v3417_v31, %v1562_v29 }
 0x826   : > { %v1574_v34 = vsel %vm745_vm3, %v3954_v33, 0.0 }
 0x827   : > { %1575 = vadd.xlane.f32.xlu1 %v1574_v34 }
 0x829   : > { %v1563_v36 = vpop.f32.mrf.mxu2 }
 0x858   : > { %v1570_v37 = vpop.xlane.xlu2 %1569 }
 0x859   : > { %v1577_v38 = vmul.f32 %v1570_v37, %v3685_v23 }
 0x85b   : > { %v1580_v40 = vsub.f32 %v3944_v26, %v1577_v38  ;;  %v3171_v38 = vld [vmem:[%s3651_s19 + $0x18] sm:$0xff] }
 0x85c   : > { %1768 = vmatpush.bf16.msra.mxu3 %v3171_v38 }
 0x85d   : > { %v1583_v42 = vmul.f32 %v1580_v40, %v1580_v40 }
 0x85f   : > { %v1586_v43 = vsel %vm738_vm2, %v1583_v42, 0.0  ;;  %v3169_v42 = vld [vmem:[%s3651_s19 + $0x8] sm:$0xff] }
 0x860   : > { %v1573_v44 = vpop.xlane.xlu0 %1572  ;;  %1587 = vadd.xlane.f32.xlu0 %v1586_v43  ;;  %v3168_v43 = vld [vmem:[%s3651_s19] sm:$0xff] }
 0x861   : > { %v1578_v45 = vmul.f32 %v1573_v44, %v3685_v23  ;;  %v3275_v44 = vld [vmem:[%s3646_s4] ss:$0 sm:$0xff] }
 0x863   : > { %v1581_v47 = vsub.f32 %v3949_v35, %v1578_v45 }
 0x865   : > { %v1584_v48 = vmul.f32 %v1581_v47, %v1581_v47 }
 0x867   : > { %v1589_v50 = vsel %vm738_vm2, %v1584_v48, 0.0 }
 0x868   : > { %1590 = vadd.xlane.f32.xlu0 %v1589_v50 }
 0x89a   : > { %v1576_v52 = vpop.xlane.xlu1 %1575 }
 0x89b   : > { %v1579_v53 = vmul.f32 %v1576_v52, %v3685_v23 }
 0x89d   : > { %v1582_v54 = vsub.f32 %v3954_v33, %v1579_v53 }
 0x89f   : > { %v1585_v55 = vmul.f32 %v1582_v54, %v1582_v54 }
 0x8a1   : > { %v1592_v56 = vsel %vm745_vm3, %v1585_v55, 0.0 }
 0x8a2   : > { %1593 = vadd.xlane.f32.xlu0 %v1592_v56 }
 0x8d3   : > { %v1588_v18 = vpop.xlane.xlu0 %1587 }
 0x8d4   : > { %v1595_v19 = vmul.f32 %v1588_v18, %v3685_v23 }
 0x8d6   : > { %v1598_v57 = vadd.f32 1e-12, %v1595_v19 }
 0x8d8   : > { %3337 = vrsqrt.f32 %v1598_v57  ;;  %vm1607_vm11 = vweird.f32 %v1598_v57 }
 0x8db   : > { %v1591_v59 = vpop.xlane.xlu0 %1590 }
 0x8dc   : > { %v1596_v62 = vmul.f32 %v1591_v59, %v3685_v23 }
 0x8de   : > { %v3338_v0 = vpop.eup %3337  ;;  %v1599_v61 = vadd.f32 1e-12, %v1596_v62 }
 0x8df   : > { %v1602_v1 = vmul.f32 %v3338_v0, %v1598_v57  ;;  %vm1608_vm8 = vweird.f32 %v3338_v0 }
 0x8e0   : > { %3339 = vrsqrt.f32 %v1599_v61  ;;  %vm1609_vm12 = vmor %vm1607_vm11, %vm1608_vm8  ;;  %vm1617_vm14 = vweird.f32 %v1599_v61  ;;  %vm1757_vm8 = vcmask 523264  }
 0x8e1   : > { %v1603_v2 = vmul.f32 %v3338_v0, %v1602_v1 }
 0x8e3   : > { %v1604_v32 = vmul.f32 0.5, %v1603_v2 }
 0x8e5   : > { %v1605_v60 = vsub.f32 1.5, %v1604_v32 }
 0x8e6   : > { %v3340_v49 = vpop.eup %3339 }
 0x8e7   : > { %v1606_v5 = vmul.f32 %v3338_v0, %v1605_v60  ;;  %v1612_v7 = vmul.f32 %v3340_v49, %v1599_v61  ;;  %vm1618_vm13 = vweird.f32 %v3340_v49 }
 0x8e8   : > { %vm1619_vm4 = vmor %vm1617_vm14, %vm1618_vm13 }
 0x8e9   : > { %v1613_v8 = vmul.f32 %v3340_v49, %v1612_v7  ;;  %v1610_v10 = vsel %vm1609_vm12, %v3338_v0, %v1606_v5 }
 0x8ea   : > { %v1631_v14 = vmul.f32 %v1610_v10, %v1580_v40  ;;  %v3170_v40 = vld [vmem:[%s3651_s19 + $0x10] sm:$0xff] }
 0x8eb   : > { %v1614_v11 = vmul.f32 0.5, %v1613_v8  ;;  %1769 = vmatpush.bf16.msra.mxu3 %v3170_v40 }
 0x8ec   : > { %v1637_v9 = vmul.f32 %v3273_v6, %v1631_v14 }
 0x8ed   : > { %v1615_v12 = vsub.f32 1.5, %v1614_v11 }
 0x8ee   : > { %v1643_v51 = vadd.f32 %v3274_v13, %v1637_v9 }
 0x8ef   : > { %v1616_v15 = vmul.f32 %v3340_v49, %v1615_v12  ;;  %1770 = vmatpush.bf16.msra.mxu3 %v3169_v42 }
 0x8f1   : > { %v1620_v17 = vsel %vm1619_vm4, %v3340_v49, %v1616_v15 }
 0x8f2   : > { %v1632_v20 = vmul.f32 %v1620_v17, %v1581_v47 }
 0x8f3   : > { %1771 = vmatpush.bf16.msra.mxu3 %v3168_v43 }
 0x8f4   : > { %v1638_v30 = vmul.f32 %v3273_v6, %v1632_v20 }
 0x8f6   : > { %v1644_v21 = vadd.f32 %v3274_v13, %v1638_v30  ;;  %v3276_v30 = vld [vmem:[%s3656_s22] ss:$0 sm:$0xff] }
 0x8f8   : > { %v1646_v22 = vpack.c.bf16 %v1644_v21, %v1643_v51 }
 0x8fa   : > { %3065 = vmatmul.msk.bf16.vlgmr.msra.gmra.mxu1 %vm738_vm2, %v1646_v22 }
 0x915   : > { %v1594_v24 = vpop.xlane.xlu0 %1593 }
 0x916   : > { %v1597_v4 = vmul.f32 %v1594_v24, %v3685_v23 }
 0x918   : > { %v1600_v25 = vadd.f32 1e-12, %v1597_v4 }
 0x91a   : > { %3341 = vrsqrt.f32 %v1600_v25  ;;  %vm1627_vm6 = vweird.f32 %v1600_v25 }
 0x920   : > { %v3342_v63 = vpop.eup %3341 }
 0x921   : > { %v1622_v16 = vmul.f32 %v3342_v63, %v1600_v25  ;;  %vm1628_vm5 = vweird.f32 %v3342_v63 }
 0x922   : > { %vm1629_vm7 = vmor %vm1627_vm6, %vm1628_vm5 }
 0x923   : > { %v1623_v27 = vmul.f32 %v3342_v63, %v1622_v16 }
 0x925   : > { %v1624_v3 = vmul.f32 0.5, %v1623_v27  ;;  %v3086_v27 = vld [vmem:[%s3661_s27 + $0x20] sm:$0xff] }
 0x927   : > { %v1625_v58 = vsub.f32 1.5, %v1624_v3  ;;  %v1795_v3 = vsel %vm738_vm2, %v3086_v27, 0.0 }
 0x928   : > { %1796 = vadd.xlane.f32.xlu2 %v1795_v3 }
 0x929   : > { %v1626_v28 = vmul.f32 %v3342_v63, %v1625_v58 }
 0x92b   : > { %v1630_v29 = vsel %vm1629_vm7, %v3342_v63, %v1626_v28  ;;  %v3085_v63 = vld [vmem:[%s3661_s27 + $0x18] sm:$0xff] }
 0x92c   : > { %v1633_v31 = vmul.f32 %v1630_v29, %v1582_v54  ;;  %v1792_v16 = vsel %vm738_vm2, %v3085_v63, 0.0 }
 0x92d   : > { %1793 = vadd.xlane.f32.xlu0 %v1792_v16 }
 0x92e   : > { %v1639_v34 = vmul.f32 %v3273_v6, %v1633_v31  ;;  %v3087_v31 = vld [vmem:[%s3661_s27 + $0x28] sm:$0x1] }
 0x930   : > { %v1645_v36 = vadd.f32 %v3274_v13, %v1639_v34 }
 0x932   : > { %v1647_v37 = vpack.c.bf16 %v1645_v36, %v1645_v36 }
 0x934   : > { %3066 = vmatmul.msk.bf16.gmra.mxu1 %vm738_vm2, %v1647_v37 }
 0x977   : > { %v1683_v45 = vpop.f32.mrf.mxu1 }
 0x978   : > { %v1684_v47 = vadd.f32 %v3275_v44, %v1683_v45 }
 0x97a   : > { %v1695_v48 = vmul.f32 0.044715, %v1684_v47  ;;  %v1692_v61 = vmul.f32 0.5, %v1684_v47 }
 0x97c   : > { %v1698_v50 = vmul.f32 %v1695_v48, %v1684_v47 }
 0x97e   : > { %v1701_v52 = vmul.f32 %v1698_v50, %v1684_v47 }
 0x97f   : > { %v1685_v53 = vpop.f32.mrf.mxu1 }
 0x980   : > { %v1704_v54 = vadd.f32 %v1701_v52, %v1684_v47  ;;  %v1686_v55 = vadd.f32 %v3275_v44, %v1685_v53 }
 0x982   : > { %v1696_v56 = vmul.f32 0.044715, %v1686_v55  ;;  %v1707_v46 = vmul.f32 0.7978846, %v1704_v54  ;;  %v1693_v1 = vmul.f32 0.5, %v1686_v55  ;;  %v3173_v54 = vld [vmem:[%s3611_s2 + $0x8] sm:$0xff] }
 0x983   : > { %1898 = vmatpush.bf16.msrb.mxu0 %v3173_v54 }
 0x984   : > { %v1699_v18 = vmul.f32 %v1696_v56, %v1686_v55  ;;  %3343 = vtanh.f32 %v1707_v46 }
 0x986   : > { %v1702_v19 = vmul.f32 %v1699_v18, %v1686_v55  ;;  %v3172_v18 = vld [vmem:[%s3611_s2] sm:$0xff]  ;;  %s4408_s2 = smov 48  }
 0x987   : > { %1899 = vmatpush.bf16.msrb.mxu0 %v3172_v18 }
 0x988   : > { %v1705_v57 = vadd.f32 %v1702_v19, %v1686_v55 }
 0x98a   : > { %v1708_v41 = vmul.f32 0.7978846, %v1705_v57  ;;  %v3344_v59 = vpop.eup %3343 }
 0x98b   : > { %v1713_v62 = vadd.f32 1.0, %v3344_v59 }
 0x98c   : > { %3345 = vtanh.f32 %v1708_v41 }
 0x98d   : > { %v1716_v32 = vmul.f32 %v1713_v62, %v1692_v61 }
 0x992   : > { %v3346_v0 = vpop.eup %3345 }
 0x993   : > { %v1714_v2 = vadd.f32 1.0, %v3346_v0 }
 0x995   : > { %v1717_v60 = vmul.f32 %v1714_v2, %v1693_v1 }
 0x997   : > { %v1719_v49 = vpack.c.bf16 %v1717_v60, %v1716_v32 }
 0x999   : > { %3083 = vmatmul.msk.bf16.vlgmr.msra.gmra.mxu3 %vm1757_vm8, %v1719_v49 }
 0x99b   : > { %v1797_v42 = vpop.xlane.xlu2 %1796 }
 0x99c   : > { %v1802_v43 = vmul.f32 %v1797_v42, %v3685_v23 }
 0x9a0   : > { %v1794_v34 = vpop.xlane.xlu0 %1793 }
 0x9a1   : > { %v1801_v36 = vmul.f32 %v1794_v34, %v3685_v23 }
 0x9a3   : > { %v1804_v37 = vsub.f32 %v3085_v63, %v1801_v36 }
 0x9a5   : > { %v1807_v38 = vmul.f32 %v1804_v37, %v1804_v37 }
 0x9a7   : > { %v1810_v40 = vsel %vm738_vm2, %v1807_v38, 0.0 }
 0x9a8   : > { %1811 = vadd.xlane.f32.xlu2 %v1810_v40 }
 0x9b1   : > { %v1688_v5 = vpop.f32.mrf.mxu1 }
 0x9b2   : > { %v1689_v7 = vadd.f32 %v3275_v44, %v1688_v5 }
 0x9b4   : > { %v1697_v8 = vmul.f32 0.044715, %v1689_v7  ;;  %v1694_v17 = vmul.f32 0.5, %v1689_v7 }
 0x9b6   : > { %v1700_v10 = vmul.f32 %v1697_v8, %v1689_v7 }
 0x9b8   : > { %v1703_v11 = vmul.f32 %v1700_v10, %v1689_v7 }
 0x9b9   : > { %v1690_v12 = vpop.f32.mrf.mxu1 }
 0x9ba   : > { %v1706_v6 = vadd.f32 %v1703_v11, %v1689_v7 }
 0x9bc   : > { %v1709_v14 = vmul.f32 0.7978846, %v1706_v6  ;;  %v3418_v6 = vld [vmem:[%s3598_s29] ss:$0 sm:$0xff]  ;;  %s4409_s29 = smov 40  }
 0x9be   : > { %3347 = vtanh.f32 %v1709_v14 }
 0x9c4   : > { %v3348_v15 = vpop.eup %3347 }
 0x9c5   : > { %v1715_v13 = vadd.f32 1.0, %v3348_v15 }
 0x9c7   : > { %v1718_v9 = vmul.f32 %v1715_v13, %v1694_v17  ;;  %v3419_v13 = vld [vmem:[%s4399_s20] ss:$0 sm:$0xff] }
 0x9c9   : > { %v1720_v20 = vpack.c.bf16 %v1718_v9, %v1718_v9 }
 0x9cb   : > { %3084 = vmatmul.msk.bf16.gmra.mxu3 %vm1757_vm8, %v1720_v20 }
 0xa1b   : > { %v1812_v55 = vpop.xlane.xlu2 %1811 }
 0xa1c   : > { %v1773_v51 = vpop.f32.mrf.mxu3  ;;  %v1819_v56 = vmul.f32 %v1812_v55, %v3685_v23 }
 0xa1d   : > { %v1774_v21 = vadd.f32 %v3276_v30, %v1773_v51 }
 0xa1e   : > { %v1822_v46 = vadd.f32 1e-12, %v1819_v56 }
 0xa1f   : > { %v1782_v22 = vadd.f32 %v1774_v21, %v3944_v26 }
 0xa20   : > { %3349 = vrsqrt.f32 %v1822_v46  ;;  %vm1831_vm12 = vweird.f32 %v1822_v46 }
 0xa21   : > { %1785 = vst.msk [vmem:[%s3661_s27] sm:$0xff] %vm738_vm2, %v1782_v22 }
 0xa24   : > { %v1775_v24 = vpop.f32.mrf.mxu3 }
 0xa25   : > { %v1776_v4 = vadd.f32 %v3276_v30, %v1775_v24 }
 0xa26   : > { %v3350_v41 = vpop.eup %3349 }
 0xa27   : > { %v1783_v25 = vadd.f32 %v1776_v4, %v3949_v35  ;;  %v1798_v35 = vsel %vm745_vm3, %v3087_v31, 0.0  ;;  %v1826_v62 = vmul.f32 %v3350_v41, %v1822_v46  ;;  %vm1832_vm11 = vweird.f32 %v3350_v41 }
 0xa28   : > { %1799 = vadd.xlane.f32.xlu0 %v1798_v35  ;;  %vm1833_vm13 = vmor %vm1831_vm12, %vm1832_vm11  ;;  %v3277_v35 = vld [vmem:[%s3616_s28] ss:$0 sm:$0xff]  ;;  %s4412_s28 = smov 8  }
 0xa29   : > { %1786 = vst.msk [vmem:[%s3661_s27 + $0x8] sm:$0xff] %vm738_vm2, %v1783_v25  ;;  %v1827_v0 = vmul.f32 %v3350_v41, %v1826_v62 }
 0xa2b   : > { %v1828_v61 = vmul.f32 0.5, %v1827_v0 }
 0xa2d   : > { %v1829_v1 = vsub.f32 1.5, %v1828_v61 }
 0xa2f   : > { %v1830_v32 = vmul.f32 %v3350_v41, %v1829_v1 }
 0xa31   : > { %v1834_v5 = vsel %vm1833_vm13, %v3350_v41, %v1830_v32 }
 0xa32   : > { %v1855_v10 = vmul.f32 %v1834_v5, %v1804_v37 }
 0xa34   : > { %v1858_v14 = vmul.f32 %v3418_v6, %v1855_v10 }
 0xa36   : > { %v1861_v9 = vadd.f32 %v3419_v13, %v1858_v14 }
 0xa4e   : > { %v1778_v58 = vpop.f32.mrf.mxu3 }
 0xa4f   : > { %v1779_v28 = vadd.f32 %v3276_v30, %v1778_v58 }
 0xa51   : > { %v1784_v26 = vadd.f32 %v1779_v28, %v3954_v33  ;;  %v1805_v33 = vsub.f32 %v3086_v27, %v1802_v43 }
 0xa53   : > { %1787 = vst.msk [vmem:[%s3661_s27 + $0x10] sm:$0x1] %vm745_vm3, %v1784_v26  ;;  %v1808_v44 = vmul.f32 %v1805_v33, %v1805_v33 }
 0xa55   : > { %v1813_v45 = vsel %vm738_vm2, %v1808_v44, 0.0 }
 0xa56   : > { %v1780_v29 = vpop.f32.mrf.mxu3  ;;  %1814 = vadd.xlane.f32.xlu1 %v1813_v45 }
 0xa9b   : > { %v1800_v47 = vpop.xlane.xlu0 %1799 }
 0xa9c   : > { %v1803_v48 = vmul.f32 %v1800_v47, %v3685_v23 }
 0xa9e   : > { %v1806_v50 = vsub.f32 %v3087_v31, %v1803_v48 }
 0xaa0   : > { %v1809_v52 = vmul.f32 %v1806_v50, %v1806_v50 }
 0xaa2   : > { %v1816_v53 = vsel %vm745_vm3, %v1809_v52, 0.0 }
 0xaa3   : > { %1817 = vadd.xlane.f32.xlu0 %v1816_v53 }
 0xac9   : > { %v1815_v19 = vpop.xlane.xlu1 %1814 }
 0xaca   : > { %v1820_v57 = vmul.f32 %v1815_v19, %v3685_v23 }
 0xacc   : > { %v1823_v59 = vadd.f32 1e-12, %v1820_v57 }
 0xace   : > { %3351 = vrsqrt.f32 %v1823_v59  ;;  %vm1841_vm4 = vweird.f32 %v1823_v59 }
 0xad4   : > { %v3352_v2 = vpop.eup %3351 }
 0xad5   : > { %v1836_v60 = vmul.f32 %v3352_v2, %v1823_v59  ;;  %vm1842_vm14 = vweird.f32 %v3352_v2 }
 0xad6   : > { %vm1843_vm5 = vmor %vm1841_vm4, %vm1842_vm14 }
 0xad7   : > { %v1837_v49 = vmul.f32 %v3352_v2, %v1836_v60 }
 0xad9   : > { %v1838_v7 = vmul.f32 0.5, %v1837_v49 }
 0xadb   : > { %v1839_v8 = vsub.f32 1.5, %v1838_v7 }
 0xadd   : > { %v1840_v11 = vmul.f32 %v3352_v2, %v1839_v8 }
 0xadf   : > { %v1844_v12 = vsel %vm1843_vm5, %v3352_v2, %v1840_v11 }
 0xae0   : > { %v1856_v15 = vmul.f32 %v1844_v12, %v1805_v33 }
 0xae2   : > { %v1859_v17 = vmul.f32 %v3418_v6, %v1856_v15 }
 0xae4   : > { %v1862_v20 = vadd.f32 %v3419_v13, %v1859_v17 }
 0xae6   : > { %v1864_v30 = vpack.c.bf16 %v1862_v20, %v1861_v9 }
 0xae8   : > { %3096 = vmatmul.msk.bf16.vlgmr.msrb.gmra.mxu0 %vm738_vm2, %v1864_v30 }
 0xb16   : > { %v1818_v51 = vpop.xlane.xlu0 %1817 }
 0xb17   : > { %v1821_v21 = vmul.f32 %v1818_v51, %v3685_v23 }
 0xb19   : > { %v1824_v22 = vadd.f32 1e-12, %v1821_v21 }
 0xb1b   : > { %3353 = vrsqrt.f32 %v1824_v22  ;;  %vm1851_vm7 = vweird.f32 %v1824_v22 }
 0xb21   : > { %v3354_v24 = vpop.eup %3353 }
 0xb22   : > { %v1846_v4 = vmul.f32 %v3354_v24, %v1824_v22  ;;  %vm1852_vm6 = vweird.f32 %v3354_v24 }
 0xb23   : > { %vm1853_vm11 = vmor %vm1851_vm7, %vm1852_vm6 }
 0xb24   : > { %v1847_v25 = vmul.f32 %v3354_v24, %v1846_v4 }
 0xb26   : > { %v1848_v63 = vmul.f32 0.5, %v1847_v25 }
 0xb28   : > { %v1849_v16 = vsub.f32 1.5, %v1848_v63 }
 0xb2a   : > { %v1850_v27 = vmul.f32 %v3354_v24, %v1849_v16 }
 0xb2c   : > { %v1854_v3 = vsel %vm1853_vm11, %v3354_v24, %v1850_v27 }
 0xb2d   : > { %v1857_v58 = vmul.f32 %v1854_v3, %v1806_v50 }
 0xb2f   : > { %v1860_v28 = vmul.f32 %v3418_v6, %v1857_v58 }
 0xb31   : > { %v1863_v26 = vadd.f32 %v3419_v13, %v1860_v28 }
 0xb33   : > { %v1865_v29 = vpack.c.bf16 %v1863_v26, %v1863_v26 }
 0xb35   : > { %3097 = vmatmul.msk.bf16.gmra.mxu0 %vm738_vm2, %v1865_v29 }
 0xb65   : > { %v1901_v31 = vpop.f32.mrf.mxu0 }
 0xb66   : > { %v1902_v34 = vadd.f32 %v3277_v35, %v1901_v31 }
 0xb68   : > { %v1910_v37 = vpack.c.bf16 %v1902_v34, %v1902_v34 }
 0xb6a   : > { %v1916_v42 = vunpack.c.l.b16 %v1910_v37 }
 0xb6d   : > { %v1903_v36 = vpop.f32.mrf.mxu0 }
 0xb6e   : > { %v1904_v38 = vadd.f32 %v3277_v35, %v1903_v36 }
 0xb70   : > { %v1911_v40 = vpack.c.bf16 %v1904_v38, %v1904_v38 }
 0xb72   : > { %v1917_v43 = vunpack.c.l.b16 %v1911_v40 }
 0xb74   : > { %v4015_v33 = vpack.c.b16 %v1917_v43, %v1916_v42 }
 0xb76   : > { %1921 = vrot.lane.b32.xlu0 %v4015_v33, %s3467_s5 }
 0xbb2   : > { %v1906_v44 = vpop.f32.mrf.mxu0 }
 0xbb3   : > { %v1907_v45 = vadd.f32 %v3277_v35, %v1906_v44 }
 0xbb5   : > { %v1912_v47 = vpack.c.bf16 %v1907_v45, %v1907_v45 }
 0xbb7   : > { %v1918_v48 = vunpack.c.l.b16 %v1912_v47 }
 0xbb9   : > { %v4019_v50 = vpack.c.b16 %v1918_v48, %v1918_v48 }
 0xbba   : > { %v1908_v52 = vpop.f32.mrf.mxu0 }
 0xbbb   : > { %2217 = vrot.lane.b32.xlu0 %v4019_v50, %s3470_s6  ;;  %2070 = vrot.lane.b32.xlu1 %v4019_v50, %s3468_s24 }
 0xbbc   : > { %1923 = vrot.lane.b32.xlu2 %v4019_v50, %s3467_s5 }
 0xbc3   : > { %2215 = vrot.lane.b32.xlu0 %v4015_v33, %s3470_s6  ;;  %2064 = vrot.lane.b32.xlu1 %v4015_v33, %s3471_s7 }
 0xbc4   : > { %2068 = vrot.lane.b32.xlu2 %v4015_v33, %s3468_s24 }
 0xbcb   : > { %2358 = vrot.lane.b32.xlu0 %v4015_v33, %s3473_s9  ;;  %2364 = vrot.lane.b32.xlu1 %v4019_v50, %s3472_s30 }
 0xbcc   : > { %2066 = vrot.lane.b32.xlu2 %v4019_v50, %s3471_s7 }
 0xbd3   : > { %2211 = vrot.lane.b32.xlu1 %v4015_v33, %s3474_s25 }
 0xbd4   : > { %2362 = vrot.lane.b32.xlu2 %v4015_v33, %s3472_s30 }
 0xbdb   : > { %2360 = vrot.lane.b32.xlu1 %v4019_v50, %s3473_s9 }
 0xbdc   : > { %2213 = vrot.lane.b32.xlu2 %v4019_v50, %s3474_s25 }
 0xbe8   : > { %v1922_v55 = vpop.permute.xlu0 %1921 }
 0xbe9   : > { %v1932_v56 = vsel %vm886_vm15, %v1922_v55, 0 }
 0xc16   : > { %v1924_v53 = vpop.permute.xlu2 %1923 }
 0xc17   : > { %v1935_v54 = vsel %vm886_vm15, %v1924_v53, 0 }
 0xc18   : > { %1943 = vmatpush.bf16.xpose.msrb.mxu2 %v1935_v54 }
 0xc1e   : > { %v2069_v41 = vpop.permute.xlu2 %2068 }
 0xc1f   : > { %v2079_v0 = vsel %vm886_vm15, %v2069_v41, 0 }
 0xc20   : > { %1944 = vmatpush.bf16.xpose.msrb.mxu2 %v1932_v56 }
 0xc26   : > { %v2067_v1 = vpop.permute.xlu2 %2066 }
 0xc27   : > { %3098 = vmatmul.msk.bf16.vlgmr.msrb.gmra.mxu2 %vm886_vm15, %v4015_v33 }
 0xc2d   : > { %v2071_v46 = vpop.permute.xlu1 %2070  ;;  %v2218_v18 = vpop.permute.xlu0 %2217 }
 0xc2e   : > { %v2082_v19 = vsel %vm886_vm15, %v2071_v46, 0  ;;  %v2229_v57 = vsel %vm886_vm15, %v2218_v18, 0  ;;  %v2363_v60 = vpop.permute.xlu2 %2362 }
 0xc2f   : > { %2090 = vmatpush.bf16.xpose.msrb.mxu3 %v2082_v19  ;;  %2237 = vmatpush.bf16.xpose.msra.mxu2 %v2229_v57  ;;  %v2373_v5 = vsel %vm886_vm15, %v2363_v60, 0 }
 0xc35   : > { %v2065_v59 = vpop.permute.xlu1 %2064  ;;  %v2216_v62 = vpop.permute.xlu0 %2215 }
 0xc36   : > { %v2226_v61 = vsel %vm886_vm15, %v2216_v62, 0  ;;  %v2214_v7 = vpop.permute.xlu2 %2213 }
 0xc37   : > { %3099 = vmatmul.msk.bf16.gmra.mxu2 %vm886_vm15, %v4019_v50  ;;  %2091 = vmatpush.bf16.xpose.msrb.mxu3 %v2079_v0 }
 0xc38   : > { %2238 = vmatpush.bf16.xpose.msra.mxu2 %v2226_v61 }
 0xc3d   : > { %v2365_v2 = vpop.permute.xlu1 %2364  ;;  %v2359_v8 = vpop.permute.xlu0 %2358 }
 0xc3e   : > { %v2376_v32 = vsel %vm886_vm15, %v2365_v2, 0  ;;  %3102 = vmatmul.msk.bf16.vlgmr.msrb.gmra.mxu3 %vm886_vm15, %v2065_v59 }
 0xc3f   : > { %2384 = vmatpush.bf16.xpose.msra.mxu3 %v2376_v32 }
 0xc45   : > { %v2212_v49 = vpop.permute.xlu1 %2211 }
 0xc47   : > { %3106 = vmatmul.msk.bf16.vlgmr.msra.gmra.mxu2 %vm886_vm15, %v2212_v49  ;;  %2385 = vmatpush.bf16.xpose.msra.mxu3 %v2373_v5 }
 0xc4d   : > { %v2361_v10 = vpop.permute.xlu1 %2360 }
 0xc4e   : > { %3103 = vmatmul.msk.bf16.gmra.mxu3 %vm886_vm15, %v2067_v1 }
 0xc57   : > { %3107 = vmatmul.msk.bf16.gmra.mxu2 %vm886_vm15, %v2214_v7 }
 0xc5e   : > { %3110 = vmatmul.msk.bf16.vlgmr.msra.gmra.mxu3 %vm886_vm15, %v2359_v8 }
 0xc6e   : > { %3111 = vmatmul.msk.bf16.gmra.mxu3 %vm886_vm15, %v2361_v10 }
 0xcaa   : > { %v1946_v11 = vpop.f32.mrf.mxu2 }
 0xcab   : > { %v1955_v12 = vmul.f32 0.35355338, %v1946_v11 }
 0xcad   : > { %v1958_v6 = vsel %vm920_vm0, %v1955_v12, -inf }
 0xcae   : > { %1959 = vmax.xlane.f32.xlu0 %v1958_v6 }
 0xcb2   : > { %v1948_v14 = vpop.f32.mrf.mxu2 }
 0xcb3   : > { %v1956_v15 = vmul.f32 0.35355338, %v1948_v14 }
 0xcb5   : > { %v1961_v17 = vsel %vm920_vm0, %v1956_v15, -inf }
 0xcb6   : > { %1962 = vmax.xlane.f32.xlu2 %v1961_v17 }
 0xcba   : > { %v1951_v13 = vpop.f32.mrf.mxu2 }
 0xcbb   : > { %v4081_v26 = vmul.f32 0.35355338, %v1951_v13 }
 0xcbd   : > { %v1964_v31 = vsel %vm927_vm1, %v4081_v26, -inf }
 0xcc1   : > { %v2093_v9 = vpop.f32.mrf.mxu3 }
 0xcc2   : > { %v4067_v20 = vmul.f32 0.35355338, %v2093_v9  ;;  %2181 = vrot.lane.b32.xlu0 %v4019_v50, %s3475_s26  ;;  %v1953_v30 = vpop.f32.mrf.mxu2 }
 0xcc4   : > { %v2105_v51 = vsel %vm920_vm0, %v4067_v20, -inf }
 0xcc5   : > { %2106 = vmax.xlane.f32.xlu1 %v2105_v51 }
 0xcc9   : > { %v2095_v21 = vpop.f32.mrf.mxu3 }
 0xcca   : > { %2032 = vrot.lane.b32.xlu0 %v4015_v33, %s3466_s0  ;;  %v2240_v22 = vpop.f32.mrf.mxu2  ;;  %v4079_v58 = vmul.f32 0.35355338, %v2095_v21 }
 0xccb   : > { %v4087_v35 = vmul.f32 0.35355338, %v2240_v22 }
 0xccc   : > { %v2108_v29 = vsel %vm920_vm0, %v4079_v58, -inf }
 0xccd   : > { %v2252_v37 = vsel %vm920_vm0, %v4087_v35, -inf }
 0xcce   : > { %2179 = vrot.lane.b32.xlu2 %v4015_v33, %s3475_s26 }
 0xcd1   : > { %v2098_v24 = vpop.f32.mrf.mxu3 }
 0xcd2   : > { %v2242_v4 = vpop.f32.mrf.mxu2  ;;  %v4097_v42 = vmul.f32 0.35355338, %v2098_v24 }
 0xcd3   : > { %v4089_v36 = vmul.f32 0.35355338, %v2242_v4 }
 0xcd4   : > { %v2111_v45 = vsel %vm927_vm1, %v4097_v42, -inf }
 0xcd5   : > { %v2255_v38 = vsel %vm920_vm0, %v4089_v36, -inf }
 0xcd9   : > { %v2100_v25 = vpop.f32.mrf.mxu3 }
 0xcda   : > { %v2245_v63 = vpop.f32.mrf.mxu2 }
 0xcdb   : > { %v4111_v53 = vmul.f32 0.35355338, %v2245_v63 }
 0xcdd   : > { %v2258_v54 = vsel %vm927_vm1, %v4111_v53, -inf }
 0xcde   : > { %2034 = vrot.lane.b32.xlu1 %v4019_v50, %s3466_s0 }
 0xce1   : > { %v2387_v16 = vpop.f32.mrf.mxu3 }
 0xce2   : > { %v2247_v27 = vpop.f32.mrf.mxu2  ;;  %v4105_v47 = vmul.f32 0.35355338, %v2387_v16 }
 0xce4   : > { %v2399_v52 = vsel %vm920_vm0, %v4105_v47, -inf }
 0xce9   : > { %v2389_v3 = vpop.f32.mrf.mxu3 }
 0xcea   : > { %v4095_v40 = vmul.f32 0.35355338, %v2389_v3 }
 0xcec   : > { %v2402_v43 = vsel %vm920_vm0, %v4095_v40, -inf }
 0xcf1   : > { %v2392_v28 = vpop.f32.mrf.mxu3 }
 0xcf2   : > { %v4101_v44 = vmul.f32 0.35355338, %v2392_v28 }
 0xcf4   : > { %2109 = vmax.xlane.f32.xlu0 %v2108_v29  ;;  %v2405_v48 = vsel %vm927_vm1, %v4101_v44, -inf }
 0xcf7   : > { %1965 = vmax.xlane.f32.xlu2 %v1964_v31 }
 0xcf9   : > { %v2394_v34 = vpop.f32.mrf.mxu3 }
 0xcfc   : > { %2253 = vmax.xlane.f32.xlu0 %v2252_v37 }
 0xcff   : > { %2256 = vmax.xlane.f32.xlu2 %v2255_v38 }
 0xd04   : > { %2403 = vmax.xlane.f32.xlu0 %v2402_v43 }
 0xd08   : > { %2112 = vmax.xlane.f32.xlu1 %v2111_v45 }
 0xd0c   : > { %2406 = vmax.xlane.f32.xlu0 %v2405_v48 }
 0xd10   : > { %2400 = vmax.xlane.f32.xlu1 %v2399_v52 }
 0xd18   : > { %2259 = vmax.xlane.f32.xlu1 %v2258_v54 }
 0xd21   : > { %v1960_v55 = vpop.xlane.xlu0 %1959 }
 0xd22   : > { %v1967_v56 = vsub.f32 %v1955_v12, %v1960_v55 }
 0xd24   : > { %v1970_v46 = vmul.f32 1.442695, %v1967_v56 }
 0xd26   : > { %3355 = vpow2.f32 %v1970_v46 }
 0xd29   : > { %v1963_v18 = vpop.xlane.xlu2 %1962 }
 0xd2a   : > { %v1968_v19 = vsub.f32 %v1956_v15, %v1963_v18 }
 0xd2c   : > { %v4115_v57 = vpop.eup %3355  ;;  %v1972_v41 = vmul.f32 1.442695, %v1968_v19 }
 0xd2d   : > { %v1976_v59 = vsel %vm920_vm0, %v4115_v57, 0.0 }
 0xd2e   : > { %3357 = vpow2.f32 %v1972_v41  ;;  %1977 = vadd.xlane.f32.xlu2 %v1976_v59 }
 0xd31   : > { %v2180_v60 = vpop.permute.xlu2 %2179 }
 0xd34   : > { %v4119_v62 = vpop.eup %3357  ;;  %v2182_v0 = vpop.permute.xlu0 %2181 }
 0xd35   : > { %v2191_v61 = vand.u32 %v2182_v0, %v3724_v39  ;;  %v1979_v1 = vsel %vm920_vm0, %v4119_v62, 0.0 }
 0xd36   : > { %1980 = vadd.xlane.f32.xlu1 %v1979_v1 }
 0xd37   : > { %2199 = vmatpush.bf16.msra.mxu0 %v2191_v61 }
 0xd38   : > { %v2107_v2 = vpop.xlane.xlu1 %2106 }
 0xd39   : > { %v2114_v32 = vsub.f32 %v4067_v20, %v2107_v2 }
 0xd3b   : > { %v2117_v49 = vmul.f32 1.442695, %v2114_v32  ;;  %2200 = vmatpush.bf16.msra.mxu0 %v2180_v60 }
 0xd3c   : > { %v2033_v11 = vpop.permute.xlu0 %2032 }
 0xd3d   : > { %3359 = vpow2.f32 %v2117_v49 }
 0xd43   : > { %v4125_v5 = vpop.eup %3359 }
 0xd44   : > { %v2123_v7 = vsel %vm920_vm0, %v4125_v5, 0.0 }
 0xd45   : > { %2124 = vadd.xlane.f32.xlu0 %v2123_v7 }
 0xd50   : > { %v2035_v8 = vpop.permute.xlu1 %2034 }
 0xd51   : > { %v2044_v10 = vand.u32 %v2035_v8, %v3724_v39 }
 0xd53   : > { %2052 = vmatpush.bf16.msrb.mxu1 %v2044_v10 }
 0xd57   : > { %2053 = vmatpush.bf16.msrb.mxu1 %v2033_v11 }
 0xd59   : > { %2328 = vrot.lane.b32.xlu0 %v4019_v50, %s4408_s2 }
 0xd67   : > { %v2110_v12 = vpop.xlane.xlu0 %2109 }
 0xd68   : > { %v2115_v6 = vsub.f32 %v4079_v58, %v2110_v12 }
 0xd6a   : > { %v2119_v14 = vmul.f32 1.442695, %v2115_v6  ;;  %v1966_v15 = vpop.xlane.xlu2 %1965 }
 0xd6b   : > { %v1969_v17 = vsub.f32 %v4081_v26, %v1966_v15 }
 0xd6c   : > { %3361 = vpow2.f32 %v2119_v14 }
 0xd6d   : > { %v1974_v13 = vmul.f32 1.442695, %v1969_v17 }
 0xd6f   : > { %v2254_v9 = vpop.xlane.xlu0 %2253  ;;  %3363 = vpow2.f32 %v1974_v13 }
 0xd70   : > { %v2261_v28 = vsub.f32 %v4087_v35, %v2254_v9 }
 0xd72   : > { %v4134_v20 = vpop.eup %3361  ;;  %v2257_v30 = vpop.xlane.xlu2 %2256  ;;  %v2264_v31 = vmul.f32 1.442695, %v2261_v28 }
 0xd73   : > { %v2262_v51 = vsub.f32 %v4089_v36, %v2257_v30  ;;  %v2126_v21 = vsel %vm920_vm0, %v4134_v20, 0.0 }
 0xd74   : > { %2127 = vadd.xlane.f32.xlu2 %v2126_v21 }
 0xd75   : > { %v2266_v22 = vmul.f32 1.442695, %v2262_v51  ;;  %v4139_v4 = vpop.eup %3363 }
 0xd76   : > { %v1982_v27 = vsel %vm927_vm1, %v4139_v4, 0.0 }
 0xd77   : > { %3365 = vpow2.f32 %v2266_v22  ;;  %v2404_v24 = vpop.xlane.xlu0 %2403 }
 0xd78   : > { %v2409_v25 = vsub.f32 %v4095_v40, %v2404_v24 }
 0xd7a   : > { %v2413_v63 = vmul.f32 1.442695, %v2409_v25 }
 0xd7b   : > { %v2113_v16 = vpop.xlane.xlu1 %2112 }
 0xd7c   : > { %v2116_v3 = vsub.f32 %v4097_v42, %v2113_v16  ;;  %1983 = vadd.xlane.f32.xlu2 %v1982_v27  ;;  %3367 = vpow2.f32 %v2413_v63 }
 0xd7d   : > { %v4145_v58 = vpop.eup %3365 }
 0xd7e   : > { %v2121_v26 = vmul.f32 1.442695, %v2116_v3  ;;  %v2273_v29 = vsel %vm920_vm0, %v4145_v58, 0.0 }
 0xd7f   : > { %2274 = vadd.xlane.f32.xlu1 %v2273_v29  ;;  %v2407_v32 = vpop.xlane.xlu0 %2406 }
 0xd80   : > { %3369 = vpow2.f32 %v2121_v26  ;;  %v2410_v10 = vsub.f32 %v4101_v44, %v2407_v32 }
 0xd81   : > { %3371 = vpow2.f32 %v2264_v31 }
 0xd82   : > { %v4150_v34 = vpop.eup %3367  ;;  %v2415_v13 = vmul.f32 1.442695, %v2410_v10 }
 0xd83   : > { %v2401_v36 = vpop.xlane.xlu1 %2400  ;;  %v2420_v42 = vsel %vm920_vm0, %v4150_v34, 0.0 }
 0xd84   : > { %v2408_v37 = vsub.f32 %v4105_v47, %v2401_v36 }
 0xd86   : > { %v4153_v38 = vpop.eup %3369  ;;  %v2411_v40 = vmul.f32 1.442695, %v2408_v37 }
 0xd87   : > { %2421 = vadd.xlane.f32.xlu1 %v2420_v42  ;;  %v2129_v35 = vsel %vm927_vm1, %v4153_v38, 0.0  ;;  %v4159_v43 = vpop.eup %3371 }
 0xd88   : > { %3373 = vpow2.f32 %v2411_v40  ;;  %2130 = vadd.xlane.f32.xlu2 %v2129_v35  ;;  %v2270_v48 = vsel %vm920_vm0, %v4159_v43, 0.0 }
 0xd8b   : > { %v2260_v52 = vpop.xlane.xlu1 %2259 }
 0xd8c   : > { %v2263_v9 = vsub.f32 %v4111_v53, %v2260_v52 }
 0xd8e   : > { %v4161_v45 = vpop.eup %3373  ;;  %v2268_v51 = vmul.f32 1.442695, %v2263_v9 }
 0xd8f   : > { %v2417_v47 = vsel %vm920_vm0, %v4161_v45, 0.0 }
 0xd90   : > { %2418 = vadd.xlane.f32.xlu0 %v2417_v47  ;;  %2271 = vadd.xlane.f32.xlu2 %v2270_v48 }
 0xda0   : > { %2475 = vrot.lane.b32.xlu1 %v4019_v50, %s4409_s29 }
 0xda1   : > { %v1978_v54 = vpop.xlane.xlu2 %1977 }
 0xda2   : > { %3375 = vrcp.f32 %v1978_v54  ;;  %v1996_v50 = vand.u32 2147483648, %v1978_v54  ;;  %vm1990_vm13 = vweird.f32 %v1978_v54  ;;  %v1994_v61 = vand.u32 2147483647, %v1978_v54 }
 0xda4   : > { %2473 = vrot.lane.b32.xlu0 %v4015_v33, %s4409_s29  ;;  %v1997_v7 = vor.u32 1.1754944e-38, %v1996_v50  ;;  %vm1995_vm5 = vcmp.eq.f32.partialorder %v1994_v61, 8.507059e+37 }
 0xda8   : > { %v3376_v55 = vpop.eup %3375  ;;  %2326 = vrot.lane.b32.xlu2 %v4015_v33, %s4408_s2 }
 0xda9   : > { %v1986_v56 = vmul.f32 %v3376_v55, %v1978_v54  ;;  %v1981_v46 = vpop.xlane.xlu1 %1980  ;;  %vm1991_vm12 = vweird.f32 %v3376_v55 }
 0xdaa   : > { %3377 = vrcp.f32 %v1981_v46  ;;  %vm1992_vm14 = vmor %vm1990_vm13, %vm1991_vm12  ;;  %v2011_v2 = vand.u32 2147483648, %v1981_v46  ;;  %v2009_v33 = vand.u32 2147483647, %v1981_v46  ;;  %vm2005_vm6 = vweird.f32 %v1981_v46 }
 0xdab   : > { %v1987_v18 = vsub.f32 1.0, %v1986_v56  ;;  %3379 = vpow2.f32 %v2415_v13 }
 0xdac   : > { %v2012_v12 = vor.u32 1.1754944e-38, %v2011_v2  ;;  %vm2010_vm11 = vcmp.eq.f32.partialorder %v2009_v33, 8.507059e+37  ;;  %3381 = vpow2.f32 %v2268_v51 }
 0xdad   : > { %v1988_v19 = vmul.f32 %v3376_v55, %v1987_v18 }
 0xdaf   : > { %v1989_v59 = vadd.f32 %v3376_v55, %v1988_v19 }
 0xdb0   : > { %v3378_v41 = vpop.eup %3377 }
 0xdb1   : > { %v2001_v0 = vmul.f32 %v3378_v41, %v1981_v46  ;;  %v1993_v60 = vsel %vm1992_vm14, %v3376_v55, %v1989_v59  ;;  %vm2006_vm4 = vweird.f32 %v3378_v41  ;;  %v4178_v44 = vpop.eup %3379 }
 0xdb2   : > { %v1998_v11 = vsel %vm1995_vm5, %v1997_v7, %v1993_v60  ;;  %vm2007_vm7 = vmor %vm2005_vm6, %vm2006_vm4  ;;  %v2423_v22 = vsel %vm927_vm1, %v4178_v44, 0.0  ;;  %v4182_v24 = vpop.eup %3381 }
 0xdb3   : > { %v2002_v1 = vsub.f32 1.0, %v2001_v0  ;;  %v1999_v15 = vmul.f32 %v4115_v57, %v1998_v11  ;;  %v2276_v53 = vsel %vm927_vm1, %v4182_v24, 0.0 }
 0xdb5   : > { %v2003_v49 = vmul.f32 %v3378_v41, %v2002_v1 }
 0xdb7   : > { %v2004_v8 = vadd.f32 %v3378_v41, %v2003_v49 }
 0xdb8   : > { %v2125_v21 = vpop.xlane.xlu0 %2124 }
 0xdb9   : > { %v2008_v6 = vsel %vm2007_vm7, %v3378_v41, %v2004_v8  ;;  %3383 = vrcp.f32 %v2125_v21  ;;  %vm2137_vm13 = vweird.f32 %v2125_v21  ;;  %v2143_v37 = vand.u32 2147483648, %v2125_v21 }
 0xdba   : > { %v2013_v14 = vsel %vm2010_vm11, %v2012_v12, %v2008_v6  ;;  %v2141_v35 = vand.u32 2147483647, %v2125_v21 }
 0xdbb   : > { %v2014_v17 = vmul.f32 %v4119_v62, %v2013_v14  ;;  %v2144_v56 = vor.u32 1.1754944e-38, %v2143_v37 }
 0xdbc   : > { %vm2142_vm6 = vcmp.eq.f32.partialorder %v2141_v35, 8.507059e+37 }
 0xdbd   : > { %v2030_v30 = vpack.c.bf16 %v2014_v17, %v1999_v15 }
 0xdbf   : > { %3100 = vmatmul.msk.bf16.vlgmr.msrb.gmra.mxu1 %vm920_vm0, %v2030_v30  ;;  %v3384_v25 = vpop.eup %3383 }
 0xdc0   : > { %v2133_v63 = vmul.f32 %v3384_v25, %v2125_v21  ;;  %vm2138_vm12 = vweird.f32 %v3384_v25 }
 0xdc1   : > { %vm2139_vm14 = vmor %vm2137_vm13, %vm2138_vm12 }
 0xdc2   : > { %v2134_v27 = vsub.f32 1.0, %v2133_v63 }
 0xdc4   : > { %v2135_v3 = vmul.f32 %v3384_v25, %v2134_v27 }
 0xdc6   : > { %v2136_v31 = vadd.f32 %v3384_v25, %v2135_v3 }
 0xdc8   : > { %v2140_v52 = vsel %vm2139_vm14, %v3384_v25, %v2136_v31 }
 0xdc9   : > { %v2145_v41 = vsel %vm2142_vm6, %v2144_v56, %v2140_v52 }
 0xdca   : > { %2424 = vadd.xlane.f32.xlu1 %v2423_v22  ;;  %v2146_v2 = vmul.f32 %v4125_v5, %v2145_v41 }
 0xdcb   : > { %v2329_v57 = vpop.permute.xlu0 %2328 }
 0xdcc   : > { %v2338_v62 = vand.u32 %v2329_v57, %v3724_v39 }
 0xdce   : > { %2277 = vadd.xlane.f32.xlu0 %v2276_v53  ;;  %2346 = vmatpush.bf16.msra.mxu1 %v2338_v62 }
 0xde7   : > { %v2128_v16 = vpop.xlane.xlu2 %2127 }
 0xde8   : > { %3385 = vrcp.f32 %v2128_v16  ;;  %v2158_v40 = vand.u32 2147483648, %v2128_v16  ;;  %v2156_v48 = vand.u32 2147483647, %v2128_v16  ;;  %vm2152_vm4 = vweird.f32 %v2128_v16 }
 0xdea   : > { %v2159_v46 = vor.u32 1.1754944e-38, %v2158_v40  ;;  %vm2157_vm7 = vcmp.eq.f32.partialorder %v2156_v48, 8.507059e+37 }
 0xdee   : > { %v3386_v28 = vpop.eup %3385 }
 0xdef   : > { %v2148_v26 = vmul.f32 %v3386_v28, %v2128_v16  ;;  %v1984_v29 = vpop.xlane.xlu2 %1983  ;;  %vm2153_vm1 = vweird.f32 %v3386_v28 }
 0xdf0   : > { %3387 = vrcp.f32 %v1984_v29  ;;  %vm2154_vm5 = vmor %vm2152_vm4, %vm2153_vm1  ;;  %v2026_v1 = vand.u32 2147483648, %v1984_v29  ;;  %v2024_v33 = vand.u32 2147483647, %v1984_v29  ;;  %vm2020_vm12 = vweird.f32 %v1984_v29 }
 0xdf1   : > { %v2149_v36 = vsub.f32 1.0, %v2148_v26 }
 0xdf2   : > { %v4187_v42 = vpop.xlane.xlu1 %2274  ;;  %vm2025_vm1 = vcmp.eq.f32.partialorder %v2024_v33, 8.507059e+37 }
 0xdf3   : > { %v2150_v47 = vmul.f32 %v3386_v28, %v2149_v36  ;;  %3389 = vrcp.f32 %v4187_v42  ;;  %v2303_v53 = vand.u32 2147483647, %v4187_v42  ;;  %vm2299_vm6 = vweird.f32 %v4187_v42 }
 0xdf4   : > { %v2305_v27 = vand.u32 2147483648, %v4187_v42 }
 0xdf5   : > { %v2151_v54 = vadd.f32 %v3386_v28, %v2150_v47 }
 0xdf6   : > { %v3388_v55 = vpop.eup %3387  ;;  %v2306_v52 = vor.u32 1.1754944e-38, %v2305_v27 }
 0xdf7   : > { %v2155_v18 = vsel %vm2154_vm5, %v3386_v28, %v2151_v54  ;;  %v2016_v19 = vmul.f32 %v3388_v55, %v1984_v29  ;;  %vm2021_vm11 = vweird.f32 %v3388_v55 }
 0xdf8   : > { %v2160_v59 = vsel %vm2157_vm7, %v2159_v46, %v2155_v18  ;;  %vm2022_vm13 = vmor %vm2020_vm12, %vm2021_vm11 }
 0xdf9   : > { %v2161_v0 = vmul.f32 %v4134_v20, %v2160_v59  ;;  %v2017_v50 = vsub.f32 1.0, %v2016_v19  ;;  %v4191_v61 = vpop.eup %3389  ;;  %v2027_v20 = vor.u32 1.1754944e-38, %v2026_v1 }
 0xdfa   : > { %v4194_v60 = vpop.xlane.xlu1 %2421  ;;  %v2295_v7 = vmul.f32 %v4191_v61, %v4187_v42  ;;  %vm2300_vm4 = vweird.f32 %v4191_v61 }
 0xdfb   : > { %v2018_v32 = vmul.f32 %v3388_v55, %v2017_v50  ;;  %v2131_v49 = vpop.xlane.xlu2 %2130  ;;  %v2177_v8 = vpack.c.bf16 %v2161_v0, %v2146_v2  ;;  %vm4219_vm12 = vmor %vm2299_vm6, %vm2300_vm4 }
 0xdfc   : > { %3391 = vrcp.f32 %v2131_v49  ;;  %v2296_v12 = vsub.f32 1.0, %v2295_v7  ;;  %v2173_v22 = vand.u32 2147483648, %v2131_v49  ;;  %v2171_v62 = vand.u32 2147483647, %v2131_v49 }
 0xdfd   : > { %v2019_v10 = vadd.f32 %v3388_v55, %v2018_v32  ;;  %3393 = vrcp.f32 %v4194_v60  ;;  %3104 = vmatmul.msk.bf16.vlgmr.msra.gmra.mxu0 %vm920_vm0, %v2177_v8  ;;  %vm2167_vm5 = vweird.f32 %v2131_v49  ;;  %v2452_v7 = vand.u32 2147483648, %v4194_v60 }
 0xdfe   : > { %v2297_v51 = vmul.f32 %v4191_v61, %v2296_v12  ;;  %v2174_v3 = vor.u32 1.1754944e-38, %v2173_v22  ;;  %vm2172_vm11 = vcmp.eq.f32.partialorder %v2171_v62, 8.507059e+37 }
 0xdff   : > { %v2023_v5 = vsel %vm2022_vm13, %v3388_v55, %v2019_v10  ;;  %vm2304_vm13 = vcmp.eq.f32.partialorder %v2303_v53, 8.507059e+37 }
 0xe00   : > { %v2028_v11 = vsel %vm2025_vm1, %v2027_v20, %v2023_v5  ;;  %v2298_v25 = vadd.f32 %v4191_v61, %v2297_v51  ;;  %v2450_v20 = vand.u32 2147483647, %v4194_v60 }
 0xe01   : > { %v2029_v6 = vmul.f32 %v4139_v4, %v2028_v11 }
 0xe02   : > { %v3392_v14 = vpop.eup %3391  ;;  %v2302_v42 = vsel %vm4219_vm12, %v4191_v61, %v2298_v25  ;;  %vm2446_vm12 = vweird.f32 %v4194_v60 }
 0xe03   : > { %v2163_v15 = vmul.f32 %v3392_v14, %v2131_v49  ;;  %v4201_v17 = vpop.xlane.xlu2 %2271  ;;  %v4203_v13 = vpop.xlane.xlu0 %2418  ;;  %v2031_v9 = vpack.c.bf16 %v2029_v6, %v2029_v6  ;;  %vm2168_vm14 = vweird.f32 %v3392_v14  ;;  %v2307_v41 = vsel %vm2304_vm13, %v2306_v52, %v2302_v42 }
 0xe04   : > { %v4205_v30 = vpop.eup %3393  ;;  %3395 = vrcp.f32 %v4201_v17  ;;  %vm2169_vm7 = vmor %vm2167_vm5, %vm2168_vm14  ;;  %v2288_v54 = vand.u32 2147483647, %v4201_v17  ;;  %v2290_v55 = vand.u32 2147483648, %v4201_v17  ;;  %vm2284_vm4 = vweird.f32 %v4201_v17 }
 0xe05   : > { %v2164_v21 = vsub.f32 1.0, %v2163_v15  ;;  %3397 = vrcp.f32 %v4203_v13  ;;  %3101 = vmatmul.msk.bf16.gmra.mxu1 %vm920_vm0, %v2031_v9  ;;  %v2442_v4 = vmul.f32 %v4205_v30, %v4194_v60  ;;  %vm2447_vm14 = vweird.f32 %v4205_v30 }
 0xe06   : > { %vm2431_vm5 = vweird.f32 %v4203_v13  ;;  %v2435_v61 = vand.u32 2147483647, %v4203_v13  ;;  %v2437_v1 = vand.u32 2147483648, %v4203_v13  ;;  %v2308_v10 = vmul.f32 %v4145_v58, %v2307_v41 }
 0xe07   : > { %v2165_v57 = vmul.f32 %v3392_v14, %v2164_v21  ;;  %v2443_v26 = vsub.f32 1.0, %v2442_v4  ;;  %v2453_v15 = vor.u32 1.1754944e-38, %v2452_v7 }
 0xe09   : > { %v2166_v63 = vadd.f32 %v3392_v14, %v2165_v57  ;;  %v2444_v46 = vmul.f32 %v4205_v30, %v2443_v26 }
 0xe0a   : > { %v3396_v16 = vpop.eup %3395 }
 0xe0b   : > { %v3398_v28 = vpop.eup %3397  ;;  %v2280_v29 = vmul.f32 %v3396_v16, %v4201_v17  ;;  %v2327_v31 = vpop.permute.xlu2 %2326  ;;  %v2170_v36 = vsel %vm2169_vm7, %v3392_v14, %v2166_v63  ;;  %vm2285_vm1 = vweird.f32 %v3396_v16  ;;  %v2445_v32 = vadd.f32 %v4205_v30, %v2444_v46 }
 0xe0c   : > { %v2427_v40 = vmul.f32 %v3398_v28, %v4203_v13  ;;  %2347 = vmatpush.bf16.msra.mxu1 %v2327_v31  ;;  %v2175_v35 = vsel %vm2172_vm11, %v2174_v3, %v2170_v36  ;;  %vm2432_vm6 = vweird.f32 %v3398_v28  ;;  %vm2286_vm7 = vmor %vm2284_vm4, %vm2285_vm1  ;;  %vm2289_vm11 = vcmp.eq.f32.partialorder %v2288_v54, 8.507059e+37 }
 0xe0d   : > { %v2281_v47 = vsub.f32 1.0, %v2280_v29  ;;  %v2176_v48 = vmul.f32 %v4153_v38, %v2175_v35  ;;  %v2291_v38 = vor.u32 1.1754944e-38, %v2290_v55  ;;  %vm2433_vm13 = vmor %vm2431_vm5, %vm2432_vm6  ;;  %vm2436_vm4 = vcmp.eq.f32.partialorder %v2435_v61, 8.507059e+37 }
 0xe0e   : > { %v2428_v56 = vsub.f32 1.0, %v2427_v40  ;;  %vm2448_vm1 = vmor %vm2446_vm12, %vm2447_vm14  ;;  %vm2451_vm5 = vcmp.eq.f32.partialorder %v2450_v20, 8.507059e+37 }
 0xe0f   : > { %v2282_v18 = vmul.f32 %v3396_v16, %v2281_v47  ;;  %v2178_v19 = vpack.c.bf16 %v2176_v48, %v2176_v48  ;;  %v2449_v6 = vsel %vm2448_vm1, %v4205_v30, %v2445_v32 }
 0xe10   : > { %v2429_v59 = vmul.f32 %v3398_v28, %v2428_v56  ;;  %v2454_v58 = vsel %vm2451_vm5, %v2453_v15, %v2449_v6 }
 0xe11   : > { %v2283_v0 = vadd.f32 %v3396_v16, %v2282_v18  ;;  %3105 = vmatmul.msk.bf16.gmra.mxu0 %vm920_vm0, %v2178_v19  ;;  %v2455_v60 = vmul.f32 %v4150_v34, %v2454_v58 }
 0xe12   : > { %v2430_v50 = vadd.f32 %v3398_v28, %v2429_v59  ;;  %v2476_v2 = vpop.permute.xlu1 %2475 }
 0xe13   : > { %v2287_v49 = vsel %vm2286_vm7, %v3396_v16, %v2283_v0  ;;  %v2485_v33 = vand.u32 %v2476_v2, %v3724_v39  ;;  %v2438_v39 = vor.u32 1.1754944e-38, %v2437_v1 }
 0xe14   : > { %v2292_v8 = vsel %vm2289_vm11, %v2291_v38, %v2287_v49  ;;  %v2434_v11 = vsel %vm2433_vm13, %v3398_v28, %v2430_v50  ;;  %v3175_v49 = vld [vmem:[%s3621_s16 + $0x8] sm:$0xff] }
 0xe15   : > { %v2293_v5 = vmul.f32 %v4159_v43, %v2292_v8  ;;  %2493 = vmatpush.bf16.msrb.mxu0 %v2485_v33  ;;  %v2439_v17 = vsel %vm2436_vm4, %v2438_v39, %v2434_v11  ;;  %2584 = vmatpush.bf16.msrb.mxu2 %v3175_v49  ;;  %v3174_v33 = vld [vmem:[%s3621_s16] sm:$0xff] }
 0xe16   : > { %v2474_v12 = vpop.permute.xlu0 %2473  ;;  %v2440_v43 = vmul.f32 %v4161_v45, %v2439_v17 }
 0xe17   : > { %v2324_v14 = vpack.c.bf16 %v2308_v10, %v2293_v5 }
 0xe18   : > { %v2471_v13 = vpack.c.bf16 %v2455_v60, %v2440_v43 }
 0xe19   : > { %2494 = vmatpush.bf16.msrb.mxu0 %v2474_v12  ;;  %3108 = vmatmul.msk.bf16.vlgmr.msra.gmra.mxu1 %vm920_vm0, %v2324_v14 }
 0xe1a   : > { %2585 = vmatpush.bf16.msrb.mxu2 %v3174_v33 }
 0xe21   : > { %3112 = vmatmul.msk.bf16.vlgmr.msrb.gmra.mxu0 %vm920_vm0, %v2471_v13 }
 0xe3c   : > { %v2055_v48 = vpop.f32.mrf.mxu1 }
 0xe3d   : > { %v2425_v9 = vpop.xlane.xlu1 %2424 }
 0xe3e   : > { %3399 = vrcp.f32 %v2425_v9  ;;  %v2467_v57 = vand.u32 2147483648, %v2425_v9  ;;  %v2465_v62 = vand.u32 2147483647, %v2425_v9  ;;  %vm2461_vm6 = vweird.f32 %v2425_v9 }
 0xe40   : > { %v2468_v34 = vor.u32 1.1754944e-38, %v2467_v57  ;;  %vm2466_vm11 = vcmp.eq.f32.partialorder %v2465_v62, 8.507059e+37  ;;  %v3278_v62 = vld [vmem:[%s3626_s21] ss:$0 sm:$0xff] }
 0xe41   : > { %v2278_v51 = vpop.xlane.xlu0 %2277 }
 0xe42   : > { %3401 = vrcp.f32 %v2278_v51  ;;  %v2320_v16 = vand.u32 2147483648, %v2278_v51  ;;  %v2318_v28 = vand.u32 2147483647, %v2278_v51  ;;  %vm2314_vm13 = vweird.f32 %v2278_v51 }
 0xe44   : > { %v3400_v30 = vpop.eup %3399  ;;  %v2321_v36 = vor.u32 1.1754944e-38, %v2320_v16  ;;  %vm2319_vm4 = vcmp.eq.f32.partialorder %v2318_v28, 8.507059e+37  ;;  %v2057_v52 = vpop.f32.mrf.mxu1 }
 0xe45   : > { %v2457_v21 = vmul.f32 %v3400_v30, %v2425_v9  ;;  %vm2462_vm14 = vweird.f32 %v3400_v30 }
 0xe46   : > { %vm2463_vm7 = vmor %vm2461_vm6, %vm2462_vm14 }
 0xe47   : > { %v2458_v22 = vsub.f32 1.0, %v2457_v21 }
 0xe48   : > { %v3402_v4 = vpop.eup %3401 }
 0xe49   : > { %v2459_v53 = vmul.f32 %v3400_v30, %v2458_v22  ;;  %v2310_v25 = vmul.f32 %v3402_v4, %v2278_v51  ;;  %vm2315_vm12 = vweird.f32 %v3402_v4 }
 0xe4a   : > { %vm2316_vm1 = vmor %vm2314_vm13, %vm2315_vm12 }
 0xe4b   : > { %v2311_v45 = vsub.f32 1.0, %v2310_v25  ;;  %v2460_v63 = vadd.f32 %v3400_v30, %v2459_v53 }
 0xe4d   : > { %v2312_v27 = vmul.f32 %v3402_v4, %v2311_v45  ;;  %v2464_v3 = vsel %vm2463_vm7, %v3400_v30, %v2460_v63  ;;  %v3420_v45 = vld [vmem:[%s3661_s27 + $0x18] sm:$0xff] }
 0xe4e   : > { %v2469_v26 = vsel %vm2466_vm11, %v2468_v34, %v2464_v3  ;;  %v3421_v3 = vld [vmem:[%s3661_s27 + $0x20] sm:$0xff] }
 0xe4f   : > { %v2470_v29 = vmul.f32 %v4178_v44, %v2469_v26  ;;  %v2313_v31 = vadd.f32 %v3402_v4, %v2312_v27 }
 0xe51   : > { %v2472_v37 = vpack.c.bf16 %v2470_v29, %v2470_v29  ;;  %v2317_v40 = vsel %vm2316_vm1, %v3402_v4, %v2313_v31 }
 0xe52   : > { %v2322_v35 = vsel %vm2319_vm4, %v2321_v36, %v2317_v40  ;;  %v3422_v36 = vld [vmem:[%s3661_s27 + $0x28] sm:$0x1] }
 0xe53   : > { %3113 = vmatmul.msk.bf16.gmra.mxu0 %vm920_vm0, %v2472_v37  ;;  %v2323_v42 = vmul.f32 %v4182_v24, %v2322_v35 }
 0xe55   : > { %v2325_v47 = vpack.c.bf16 %v2323_v42, %v2323_v42 }
 0xe57   : > { %3109 = vmatmul.msk.bf16.gmra.mxu1 %vm920_vm0, %v2325_v47 }
 0xe7a   : > { %v2202_v54 = vpop.f32.mrf.mxu0 }
 0xe82   : > { %v2060_v55 = vpop.f32.mrf.mxu1  ;;  %v2204_v56 = vpop.f32.mrf.mxu0 }
 0xe83   : > { %v3254_v44 = vpack.i.bf16 %v2204_v56, %v2202_v54 }
 0xe85   : > { %3255 = vrot.lane.b32.xlu2 %v3254_v44, %s4412_s28 }
 0xe8a   : > { %v2062_v46 = vpop.f32.mrf.mxu1 }
 0xe8e   : > { %v2207_v18 = vpop.f32.mrf.mxu0 }
 0xe96   : > { %v2209_v19 = vpop.f32.mrf.mxu0  ;;  %v2349_v41 = vpop.f32.mrf.mxu1 }
 0xe9e   : > { %v2351_v59 = vpop.f32.mrf.mxu1  ;;  %v2496_v0 = vpop.f32.mrf.mxu0 }
 0xe9f   : > { %v3259_v24 = vpack.i.bf16 %v2351_v59, %v2349_v41 }
 0xea1   : > { %3260 = vrot.lane.b32.xlu2 %v3259_v24, %s3479_s23 }
 0xea6   : > { %v2498_v38 = vpop.f32.mrf.mxu0 }
 0xea7   : > { %v3264_v50 = vpack.i.bf16 %v2498_v38, %v2496_v0 }
 0xea9   : > { %3265 = vrot.lane.b32.xlu2 %v3264_v50, %s3480_s17 }
 0xeb1   : > { %2512 = vrot.lane.b32.xlu2 %v2207_v18, %s4412_s28 }
 0xed0   : > { %v2501_v61 = vpop.f32.mrf.mxu0 }
 0xed1   : > { %2536 = vrot.lane.b32.xlu0 %v2501_v61, %s3480_s17  ;;  %v3177_v61 = vld [vmem:[%s3641_s3 + $0x8] sm:$0xff] }
 0xed2   : > { %2705 = vmatpush.bf16.msrb.mxu1 %v3177_v61 }
 0xed4   : > { %v2354_v1 = vpop.f32.mrf.mxu1 }
 0xed5   : > { %2524 = vrot.lane.b32.xlu2 %v2354_v1, %s3479_s23 }
 0xed8   : > { %v2503_v2 = vpop.f32.mrf.mxu0 }
 0xed9   : > { %v3176_v2 = vld [vmem:[%s3641_s3] sm:$0xff] }
 0xeda   : > { %2706 = vmatpush.bf16.msrb.mxu1 %v3176_v2 }
 0xedc   : > { %v2356_v32 = vpop.f32.mrf.mxu1 }
 0xedf   : > { %v3256_v7 = vpop.permute.xlu2 %3255 }
 0xee0   : > { %v3258_v10 = vunpack.i.h.bf16 %v3256_v7  ;;  %v3257_v20 = vunpack.i.l.bf16 %v3256_v7 }
 0xee2   : > { %v2542_v12 = vsel %vm886_vm15, %v2057_v52, %v3258_v10  ;;  %v2541_v6 = vsel %vm886_vm15, %v2055_v48, %v3257_v20 }
 0xefb   : > { %v3261_v8 = vpop.permute.xlu2 %3260 }
 0xefc   : > { %v3263_v5 = vunpack.i.h.bf16 %v3261_v8  ;;  %v3262_v11 = vunpack.i.l.bf16 %v3261_v8 }
 0xefe   : > { %v2545_v17 = vsel %vm1511_vm9, %v2542_v12, %v3263_v5  ;;  %v2544_v58 = vsel %vm1511_vm9, %v2541_v6, %v3262_v11 }
 0xf03   : > { %v3266_v39 = vpop.permute.xlu2 %3265 }
 0xf04   : > { %v3268_v14 = vunpack.i.h.bf16 %v3266_v39  ;;  %v3267_v15 = vunpack.i.l.bf16 %v3266_v39 }
 0xf06   : > { %v2548_v43 = vsel %vm1515_vm10, %v2545_v17, %v3268_v14  ;;  %v2547_v60 = vsel %vm1515_vm10, %v2544_v58, %v3267_v15 }
 0xf07   : > { %v2550_v13 = vpack.c.bf16 %v2548_v43, %v2547_v60 }
 0xf09   : > { %3122 = vmatmul.msk.bf16.vlgmr.msrb.gmra.mxu2 %vm738_vm2, %v2550_v13  ;;  %v3423_v13 = vld [vmem:[%s3631_s1] ss:$0 sm:$0xff] }
 0xf0b   : > { %v2513_v9 = vpop.permute.xlu2 %2512 }
 0xf0c   : > { %v2543_v30 = vsel %vm886_vm15, %v2060_v55, %v2513_v9 }
 0xf2f   : > { %v2525_v51 = vpop.permute.xlu2 %2524 }
 0xf30   : > { %v2546_v21 = vsel %vm1511_vm9, %v2543_v30, %v2525_v51 }
 0xf43   : > { %v2537_v22 = vpop.permute.xlu0 %2536 }
 0xf44   : > { %v2549_v4 = vsel %vm1515_vm10, %v2546_v21, %v2537_v22  ;;  %v3424_v21 = vld [vmem:[%s3636_s18] ss:$0 sm:$0xff] }
 0xf45   : > { %v2551_v57 = vpack.c.bf16 %v2549_v4, %v2549_v4 }
 0xf47   : > { %3123 = vmatmul.msk.bf16.gmra.mxu2 %vm738_vm2, %v2551_v57 }
 0xf8c   : > { %v2587_v53 = vpop.f32.mrf.mxu2 }
 0xf8d   : > { %v2588_v25 = vadd.f32 %v3278_v62, %v2587_v53 }
 0xf8f   : > { %v4279_v63 = vadd.f32 %v3420_v45, %v2588_v25 }
 0xf91   : > { %v2599_v34 = vsel %vm738_vm2, %v4279_v63, 0.0 }
 0xf92   : > { %2600 = vadd.xlane.f32.xlu1 %v2599_v34 }
 0xf94   : > { %v2589_v16 = vpop.f32.mrf.mxu2 }
 0xf95   : > { %v2590_v27 = vadd.f32 %v3278_v62, %v2589_v16 }
 0xf97   : > { %v4284_v28 = vadd.f32 %v3421_v3, %v2590_v27 }
 0xf99   : > { %v2602_v26 = vsel %vm738_vm2, %v4284_v28, 0.0 }
 0xf9a   : > { %2603 = vadd.xlane.f32.xlu2 %v2602_v26 }
 0xfca   : > { %v2592_v29 = vpop.f32.mrf.mxu2 }
 0xfcb   : > { %v2593_v31 = vadd.f32 %v3278_v62, %v2592_v29 }
 0xfcd   : > { %v4289_v37 = vadd.f32 %v3422_v36, %v2593_v31 }
 0xfcf   : > { %v2605_v40 = vsel %vm745_vm3, %v4289_v37, 0.0 }
 0xfd0   : > { %2606 = vadd.xlane.f32.xlu1 %v2605_v40 }
 0xfd2   : > { %v2594_v35 = vpop.f32.mrf.mxu2 }
 0xfd3   : > { %v3181_v35 = vld [vmem:[%s3651_s19 + $0x18] sm:$0xff] }
 0xfd4   : > { %2792 = vmatpush.bf16.msrb.mxu3 %v3181_v35 }
0x1005   : > { %v2601_v42 = vpop.xlane.xlu1 %2600 }
0x1006   : > { %v2608_v47 = vmul.f32 %v2601_v42, %v3685_v23  ;;  %v3180_v42 = vld [vmem:[%s3651_s19 + $0x10] sm:$0xff] }
0x1007   : > { %2793 = vmatpush.bf16.msrb.mxu3 %v3180_v42 }
0x1008   : > { %v2611_v48 = vsub.f32 %v4279_v63, %v2608_v47  ;;  %v3179_v47 = vld [vmem:[%s3651_s19 + $0x8] sm:$0xff] }
0x100a   : > { %v2614_v52 = vmul.f32 %v2611_v48, %v2611_v48 }
0x100b   : > { %2794 = vmatpush.bf16.msrb.mxu3 %v3179_v47 }
0x100c   : > { %v2617_v54 = vsel %vm738_vm2, %v2614_v52, 0.0  ;;  %v3178_v52 = vld [vmem:[%s3651_s19] sm:$0xff] }
0x100d   : > { %v2604_v55 = vpop.xlane.xlu2 %2603  ;;  %2618 = vadd.xlane.f32.xlu1 %v2617_v54 }
0x100e   : > { %v2609_v56 = vmul.f32 %v2604_v55, %v3685_v23 }
0x100f   : > { %2795 = vmatpush.bf16.msrb.mxu3 %v3178_v52 }
0x1010   : > { %v2612_v44 = vsub.f32 %v4284_v28, %v2609_v56 }
0x1012   : > { %v2615_v46 = vmul.f32 %v2612_v44, %v2612_v44 }
0x1014   : > { %v2620_v18 = vsel %vm738_vm2, %v2615_v46, 0.0 }
0x1015   : > { %2621 = vadd.xlane.f32.xlu0 %v2620_v18 }
0x1043   : > { %v2607_v19 = vpop.xlane.xlu1 %2606 }
0x1044   : > { %v2610_v41 = vmul.f32 %v2607_v19, %v3685_v23 }
0x1046   : > { %v2613_v59 = vsub.f32 %v4289_v37, %v2610_v41 }
0x1048   : > { %v2616_v0 = vmul.f32 %v2613_v59, %v2613_v59 }
0x104a   : > { %v2623_v24 = vsel %vm745_vm3, %v2616_v0, 0.0 }
0x104b   : > { %2624 = vadd.xlane.f32.xlu1 %v2623_v24 }
0x1080   : > { %v2619_v38 = vpop.xlane.xlu1 %2618 }
0x1081   : > { %v2626_v50 = vmul.f32 %v2619_v38, %v3685_v23 }
0x1083   : > { %v2629_v1 = vadd.f32 1e-12, %v2626_v50 }
0x1085   : > { %3403 = vrsqrt.f32 %v2629_v1  ;;  %vm2638_vm0 = vweird.f32 %v2629_v1 }
0x1088   : > { %v2622_v32 = vpop.xlane.xlu0 %2621 }
0x1089   : > { %v2627_v49 = vmul.f32 %v2622_v32, %v3685_v23 }
0x108b   : > { %v3404_v33 = vpop.eup %3403  ;;  %v2630_v7 = vadd.f32 1e-12, %v2627_v49 }
0x108c   : > { %v2633_v8 = vmul.f32 %v3404_v33, %v2629_v1  ;;  %vm2639_vm15 = vweird.f32 %v3404_v33 }
0x108d   : > { %3405 = vrsqrt.f32 %v2630_v7  ;;  %vm2640_vm9 = vmor %vm2638_vm0, %vm2639_vm15  ;;  %vm2648_vm5 = vweird.f32 %v2630_v7 }
0x108e   : > { %v2634_v10 = vmul.f32 %v3404_v33, %v2633_v8 }
0x1090   : > { %v2635_v20 = vmul.f32 0.5, %v2634_v10 }
0x1092   : > { %v2636_v5 = vsub.f32 1.5, %v2635_v20 }
0x1093   : > { %v3406_v11 = vpop.eup %3405 }
0x1094   : > { %v2637_v39 = vmul.f32 %v3404_v33, %v2636_v5  ;;  %v2643_v12 = vmul.f32 %v3406_v11, %v2630_v7  ;;  %vm2649_vm10 = vweird.f32 %v3406_v11 }
0x1095   : > { %vm2650_vm14 = vmor %vm2648_vm5, %vm2649_vm10 }
0x1096   : > { %v2644_v6 = vmul.f32 %v3406_v11, %v2643_v12  ;;  %v2641_v14 = vsel %vm2640_vm9, %v3404_v33, %v2637_v39 }
0x1097   : > { %v2662_v58 = vmul.f32 %v2641_v14, %v2611_v48  ;;  %v3279_v48 = vld [vmem:[%s3646_s4] ss:$0 sm:$0xff] }
0x1098   : > { %v2645_v15 = vmul.f32 0.5, %v2644_v6 }
0x1099   : > { %v2665_v9 = vmul.f32 %v3423_v13, %v2662_v58 }
0x109a   : > { %v2646_v17 = vsub.f32 1.5, %v2645_v15 }
0x109b   : > { %v2668_v22 = vadd.f32 %v3424_v21, %v2665_v9 }
0x109c   : > { %v2647_v43 = vmul.f32 %v3406_v11, %v2646_v17 }
0x109e   : > { %v2651_v60 = vsel %vm2650_vm14, %v3406_v11, %v2647_v43 }
0x109f   : > { %v2663_v51 = vmul.f32 %v2651_v60, %v2612_v44 }
0x10a1   : > { %v2666_v30 = vmul.f32 %v3423_v13, %v2663_v51  ;;  %v3280_v51 = vld [vmem:[%s3656_s22] ss:$0 sm:$0xff] }
0x10a3   : > { %v2669_v4 = vadd.f32 %v3424_v21, %v2666_v30 }
0x10a5   : > { %v2671_v57 = vpack.c.bf16 %v2669_v4, %v2668_v22 }
0x10a7   : > { %3132 = vmatmul.msk.bf16.vlgmr.msrb.gmra.mxu1 %vm738_vm2, %v2671_v57 }
0x10be   : > { %v2625_v62 = vpop.xlane.xlu1 %2624 }
0x10bf   : > { %v2628_v53 = vmul.f32 %v2625_v62, %v3685_v23 }
0x10c1   : > { %v2631_v25 = vadd.f32 1e-12, %v2628_v53 }
0x10c3   : > { %3407 = vrsqrt.f32 %v2631_v25  ;;  %vm2658_vm7 = vweird.f32 %v2631_v25 }
0x10c9   : > { %v3408_v45 = vpop.eup %3407 }
0x10ca   : > { %v2653_v34 = vmul.f32 %v3408_v45, %v2631_v25  ;;  %vm2659_vm6 = vweird.f32 %v3408_v45 }
0x10cb   : > { %vm2660_vm11 = vmor %vm2658_vm7, %vm2659_vm6 }
0x10cc   : > { %v2654_v16 = vmul.f32 %v3408_v45, %v2653_v34 }
0x10ce   : > { %v2655_v27 = vmul.f32 0.5, %v2654_v16 }
0x10d0   : > { %v2656_v3 = vsub.f32 1.5, %v2655_v27 }
0x10d2   : > { %v2657_v26 = vmul.f32 %v3408_v45, %v2656_v3 }
0x10d4   : > { %v2661_v29 = vsel %vm2660_vm11, %v3408_v45, %v2657_v26 }
0x10d5   : > { %v2664_v31 = vmul.f32 %v2661_v29, %v2613_v59 }
0x10d7   : > { %v2667_v36 = vmul.f32 %v3423_v13, %v2664_v31 }
0x10d9   : > { %v2670_v23 = vadd.f32 %v3424_v21, %v2667_v36 }
0x10db   : > { %v2672_v40 = vpack.c.bf16 %v2670_v23, %v2670_v23 }
0x10dd   : > { %3133 = vmatmul.msk.bf16.gmra.mxu1 %vm738_vm2, %v2672_v40 }
0x1124   : > { %v2708_v54 = vpop.f32.mrf.mxu1 }
0x1125   : > { %v2709_v55 = vadd.f32 %v3279_v48, %v2708_v54 }
0x1127   : > { %v2720_v56 = vmul.f32 0.044715, %v2709_v55  ;;  %v2717_v49 = vmul.f32 0.5, %v2709_v55 }
0x1129   : > { %v2723_v44 = vmul.f32 %v2720_v56, %v2709_v55 }
0x112b   : > { %v2726_v46 = vmul.f32 %v2723_v44, %v2709_v55 }
0x112c   : > { %v2710_v18 = vpop.f32.mrf.mxu1 }
0x112d   : > { %v2729_v19 = vadd.f32 %v2726_v46, %v2709_v55  ;;  %v2711_v41 = vadd.f32 %v3279_v48, %v2710_v18 }
0x112f   : > { %v2721_v59 = vmul.f32 0.044715, %v2711_v41  ;;  %v2732_v0 = vmul.f32 0.7978846, %v2729_v19  ;;  %v2718_v33 = vmul.f32 0.5, %v2711_v41 }
0x1131   : > { %v2724_v24 = vmul.f32 %v2721_v59, %v2711_v41  ;;  %3409 = vtanh.f32 %v2732_v0 }
0x1133   : > { %v2727_v38 = vmul.f32 %v2724_v24, %v2711_v41 }
0x1135   : > { %v2730_v50 = vadd.f32 %v2727_v38, %v2711_v41 }
0x1137   : > { %v2733_v61 = vmul.f32 0.7978846, %v2730_v50  ;;  %v3410_v1 = vpop.eup %3409 }
0x1138   : > { %v2738_v2 = vadd.f32 1.0, %v3410_v1 }
0x1139   : > { %3411 = vtanh.f32 %v2733_v61 }
0x113a   : > { %v2741_v8 = vmul.f32 %v2738_v2, %v2717_v49 }
0x113f   : > { %v3412_v32 = vpop.eup %3411 }
0x1140   : > { %v2739_v7 = vadd.f32 1.0, %v3412_v32 }
0x1142   : > { %v2742_v10 = vmul.f32 %v2739_v7, %v2718_v33 }
0x1144   : > { %v2744_v20 = vpack.c.bf16 %v2742_v10, %v2741_v8 }
0x1146   : > { %3150 = vmatmul.msk.bf16.vlgmr.msrb.gmra.mxu3 %vm1757_vm8, %v2744_v20 }
0x115a   : > { %v2713_v5 = vpop.f32.mrf.mxu1 }
0x115b   : > { %v2714_v11 = vadd.f32 %v3279_v48, %v2713_v5 }
0x115d   : > { %v2722_v39 = vmul.f32 0.044715, %v2714_v11  ;;  %v2719_v43 = vmul.f32 0.5, %v2714_v11 }
0x115f   : > { %v2725_v12 = vmul.f32 %v2722_v39, %v2714_v11 }
0x1161   : > { %v2728_v6 = vmul.f32 %v2725_v12, %v2714_v11 }
0x1162   : > { %v2715_v14 = vpop.f32.mrf.mxu1 }
0x1163   : > { %v2731_v15 = vadd.f32 %v2728_v6, %v2714_v11 }
0x1165   : > { %v2734_v17 = vmul.f32 0.7978846, %v2731_v15 }
0x1167   : > { %3413 = vtanh.f32 %v2734_v17 }
0x116d   : > { %v3414_v58 = vpop.eup %3413 }
0x116e   : > { %v2740_v60 = vadd.f32 1.0, %v3414_v58 }
0x1170   : > { %v2743_v13 = vmul.f32 %v2740_v60, %v2719_v43 }
0x1172   : > { %v2745_v9 = vpack.c.bf16 %v2743_v13, %v2743_v13 }
0x1174   : > { %3151 = vmatmul.msk.bf16.gmra.mxu3 %vm1757_vm8, %v2745_v9 }
0x11c9   : > { %v2797_v30 = vpop.f32.mrf.mxu3 }
0x11ca   : > { %v2798_v21 = vadd.f32 %v3280_v51, %v2797_v30 }
0x11cc   : > { %v2806_v22 = vadd.f32 %v2798_v21, %v4279_v63 }
0x11ce   : > { %3152 = vst.msk [vmem:[%s3661_s27 + $0x18] sm:$0xff] %vm738_vm2, %v2806_v22 }
0x11d1   : > { %v2799_v4 = vpop.f32.mrf.mxu3 }
0x11d2   : > { %v2800_v57 = vadd.f32 %v3280_v51, %v2799_v4 }
0x11d4   : > { %v2807_v62 = vadd.f32 %v2800_v57, %v4284_v28 }
0x11d6   : > { %3153 = vst.msk [vmem:[%s3661_s27 + $0x20] sm:$0xff] %vm738_vm2, %v2807_v62 }
0x11f7   : > { %v2802_v53 = vpop.f32.mrf.mxu3 }
0x11f8   : > { %v2803_v25 = vadd.f32 %v3280_v51, %v2802_v53 }
0x11fa   : > { %v2808_v45 = vadd.f32 %v2803_v25, %v4289_v37 }
0x11fc   : > { %3154 = vst.msk [vmem:[%s3661_s27 + $0x28] sm:$0x1] %vm745_vm3, %v2808_v45 }
0x11ff   : > { %v2804_v34 = vpop.f32.mrf.mxu3 }
0x1200 PF: > { %s4413_s16 = sld [smem:[#allocation5_spill]] }
0x1201   : > { %s4414_s18 = sld [smem:[#allocation3_spill]] }
0x1202   : > { %s4415_s19 = sld [smem:[#allocation4_spill]] }
0x1203   : > { %s4416_s20 = sld [smem:[#allocation6_spill]] }
0x1204   : > { %s4417_s21 = sld [smem:[#allocation7_spill]] }
0x1206   : > { %s25_s22 = sadd.s32 1, %s4413_s16  }
0x1207   : > { %p22_p8 = scmp.ge.s32.totalorder %s25_s22, 6  }
0x1209   :  { %24 = sbr.rel (!%p22_p8) target bundleno = 11 (0xb), region = 151 }

</bundles_post_ra>
